<compile_context>
chip_gen: v7x
topology: tpu7x:2x2x1
jax: 0.10.0
libtpu: 0.0.40
codegen_flags: <defaults>
</compile_context>

<pallas_src>
import functools

import jax
import jax.numpy as jnp
from jax import lax
from jax.experimental import pallas as pl
from jax.experimental.pallas import tpu as pltpu

LOG_SIG_MAX = 2.0
LOG_SIG_MIN = -5.0


def _policy_kernel(
    s_ref, w1_ref, b1_ref, wh_ref, bh_ref, rnd_ref,
    out_ref,
    *, inv_temperature, a_dim, n_comp, w_pad,
):
    NA = n_comp * a_dim
    NC = n_comp
    HO = 2 * NA + NC

    # ---- hidden MLP: Linear (bf16 MXU operands, f32 accumulate) + ReLU ----
    h = jnp.dot(s_ref[...], w1_ref[...], preferred_element_type=jnp.float32)
    h = jnp.maximum(h + b1_ref[...], 0.0)

    # ---- fused heads: (bt, hidden) @ (hidden, 2*NA + NC) ----
    # NOTE: launch/DMA-overhead bound at these shapes (K=32, N=36); padding the
    # matmul dims would add bytes for zero wall-clock benefit.
    heads = jnp.dot(h.astype(wh_ref.dtype), wh_ref[...],
                    preferred_element_type=jnp.float32) + bh_ref[...]

    # ---- in-place lane transform (no slice-then-reconcat round trip) ----
    #   lanes [0, NA)    : mu                    (identity)
    #   lanes [NA, 2*NA) : sigma  = exp(clip(x)) (EUP slot has slack)
    #   lanes [2*NA, HO) : logits = x / temperature
    lane = lax.broadcasted_iota(jnp.int32, heads.shape, 1)
    sig_lane = (lane >= NA) & (lane < 2 * NA)
    logit_lane = lane >= 2 * NA
    exp_clipped = jnp.exp(jnp.clip(heads, LOG_SIG_MIN, LOG_SIG_MAX))
    heads_t = jnp.where(sig_lane, exp_clipped,
                        jnp.where(logit_lane, heads * inv_temperature, heads))

    mu_all = heads_t[:, :NA]            # (bt, NA)
    sig_all = heads_t[:, NA:2 * NA]     # (bt, NA)
    logits = heads_t[:, 2 * NA:]        # (bt, NC)

    # ---- mixture-component sample: Gumbel-max over logits ----
    z = logits + rnd_ref[:, :NC]
    zmax = jnp.max(z, axis=-1, keepdims=True)
    comp_iota = lax.broadcasted_iota(jnp.int32, z.shape, 1)
    k_sel = jnp.min(jnp.where(z >= zmax, comp_iota, NC),
                    axis=-1, keepdims=True)          # lowest-index tie-break
    k_sel = jnp.minimum(k_sel, NC - 1)               # NaN / padded-row safe

    # ---- reparameterized sample + tanh for ALL components ----
    # eps is tiled across components in the wrapper; the selected-component
    # gather (tiny, unaligned a_dim lane slices) happens in the JAX wrapper.
    eps_all = rnd_ref[:, NC:]                        # (bt, NA)
    pre_all = mu_all + sig_all * eps_all
    act_all = jnp.tanh(pre_all)

    # ---- single lane-dense (multiple-of-128-lane) output slab ----
    # [heads_t (HO) | pre_all (NA) | act_all (NA) | k_sel (1) | zero pad]
    k_f = k_sel.astype(jnp.float32)
    pieces = [heads_t, pre_all, act_all, k_f]
    pad_lanes = w_pad - (HO + 2 * NA + 1)
    if pad_lanes > 0:
        pieces.append(jnp.zeros((heads.shape[0], pad_lanes), jnp.float32))
    out_ref[...] = jnp.concatenate(pieces, axis=-1)


def _default_parallel_tiles():
    """2 tiles on dual-TensorCore chips (v7x), else 1 (v5e/v6e are single-TC)."""
    try:
        kind = jax.devices()[0].device_kind.lower()
    except Exception:
        return 1
    return 2 if ("v7" in kind or "7x" in kind) else 1


def tanh_mixture_normal_policy_forward(
    s, params, gumbel, eps, *, n_comp, a_dim, temperature=1.0,
    num_parallel_tiles=None, max_block_b=2048, single_buffer_weights=False,
):
    """Returns (mu, sigma, logits, action, pretanh); mu/sigma are (B, n_comp, a_dim)."""
    B = s.shape[0]
    s2 = s.reshape(B, -1)
    s_dim = s2.shape[1]
    hidden = params["w1"].shape[1]
    NA = n_comp * a_dim
    NC = n_comp
    HO = 2 * NA + NC                      # fused head output width
    W_real = HO + 2 * NA + 1              # heads | pre_all | act_all | k
    W_pad = pl.cdiv(W_real, 128) * 128    # lane-dense slab width (unmasked vst)

    # bf16 matmul operands (halved DMA bytes, native MXU dtype on v6e/v7x);
    # biases and all elementwise/transcendental math stay f32 (v5e-safe).
    s_bf = s2.astype(jnp.bfloat16)
    w1 = params["w1"].astype(jnp.bfloat16)
    b1 = params["b1"].astype(jnp.float32)
    wh = jnp.concatenate([params["wmu"], params["wsig"], params["wcat"]],
                         axis=1).astype(jnp.bfloat16)             # (hidden, HO)
    bh = jnp.concatenate([params["bmu"], params["bsig"], params["bcat"]],
                         axis=1).astype(jnp.float32)              # (1, HO)

    # single fused random input: [gumbel (NC) | eps tiled over components (NA)]
    rnd = jnp.concatenate(
        [gumbel.astype(jnp.float32),
         jnp.tile(eps.astype(jnp.float32), (1, n_comp))], axis=-1)  # (B, NC+NA)

    # batch tiling: one big tile on 1-TC chips, >=2 parallel tiles on v7x;
    # tile rows are a multiple of 16 (bf16 sublane packing of the s operand).
    if num_parallel_tiles is None:
        num_parallel_tiles = _default_parallel_tiles()
    n_tiles = max(1, int(num_parallel_tiles))
    bt = -(-B // n_tiles)
    bt = max(16, min(bt, max_block_b))
    bt = ((bt + 15) // 16) * 16
    n_grid = pl.cdiv(B, bt)
    Bp = n_grid * bt
    pad_rows = Bp - B
    if pad_rows:
        s_bf = jnp.pad(s_bf, ((0, pad_rows), (0, 0)))
        rnd = jnp.pad(rnd, ((0, pad_rows), (0, 0)))

    kernel = functools.partial(
        _policy_kernel, inv_temperature=float(1.0 / temperature),
        a_dim=a_dim, n_comp=n_comp, w_pad=W_pad)

    # Grid-invariant weights (index_map == (0,0)) need no double buffer;
    # Buffered(1) only matters once hidden/s_dim grow (v7x 64 MiB VMEM), so it
    # is opt-in to keep the default path maximally compile-safe.
    if single_buffer_weights:
        def wspec(shape):
            return pl.BlockSpec(shape, lambda i: (0, 0),
                                pipeline_mode=pl.Buffered(1))
    else:
        def wspec(shape):
            return pl.BlockSpec(shape, lambda i: (0, 0))

    cost = pl.CostEstimate(
        flops=2 * Bp * (s_dim * hidden + hidden * HO),
        transcendentals=Bp * (HO + NA),
        bytes_accessed=(s_bf.size * 2 + w1.size * 2 + b1.size * 4
                        + wh.size * 2 + bh.size * 4 + rnd.size * 4
                        + Bp * W_pad * 4),
    )

    slab = pl.pallas_call(
        kernel,
        out_shape=jax.ShapeDtypeStruct((Bp, W_pad), jnp.float32),
        grid=(n_grid,),
        in_specs=[
            pl.BlockSpec((bt, s_dim), lambda i: (i, 0)),       # s    (tiled)
            wspec((s_dim, hidden)),                            # w1   (resident)
            wspec((1, hidden)),                                # b1   (resident)
            wspec((hidden, HO)),                               # wh   (resident)
            wspec((1, HO)),                                    # bh   (resident)
            pl.BlockSpec((bt, NC + NA), lambda i: (i, 0)),     # rnd  (tiled)
        ],
        out_specs=pl.BlockSpec((bt, W_pad), lambda i: (i, 0)),
        compiler_params=pltpu.CompilerParams(
            dimension_semantics=("parallel",)),
        cost_estimate=cost,
    )(s_bf, w1, b1, wh, bh, rnd)

    mu = slab[:B, :NA].reshape(B, n_comp, a_dim)
    sigma = slab[:B, NA:2 * NA].reshape(B, n_comp, a_dim)
    logits = slab[:B, 2 * NA:HO]
    pre_all = slab[:B, HO:HO + NA].reshape(B, n_comp, a_dim)
    act_all = slab[:B, HO + NA:HO + 2 * NA].reshape(B, n_comp, a_dim)
    k = slab[:B, HO + 2 * NA].astype(jnp.int32)                 # (B,)

    # tiny selected-component gather (kept out of the kernel on purpose)
    idx = jnp.broadcast_to(k[:, None, None], (B, 1, a_dim))
    pretanh = jnp.take_along_axis(pre_all, idx, axis=1)[:, 0]
    action = jnp.take_along_axis(act_all, idx, axis=1)[:, 0]
    # TODO(synk): torch.distributions.MixtureSameFamily (and its log_prob API)
    # has no Pallas equivalent; mu/sigma/logits returned here fully
    # parameterize it.
    return mu, sigma, logits, action, pretanh


def init_params(key, s_dim, hidden, n_comp, a_dim):
    """Deterministic init mimicking nn.Linear default + the sigma-head override."""
    NA = n_comp * a_dim
    ks = jax.random.split(key, 8)

    def unif(k, shape, bound):
        return jax.random.uniform(k, shape, jnp.float32, -bound, bound)

    b1 = 1.0 / jnp.sqrt(s_dim)
    b2 = 1.0 / jnp.sqrt(hidden)
    return {
        "w1":   unif(ks[0], (s_dim, hidden), b1),
        "b1":   unif(ks[1], (1, hidden), b1),
        "wmu":  unif(ks[2], (hidden, NA), b2),
        "bmu":  unif(ks[3], (1, NA), b2),
        # sigma head: nn.init.uniform_(-0.001, 0.001)
        "wsig": unif(ks[4], (hidden, NA), 0.001),
        "bsig": unif(ks[5], (1, NA), 0.001),
        "wcat": unif(ks[6], (hidden, n_comp), b2),
        "bcat": unif(ks[7], (1, n_comp), b2),
    }


def _reference_heads(s, params, n_comp, a_dim, temperature):
    """Pure-JAX reference with the same bf16 matmul operands (f32 accumulate)."""
    B = s.shape[0]
    s2 = s.reshape(B, -1).astype(jnp.bfloat16)
    w1 = params["w1"].astype(jnp.bfloat16)
    wh = jnp.concatenate([params["wmu"], params["wsig"], params["wcat"]],
                         axis=1).astype(jnp.bfloat16)
    bh = jnp.concatenate([params["bmu"], params["bsig"], params["bcat"]], axis=1)
    NA = n_comp * a_dim
    h = jnp.maximum(
        jnp.dot(s2, w1, preferred_element_type=jnp.float32) + params["b1"], 0.0)
    heads = jnp.dot(h.astype(jnp.bfloat16), wh,
                    preferred_element_type=jnp.float32) + bh
    mu = heads[:, :NA].reshape(B, n_comp, a_dim)
    sigma = jnp.exp(jnp.clip(heads[:, NA:2 * NA], LOG_SIG_MIN, LOG_SIG_MAX)
                    ).reshape(B, n_comp, a_dim)
    logits = heads[:, 2 * NA:] / temperature
    return mu, sigma, logits


if __name__ == "__main__":
    # small shapes: batch=256, state (4, 8) -> s_dim=32, hidden=256 (module
    # default), n_comp=4 mixture components, a_dim=4.
    B, n_comp, a_dim, hidden = 256, 4, 4, 256
    s_shape = (B, 4, 8)
    s_dim = 4 * 8

    root = jax.random.PRNGKey(0)
    k_s, k_p, k_g, k_e = jax.random.split(root, 4)

    s = jax.random.normal(k_s, s_shape, jnp.float32)
    params = init_params(k_p, s_dim, hidden, n_comp, a_dim)
    gumbel = jax.random.gumbel(k_g, (B, n_comp), jnp.float32)
    eps = jax.random.normal(k_e, (B, a_dim), jnp.float32)

    mu, sigma, logits, action, pretanh = tanh_mixture_normal_policy_forward(
        s, params, gumbel, eps, n_comp=n_comp, a_dim=a_dim, temperature=1.0)
    jax.block_until_ready((mu, sigma, logits, action, pretanh))

    # shape / range sanity
    assert mu.shape == (B, n_comp, a_dim)
    assert sigma.shape == (B, n_comp, a_dim)
    assert logits.shape == (B, n_comp)
    assert action.shape == (B, a_dim)
    assert pretanh.shape == (B, a_dim)
    assert bool(jnp.all(jnp.abs(action) <= 1.0))
    assert bool(jnp.all(sigma > 0.0))
    assert bool(jnp.all(jnp.isfinite(pretanh)))

    # deterministic-head check against a pure-JAX reference (same bf16 operands)
    mu_r, sigma_r, logits_r = _reference_heads(s, params, n_comp, a_dim, 1.0)
    assert bool(jnp.allclose(mu, mu_r, atol=2e-2, rtol=2e-2))
    assert bool(jnp.allclose(sigma, sigma_r, atol=2e-2, rtol=2e-2))
    assert bool(jnp.allclose(logits, logits_r, atol=2e-2, rtol=2e-2))

    # sampling-path check: the Gumbel-max selection recomputed from the
    # kernel's own logits is bit-identical to the in-kernel one (same f32 ops,
    # same lowest-index tie-break), so pretanh must equal mu_k + sigma_k * eps
    # and action must equal tanh(pretanh).
    k_sel = jnp.argmax(logits + gumbel, axis=-1)
    rows = jnp.arange(B)
    pre_ref = mu[rows, k_sel] + sigma[rows, k_sel] * eps
    assert bool(jnp.allclose(pretanh, pre_ref, atol=1e-5, rtol=1e-5))
    assert bool(jnp.allclose(action, jnp.tanh(pretanh), atol=1e-5, rtol=1e-5))

    print("KERNEL_OK")
</pallas_src>

<mosaic_0001>
module attributes {stable_mosaic.version = 11 : i64} {
  func.func @_policy_kernel(%arg0: i32, %arg1: memref<256x32xbf16, #tpu.memory_space<vmem>>, %arg2: memref<32x256xbf16, #tpu.memory_space<vmem>>, %arg3: memref<1x256xf32, #tpu.memory_space<vmem>>, %arg4: memref<256x36xbf16, #tpu.memory_space<vmem>>, %arg5: memref<1x36xf32, #tpu.memory_space<vmem>>, %arg6: memref<256x20xf32, #tpu.memory_space<vmem>>, %arg7: memref<256x128xf32, #tpu.memory_space<vmem>>) attributes {dimension_semantics = [#tpu.dimension_semantics<parallel>], iteration_bounds = array<i64: 1>, scalar_prefetch = 0 : i64, scratch_operands = 0 : i64, tpu.core_type = #tpu.core_type<tc>, window_params = [{transform_indices = @transform_0, window_bounds = array<i64: 256, 32>}, {pipeline_mode = #tpu.pipeline_mode<synchronous>, transform_indices = @transform_1, window_bounds = array<i64: 32, 256>}, {pipeline_mode = #tpu.pipeline_mode<synchronous>, transform_indices = @transform_2, window_bounds = array<i64: 1, 256>}, {pipeline_mode = #tpu.pipeline_mode<synchronous>, transform_indices = @transform_3, window_bounds = array<i64: 256, 36>}, {pipeline_mode = #tpu.pipeline_mode<synchronous>, transform_indices = @transform_4, window_bounds = array<i64: 1, 36>}, {transform_indices = @transform_5, window_bounds = array<i64: 256, 20>}, {transform_indices = @transform_6, window_bounds = array<i64: 256, 128>}]} {
    %c0 = arith.constant 0 : index
    %c0_0 = arith.constant 0 : index
    %0 = vector.load %arg1[%c0, %c0_0] : memref<256x32xbf16, #tpu.memory_space<vmem>>, vector<256x32xbf16>
    %c0_1 = arith.constant 0 : index
    %c0_2 = arith.constant 0 : index
    %1 = vector.load %arg2[%c0_1, %c0_2] : memref<32x256xbf16, #tpu.memory_space<vmem>>, vector<32x256xbf16>
    %cst = arith.constant dense<0.000000e+00> : vector<256x256xf32>
    %2 = tpu.matmul %0, %1, %cst {dimension_numbers = #tpu.dot_dimension_numbers<[1], [0], [0], [1], [0, 0, 1, 1], [], []>} : vector<256x32xbf16>, vector<32x256xbf16>, vector<256x256xf32> -> vector<256x256xf32>
    %c0_3 = arith.constant 0 : index
    %c0_4 = arith.constant 0 : index
    %3 = vector.load %arg3[%c0_3, %c0_4] : memref<1x256xf32, #tpu.memory_space<vmem>>, vector<1x256xf32>
    %4 = vector.broadcast %3 : vector<1x256xf32> to vector<256x256xf32>
    %5 = arith.addf %2, %4 : vector<256x256xf32>
    %cst_5 = arith.constant 0.000000e+00 : f32
    %6 = vector.broadcast %cst_5 : f32 to vector<256x256xf32>
    %7 = arith.maximumf %5, %6 : vector<256x256xf32>
    %8 = arith.truncf %7 : vector<256x256xf32> to vector<256x256xbf16>
    %c0_6 = arith.constant 0 : index
    %c0_7 = arith.constant 0 : index
    %9 = vector.load %arg4[%c0_6, %c0_7] : memref<256x36xbf16, #tpu.memory_space<vmem>>, vector<256x36xbf16>
    %cst_8 = arith.constant dense<0.000000e+00> : vector<256x36xf32>
    %10 = tpu.matmul %8, %9, %cst_8 {dimension_numbers = #tpu.dot_dimension_numbers<[1], [0], [0], [1], [0, 0, 1, 1], [], []>} : vector<256x256xbf16>, vector<256x36xbf16>, vector<256x36xf32> -> vector<256x36xf32>
    %c0_9 = arith.constant 0 : index
    %c0_10 = arith.constant 0 : index
    %11 = vector.load %arg5[%c0_9, %c0_10] : memref<1x36xf32, #tpu.memory_space<vmem>>, vector<1x36xf32>
    %12 = vector.broadcast %11 : vector<1x36xf32> to vector<256x36xf32>
    %13 = arith.addf %10, %12 : vector<256x36xf32>
    %14 = tpu.iota {dimensions = array<i32: 1>} : vector<256x36xi32>
    %c16_i32 = arith.constant 16 : i32
    %15 = vector.broadcast %c16_i32 : i32 to vector<256x36xi32>
    %16 = arith.cmpi sge, %14, %15 : vector<256x36xi32>
    %c32_i32 = arith.constant 32 : i32
    %17 = vector.broadcast %c32_i32 : i32 to vector<256x36xi32>
    %18 = arith.cmpi slt, %14, %17 : vector<256x36xi32>
    %19 = arith.andi %16, %18 : vector<256x36xi1>
    %c32_i32_11 = arith.constant 32 : i32
    %20 = vector.broadcast %c32_i32_11 : i32 to vector<256x36xi32>
    %21 = arith.cmpi sge, %14, %20 : vector<256x36xi32>
    %cst_12 = arith.constant -5.000000e+00 : f32
    %cst_13 = arith.constant 2.000000e+00 : f32
    %22 = vector.broadcast %cst_12 : f32 to vector<256x36xf32>
    %23 = arith.maximumf %22, %13 : vector<256x36xf32>
    %24 = vector.broadcast %cst_13 : f32 to vector<256x36xf32>
    %25 = arith.minimumf %24, %23 : vector<256x36xf32>
    %26 = math.exp %25 : vector<256x36xf32>
    %cst_14 = arith.constant 1.000000e+00 : f32
    %27 = vector.broadcast %cst_14 : f32 to vector<256x36xf32>
    %28 = arith.mulf %13, %27 : vector<256x36xf32>
    %29 = arith.select %21, %28, %13 : vector<256x36xi1>, vector<256x36xf32>
    %30 = arith.select %19, %26, %29 : vector<256x36xi1>, vector<256x36xf32>
    %31 = vector.extract_strided_slice %30 {offsets = [0, 0], sizes = [256, 16], strides = [1, 1]} : vector<256x36xf32> to vector<256x16xf32>
    %32 = vector.extract_strided_slice %30 {offsets = [0, 16], sizes = [256, 16], strides = [1, 1]} : vector<256x36xf32> to vector<256x16xf32>
    %33 = vector.extract_strided_slice %30 {offsets = [0, 32], sizes = [256, 4], strides = [1, 1]} : vector<256x36xf32> to vector<256x4xf32>
    %c0_15 = arith.constant 0 : index
    %c0_16 = arith.constant 0 : index
    %34 = vector.load %arg6[%c0_15, %c0_16] : memref<256x20xf32, #tpu.memory_space<vmem>>, vector<256x4xf32>
    %35 = arith.addf %33, %34 : vector<256x4xf32>
    %cst_17 = arith.constant dense<0xFF800000> : vector<256xf32>
    %36 = vector.multi_reduction <maximumf>, %35, %cst_17 [1] : vector<256x4xf32> to vector<256xf32>
    %37 = vector.shape_cast %36 : vector<256xf32> to vector<256x1xf32>
    %38 = tpu.iota {dimensions = array<i32: 1>} : vector<256x4xi32>
    %39 = vector.broadcast %37 : vector<256x1xf32> to vector<256x4xf32>
    %40 = arith.cmpf oge, %35, %39 : vector<256x4xf32>
    %c4_i32 = arith.constant 4 : i32
    %41 = vector.broadcast %c4_i32 : i32 to vector<256x4xi32>
    %42 = arith.select %40, %38, %41 : vector<256x4xi1>, vector<256x4xi32>
    %cst_18 = arith.constant dense<2147483647> : vector<256xi32>
    %43 = vector.multi_reduction <minsi>, %42, %cst_18 [1] : vector<256x4xi32> to vector<256xi32>
    %44 = vector.shape_cast %43 : vector<256xi32> to vector<256x1xi32>
    %c3_i32 = arith.constant 3 : i32
    %45 = vector.broadcast %c3_i32 : i32 to vector<256x1xi32>
    %46 = arith.minsi %44, %45 : vector<256x1xi32>
    %c0_19 = arith.constant 0 : index
    %c4 = arith.constant 4 : index
    %47 = vector.load %arg6[%c0_19, %c4] : memref<256x20xf32, #tpu.memory_space<vmem>>, vector<256x16xf32>
    %48 = arith.mulf %32, %47 : vector<256x16xf32>
    %49 = arith.addf %31, %48 : vector<256x16xf32>
    %50 = math.tanh %49 : vector<256x16xf32>
    %51 = arith.sitofp %46 : vector<256x1xi32> to vector<256x1xf32>
    %cst_20 = arith.constant 0.000000e+00 : f32
    %52 = vector.broadcast %cst_20 : f32 to vector<256x59xf32>
    %53 = tpu.concatenate %30, %49, %50, %51, %52 in 1 : vector<256x36xf32>, vector<256x16xf32>, vector<256x16xf32>, vector<256x1xf32>, vector<256x59xf32> -> vector<256x128xf32>
    %c0_21 = arith.constant 0 : index
    %c0_22 = arith.constant 0 : index
    %54 = vector.load %arg7[%c0_21, %c0_22] : memref<256x128xf32, #tpu.memory_space<vmem>>, vector<256x128xf32>
    tpu.vector_store %arg7[%c0_21, %c0_22], %53 {strides = array<i32>} : memref<256x128xf32, #tpu.memory_space<vmem>>, vector<256x128xf32>,
    return
  }
  func.func @transform_0(%arg0: i32) -> (i32, i32) {
    %c0_i32 = arith.constant 0 : i32
    %c0_i32_0 = arith.constant 0 : i32
    return %arg0, %c0_i32 : i32, i32
  }
  func.func @transform_1(%arg0: i32) -> (i32, i32) {
    %c0_i32 = arith.constant 0 : i32
    %c0_i32_0 = arith.constant 0 : i32
    %c0_i32_1 = arith.constant 0 : i32
    return %c0_i32, %c0_i32_0 : i32, i32
  }
  func.func @transform_2(%arg0: i32) -> (i32, i32) {
    %c0_i32 = arith.constant 0 : i32
    %c0_i32_0 = arith.constant 0 : i32
    %c0_i32_1 = arith.constant 0 : i32
    return %c0_i32, %c0_i32_0 : i32, i32
  }
  func.func @transform_3(%arg0: i32) -> (i32, i32) {
    %c0_i32 = arith.constant 0 : i32
    %c0_i32_0 = arith.constant 0 : i32
    %c0_i32_1 = arith.constant 0 : i32
    return %c0_i32, %c0_i32_0 : i32, i32
  }
  func.func @transform_4(%arg0: i32) -> (i32, i32) {
    %c0_i32 = arith.constant 0 : i32
    %c0_i32_0 = arith.constant 0 : i32
    %c0_i32_1 = arith.constant 0 : i32
    return %c0_i32, %c0_i32_0 : i32, i32
  }
  func.func @transform_5(%arg0: i32) -> (i32, i32) {
    %c0_i32 = arith.constant 0 : i32
    %c0_i32_0 = arith.constant 0 : i32
    return %arg0, %c0_i32 : i32, i32
  }
  func.func @transform_6(%arg0: i32) -> (i32, i32) {
    %c0_i32 = arith.constant 0 : i32
    %c0_i32_0 = arith.constant 0 : i32
    return %arg0, %c0_i32 : i32, i32
  }
}

</mosaic_0001>

<bundles_post_ra>
// kernel: tpu_custom_call.1
= control target key start
LH: loop header
LB: loop body
LE: loop exit
PB: predicated region body
PF: predicated region fallthrough
CT: control target
= control target key end

     0   :  { %v3039_v2 = vmov 0   ;;  %vm173_vm0 = vcmask 261120   ;;  %s5291_s0 = inlined_call_operand.vmem [shape: bf16[256,32], index: 0, kind: input, shape index: {}]   ;;  %s5292_s1 = inlined_call_operand.vmem [shape: bf16[32,256], index: 1, kind: input, shape index: {}]   ;;  %s5293_s2 = inlined_call_operand.vmem [shape: f32[1,256], index: 2, kind: input, shape index: {}]   ;;  %s5294_s3 = inlined_call_operand.vmem [shape: bf16[256,36], index: 3, kind: input, shape index: {}]   ;;  %s5295_s4 = inlined_call_operand.vmem [shape: f32[1,36], index: 4, kind: input, shape index: {}]   ;;  %s5296_s5 = inlined_call_operand.vmem [shape: f32[256,20], index: 5, kind: input, shape index: {}]   ;;  %s5297_s6 = inlined_call_operand.hbm [shape: f32[256,128], index: 6, kind: output, shape index: {}]  }
   0x1   :  { %v2849_v0 = vld [vmem:[%s5292_s1 + $0x4] ss:$8 sps:$4 sm:$0xff]   ;;  %v2851_v1 = vld [vmem:[%s5292_s1] ss:$8 sps:$4 sm:$0xff]   ;;  %254 = vmatprep.mubr.bf16.mxu0 %v3039_v2  ;;  %v2852_v3 = vld [vmem:[%s5292_s1 + $0x14] ss:$8 sps:$4 sm:$0xff]  }
   0x2   :  { %222 = vmatprep.subr.bf16.mxu0 %v2849_v0  ;;  %v2854_v4 = vld [vmem:[%s5292_s1 + $0x10] ss:$8 sps:$4 sm:$0xff]   ;;  %v2855_v5 = vld [vmem:[%s5291_s0] sm:$0xff]   ;;  %v2856_v6 = vld [vmem:[%s5291_s0 + $0x8] sm:$0xff]  }
   0x3   :  { %223 = vmatpush1.bf16.msra.mxu0 %v2851_v1  ;;  %v2867_v7 = vld [vmem:[%s5294_s3 + $0x40] sm:$0xff]   ;;  %v2871_v9 = vld [vmem:[%s5294_s3 + $0x48] sm:$0xff]   ;;  %v2857_v11 = vld [vmem:[%s5291_s0 + $0x10] sm:$0xff]  }
   0x4   :  { %224 = vmatprep.subr.bf16.mxu0 %v2852_v3  ;;  %v2868_v8 = vld [vmem:[%s5294_s3] sm:$0xff]   ;;  %2824 = vmatprep.subr.bf16.mxu1 %v2867_v7  ;;  %v2872_v10 = vld [vmem:[%s5294_s3 + $0x8] sm:$0xff]   ;;  %v2875_v12 = vld [vmem:[%s5294_s3 + $0x50] sm:$0xff]  }
   0x5   :  { %2832 = vmatpush3.bf16.msra.mxu1 %v2868_v8  ;;  %v2876_v13 = vld [vmem:[%s5294_s3 + $0x10] sm:$0xff]   ;;  %v2877_v14 = vld [vmem:[%s5294_s3 + $0x58] sm:$0xff]   ;;  %v2879_v16 = vld [vmem:[%s5294_s3 + $0x60] sm:$0xff]  }
   0x6   :  { %2825 = vmatprep.subr.bf16.mxu1 %v2871_v9  ;;  %v2878_v15 = vld [vmem:[%s5294_s3 + $0x18] sm:$0xff]   ;;  %v2880_v18 = vld [vmem:[%s5294_s3 + $0x20] sm:$0xff]   ;;  %v2881_v19 = vld [vmem:[%s5294_s3 + $0x68] sm:$0xff]  }
   0x7   :  { %225 = vmatpush1.bf16.msra.mxu0 %v2854_v4  ;;  %v2858_v17 = vld [vmem:[%s5291_s0 + $0x18] sm:$0xff]   ;;  %v2882_v20 = vld [vmem:[%s5294_s3 + $0x28] sm:$0xff]  }
   0x8   :  { %2712 = vmatprep.subr.bf16.mxu0 %v2867_v7 }
   0x9   :  { %2833 = vmatpush3.bf16.msra.mxu1 %v2872_v10 }
   0xa   :  { %2679 = vmatmul.mubr.msk.bf16.vlgmr.msra.gmra.mrb[0].mxu0 %vm173_vm0, %v2855_v5  ;;  %2826 = vmatprep.subr.bf16.mxu1 %v2875_v12 }
   0xb   :  { %264 = vmatprep.mubr.bf16.mxu0 %v3039_v2  ;;  %2713 = vmatpush3.bf16.msra.mxu0 %v2868_v8 }
   0xc   :  { %2714 = vmatprep.subr.bf16.mxu0 %v2871_v9 }
   0xd   :  { %2834 = vmatpush3.bf16.msra.mxu1 %v2876_v13 }
   0xe   :  { %2827 = vmatprep.subr.bf16.mxu1 %v2877_v14 }
   0xf   :  { %2715 = vmatpush3.bf16.msra.mxu0 %v2872_v10 }
  0x10   :  { %2716 = vmatprep.subr.bf16.mxu0 %v2875_v12 }
  0x11   :  { %2835 = vmatpush3.bf16.msra.mxu1 %v2878_v15 }
  0x12   :  { %2680 = vmatmul.mubr.msk.bf16.gmra.mrb[4].mxu0 %vm173_vm0, %v2856_v6  ;;  %2828 = vmatprep.subr.bf16.mxu1 %v2879_v16 }
  0x13   :  { %274 = vmatprep.mubr.bf16.mxu0 %v3039_v2  ;;  %2717 = vmatpush3.bf16.msra.mxu0 %v2876_v13 }
  0x14   :  { %2718 = vmatprep.subr.bf16.mxu0 %v2877_v14 }
  0x15   :  { %2836 = vmatpush3.bf16.msra.mxu1 %v2880_v18 }
  0x17   :  { %2719 = vmatpush3.bf16.msra.mxu0 %v2878_v15 }
  0x18   :  { %2720 = vmatprep.subr.bf16.mxu0 %v2879_v16 }
  0x1a   :  { %2681 = vmatmul.mubr.msk.bf16.gmra.mrb[8].mxu0 %vm173_vm0, %v2857_v11 }
  0x1b   :  { %284 = vmatprep.mubr.bf16.mxu0 %v3039_v2  ;;  %2721 = vmatpush3.bf16.msra.mxu0 %v2880_v18 }
  0x22   :  { %2682 = vmatmul.mubr.msk.bf16.gmra.mrb[12].mxu0 %vm173_vm0, %v2858_v17 }
  0x23   :  { %294 = vmatprep.mubr.bf16.mxu0 %v3039_v2 }
  0x24   :  { %11 = vsyncpa [#allocation3], 0  ;;  %2722 = vmatprep.subr.bf16.mxu0 %v2881_v19  ;;  %v2883_v21 = vld [vmem:[%s5294_s3 + $0x70] sm:$0xff]   ;;  %2829 = vmatprep.subr.bf16.mxu1 %v2881_v19  ;;  %v2859_v22 = vld [vmem:[%s5291_s0 + $0x20] sm:$0xff]   ;;  %s3040_s19 = smov 32   ;;  %v63_v62 = vlaneseq  ;;  %s3041_s29 = smov 12  }
  0x25   :  { %2837 = vmatpush3.bf16.msra.mxu1 %v2882_v20  ;;  %2723 = vmatpush3.bf16.msra.mxu0 %v2882_v20  ;;  %v2884_v23 = vld [vmem:[%s5294_s3 + $0x30] sm:$0xff]   ;;  %v2885_v24 = vld [vmem:[%s5294_s3 + $0x78] sm:$0xff]   ;;  %v2860_v26 = vld [vmem:[%s5291_s0 + $0x28] sm:$0xff]   ;;  %vm1164_vm4 = vcmask 294144   ;;  %s3043_s30 = smov 36   ;;  %s3044_s7 = smov 52  }
  0x26   :  { %2830 = vmatprep.subr.bf16.mxu1 %v2883_v21  ;;  %2724 = vmatprep.subr.bf16.mxu0 %v2883_v21  ;;  %v2886_v25 = vld [vmem:[%s5294_s3 + $0x38] sm:$0xff]   ;;  %v2861_v27 = vld [vmem:[%s5291_s0 + $0x30] sm:$0xff]   ;;  %v2863_v29 = vld [vmem:[%s5291_s0 + $0x40] sm:$0xff]   ;;  %v64_v1 = vshrl.u32 %v63_v62, 7  ;;  %v3445_v10 = vand.u32 127, %v63_v62  ;;  %s3045_s8 = smov [#allocation2]  }
  0x27   :  { %v2862_v28 = vld [vmem:[%s5291_s0 + $0x38] sm:$0xff]   ;;  %v2864_v30 = vld [vmem:[%s5291_s0 + $0x48] sm:$0xff]   ;;  %v2865_v31 = vld [vmem:[%s5291_s0 + $0x50] sm:$0xff]   ;;  %s2648_s9 = sshll.u32 %s3045_s8, 4  ;;  %s2649_s9 = int_to_ptr.vmem [resolvable:$true] %s2648_s9 }
  0x28   :  { %v2866_v32 = vld [vmem:[%s5291_s0 + $0x58] sm:$0xff]   ;;  %v2869_v33 = vld [vmem:[%s5291_s0 + $0x60] sm:$0xff]   ;;  %v2870_v34 = vld [vmem:[%s5291_s0 + $0x68] sm:$0xff]   ;;  %v65_v4 = vsub.s32 0, %v64_v1  ;;  %v69_v6 = vsub.s32 1, %v64_v1  ;;  %vm809_vm1 = vcmp.ge.s32.totalorder %v3445_v10, 16  ;;  %p3020_p1 = scmp.lt.s32.totalorder %s2649_s9, %s2649_s9 }
  0x29   :  { %2838 = vmatpush3.bf16.msra.mxu1 %v2884_v23  ;;  %2725 = vmatpush3.bf16.msra.mxu0 %v2884_v23  ;;  %v2873_v35 = vld [vmem:[%s5291_s0 + $0x70] sm:$0xff]   ;;  %v2874_v36 = vld [vmem:[%s5291_s0 + $0x78] sm:$0xff]   ;;  %v3240_v39 = vld [vmem:[%s5296_s5] sm:$0xff]  ;;  %vm810_vm2 = vcmp.lt.s32.totalorder %v3445_v10, 32  ;;  %s3015_s10 = scalar_lea.vmem %s2649_s9, 4096 }
  0x2a   :  { %2683 = vmatmul.mubr.msk.bf16.gmra.mrb[16].mxu0 %vm173_vm0, %v2859_v22  ;;  %2726 = vmatprep.subr.bf16.mxu0 %v2885_v24  ;;  %v3226_v37 = vld [vmem:[%s5296_s5 + $0x10] sm:$0xff]  ;;  %v3233_v38 = vld [vmem:[%s5296_s5 + $0x18] sm:$0xff]  ;;  %v3247_v40 = vld [vmem:[%s5296_s5 + $0x28] sm:$0xff]  ;;  %p3016_p0 = scmp.ne.s32.totalorder %s2649_s9, %s3015_s10  ;;  %p3021_p2 = scmp.lt.s32.totalorder %s3015_s10, %s3015_s10 }
  0x2b   :  { %304 = vmatprep.mubr.bf16.mxu0 %v3039_v2  ;;  %2831 = vmatprep.subr.bf16.mxu1 %v2885_v24  ;;  %v3254_v41 = vld [vmem:[%s5296_s5 + $0x8] sm:$0xff]  ;;  %v3261_v42 = vld [vmem:[%s5296_s5 + $0x38] sm:$0xff]  ;;  %v3268_v43 = vld [vmem:[%s5296_s5 + $0x20] sm:$0xff] }
  0x2c   :  { %1040 = vrot.lane.b32.xlu1 %v3226_v37, %s3040_s19  ;;  %1036 = vrot.lane.b32.xlu0 %v3240_v39, %s3040_s19  ;;  %v3275_v44 = vld [vmem:[%s5296_s5 + $0x48] sm:$0xff]  ;;  %v3282_v45 = vld [vmem:[%s5296_s5 + $0x30] sm:$0xff]  ;;  %vm3663_vm3 = vmand %vm809_vm1, %vm810_vm2  ;;  %p3022_p3 = por %p3021_p2, %p3020_p1 }
  0x2d   :  { %2839 = vmatpush3.bf16.msra.mxu1 %v2886_v25  ;;  %2727 = vmatpush3.bf16.msra.mxu0 %v2886_v25  ;;  %v3289_v46 = vld [vmem:[%s5296_s5 + $0x58] sm:$0xff]  ;;  %v3296_v47 = vld [vmem:[%s5296_s5 + $0x40] sm:$0xff]  ;;  %v3303_v48 = vld [vmem:[%s5296_s5 + $0x68] sm:$0xff] }
  0x2e   :  { %v3310_v49 = vld [vmem:[%s5296_s5 + $0x50] sm:$0xff]  ;;  %v3317_v50 = vld [vmem:[%s5296_s5 + $0x78] sm:$0xff]  ;;  %v3324_v51 = vld [vmem:[%s5296_s5 + $0x60] sm:$0xff]  ;;  %p3023_p4 = pnand %p3022_p3, %p3016_p0 }
  0x2f   :  { %v3331_v52 = vld [vmem:[%s5296_s5 + $0x88] sm:$0xff]  ;;  %v3338_v53 = vld [vmem:[%s5296_s5 + $0x70] sm:$0xff]  ;;  %v3345_v54 = vld [vmem:[%s5296_s5 + $0x98] sm:$0xff] }
  0x30   :  { %1042 = vrot.lane.b32.xlu1 %v3233_v38, %s3040_s19  ;;  %1038 = vrot.lane.b32.xlu0 %v3254_v41, %s3040_s19  ;;  %v3352_v55 = vld [vmem:[%s5296_s5 + $0x80] sm:$0xff]  ;;  %v3359_v56 = vld [vmem:[%s5296_s5 + $0xa8] sm:$0xff] }
  0x31   :  { %v3366_v57 = vld [vmem:[%s5296_s5 + $0x90] sm:$0xff]  ;;  %v3373_v58 = vld [vmem:[%s5296_s5 + $0xb8] sm:$0xff]  ;;  %v3380_v59 = vld [vmem:[%s5296_s5 + $0xa0] sm:$0xff] }
  0x32   :  { %2684 = vmatmul.mubr.msk.bf16.gmra.mrb[20].mxu0 %vm173_vm0, %v2860_v26  ;;  %v3387_v60 = vld [vmem:[%s5296_s5 + $0xc8] sm:$0xff]  ;;  %v3394_v61 = vld [vmem:[%s5296_s5 + $0xb0] sm:$0xff]  ;;  %v3401_v63 = vld [vmem:[%s5296_s5 + $0xd8] sm:$0xff] }
  0x33   :  { %314 = vmatprep.mubr.bf16.mxu0 %v3039_v2  ;;  %v3408_v0 = vld [vmem:[%s5296_s5 + $0xc0] sm:$0xff]  ;;  %v3422_v3 = vld [vmem:[%s5296_s5 + $0xd0] sm:$0xff]  ;;  %v3432_v7 = vld [vmem:[%s5296_s5 + $0xf8] sm:$0xff] }
  0x34   :  { %1046 = vrot.lane.b32.xlu1 %v3247_v40, %s3040_s19  ;;  %1044 = vrot.lane.b32.xlu0 %v3268_v43, %s3040_s19  ;;  %v61_v5 = vld [vmem:[%s5293_s2] sm:$0x3]  ;;  %v3454_v13 = vld [vmem:[%s5296_s5 + $0xf0] sm:$0xff] }
  0x35   :  { %v3439_v8 = vld [vmem:[%s5296_s5 + $0xe0] sm:$0xff]  ;;  %v3441_v9 = vrot.slane %v61_v5, %v65_v4  ;;  %v3447_v11 = vrot.slane %v61_v5, %v69_v6 }
  0x38   :  { %1050 = vrot.lane.b32.xlu1 %v3261_v42, %s3040_s19  ;;  %1048 = vrot.lane.b32.xlu0 %v3282_v45, %s3040_s19 }
  0x3a   :  { %2685 = vmatmul.mubr.msk.bf16.gmra.mrb[24].mxu0 %vm173_vm0, %v2861_v27 }
  0x3b   :  { %324 = vmatprep.mubr.bf16.mxu0 %v3039_v2 }
  0x3c   :  { %1054 = vrot.lane.b32.xlu1 %v3275_v44, %s3040_s19  ;;  %1052 = vrot.lane.b32.xlu0 %v3296_v47, %s3040_s19 }
  0x40   :  { %1058 = vrot.lane.b32.xlu1 %v3289_v46, %s3040_s19  ;;  %1056 = vrot.lane.b32.xlu0 %v3310_v49, %s3040_s19 }
  0x42   :  { %2686 = vmatmul.mubr.msk.bf16.gmra.mrb[28].mxu0 %vm173_vm0, %v2862_v28 }
  0x43   :  { %334 = vmatprep.mubr.bf16.mxu0 %v3039_v2 }
  0x44   :  { %1062 = vrot.lane.b32.xlu1 %v3303_v48, %s3040_s19  ;;  %1060 = vrot.lane.b32.xlu0 %v3324_v51, %s3040_s19 }
  0x48   :  { %1066 = vrot.lane.b32.xlu1 %v3317_v50, %s3040_s19  ;;  %1064 = vrot.lane.b32.xlu0 %v3338_v53, %s3040_s19 }
  0x4a   :  { %2687 = vmatmul.mubr.msk.bf16.gmra.mrb[32].mxu0 %vm173_vm0, %v2863_v29 }
  0x4b   :  { %344 = vmatprep.mubr.bf16.mxu0 %v3039_v2 }
  0x4c   :  { %1070 = vrot.lane.b32.xlu1 %v3331_v52, %s3040_s19  ;;  %1068 = vrot.lane.b32.xlu0 %v3352_v55, %s3040_s19 }
  0x50   :  { %1074 = vrot.lane.b32.xlu1 %v3345_v54, %s3040_s19  ;;  %1072 = vrot.lane.b32.xlu0 %v3366_v57, %s3040_s19 }
  0x52   :  { %2688 = vmatmul.mubr.msk.bf16.gmra.mrb[36].mxu0 %vm173_vm0, %v2864_v30 }
  0x53   :  { %354 = vmatprep.mubr.bf16.mxu0 %v3039_v2 }
  0x54   :  { %1078 = vrot.lane.b32.xlu1 %v3359_v56, %s3040_s19  ;;  %1076 = vrot.lane.b32.xlu0 %v3380_v59, %s3040_s19 }
  0x58   :  { %1082 = vrot.lane.b32.xlu1 %v3373_v58, %s3040_s19  ;;  %1080 = vrot.lane.b32.xlu0 %v3394_v61, %s3040_s19 }
  0x5a   :  { %2689 = vmatmul.mubr.msk.bf16.gmra.mrb[40].mxu0 %vm173_vm0, %v2865_v31 }
  0x5b   :  { %364 = vmatprep.mubr.bf16.mxu0 %v3039_v2 }
  0x5c   :  { %1086 = vrot.lane.b32.xlu1 %v3387_v60, %s3040_s19  ;;  %1084 = vrot.lane.b32.xlu0 %v3408_v0, %s3040_s19 }
  0x60   :  { %1090 = vrot.lane.b32.xlu1 %v3401_v63, %s3040_s19  ;;  %1088 = vrot.lane.b32.xlu0 %v3422_v3, %s3040_s19 }
  0x62   :  { %2690 = vmatmul.mubr.msk.bf16.gmra.mrb[44].mxu0 %vm173_vm0, %v2866_v32 }
  0x63   :  { %374 = vmatprep.mubr.bf16.mxu0 %v3039_v2 }
  0x64   :  { %1092 = vrot.lane.b32.xlu0 %v3439_v8, %s3040_s19 }
  0x68   :  { %1096 = vrot.lane.b32.xlu0 %v3454_v13, %s3040_s19 }
  0x6a   :  { %2691 = vmatmul.mubr.msk.bf16.gmra.mrb[48].mxu0 %vm173_vm0, %v2869_v33 }
  0x6b   :  { %384 = vmatprep.mubr.bf16.mxu0 %v3039_v2 }
  0x6c   :  { %1873 = vrot.lane.b32.xlu0 %v3254_v41, %s3041_s29 }
  0x70   :  { %1879 = vrot.lane.b32.xlu0 %v3268_v43, %s3041_s29 }
  0x72   :  { %2692 = vmatmul.mubr.msk.bf16.gmra.mrb[52].mxu0 %vm173_vm0, %v2870_v34 }
  0x73   :  { %394 = vmatprep.mubr.bf16.mxu0 %v3039_v2 }
  0x74   :  { %1883 = vrot.lane.b32.xlu0 %v3282_v45, %s3041_s29 }
  0x78   :  { %1887 = vrot.lane.b32.xlu0 %v3296_v47, %s3041_s29 }
  0x7a   :  { %2693 = vmatmul.mubr.msk.bf16.gmra.mrb[56].mxu0 %vm173_vm0, %v2873_v35 }
  0x7b   :  { %404 = vmatprep.mubr.bf16.mxu0 %v3039_v2  ;;  %v3415_v2 = vld [vmem:[%s5296_s5 + $0xe8] sm:$0xff] }
  0x7c   :  { %1094 = vrot.lane.b32.xlu1 %v3415_v2, %s3040_s19  ;;  %1891 = vrot.lane.b32.xlu0 %v3310_v49, %s3041_s29 }
  0x80   :  { %1098 = vrot.lane.b32.xlu1 %v3432_v7, %s3040_s19  ;;  %1895 = vrot.lane.b32.xlu0 %v3324_v51, %s3041_s29 }
  0x82   :  { %2694 = vmatmul.mubr.msk.bf16.gmra.mrb[60].mxu0 %vm173_vm0, %v2874_v36 }
  0x84   :  { %1293 = vrot.lane.b32.xlu1 %v3445_v10, %s3040_s19  ;;  %1899 = vrot.lane.b32.xlu0 %v3338_v53, %s3041_s29 }
  0x88   :  { %1871 = vrot.lane.b32.xlu1 %v3240_v39, %s3041_s29  ;;  %1903 = vrot.lane.b32.xlu0 %v3352_v55, %s3041_s29 }
  0x8c   :  { %1875 = vrot.lane.b32.xlu1 %v3226_v37, %s3041_s29  ;;  %1907 = vrot.lane.b32.xlu0 %v3366_v57, %s3041_s29 }
  0x90   :  { %1877 = vrot.lane.b32.xlu1 %v3233_v38, %s3041_s29  ;;  %1911 = vrot.lane.b32.xlu0 %v3380_v59, %s3041_s29 }
  0x94   :  { %1881 = vrot.lane.b32.xlu1 %v3247_v40, %s3041_s29  ;;  %1915 = vrot.lane.b32.xlu0 %v3394_v61, %s3041_s29 }
  0x98   :  { %1885 = vrot.lane.b32.xlu1 %v3261_v42, %s3041_s29  ;;  %1919 = vrot.lane.b32.xlu0 %v3408_v0, %s3041_s29 }
  0x9c   :  { %1889 = vrot.lane.b32.xlu1 %v3275_v44, %s3041_s29  ;;  %1923 = vrot.lane.b32.xlu0 %v3422_v3, %s3041_s29 }
  0xa0   :  { %1893 = vrot.lane.b32.xlu1 %v3289_v46, %s3041_s29  ;;  %1927 = vrot.lane.b32.xlu0 %v3439_v8, %s3041_s29 }
  0xa4   :  { %1897 = vrot.lane.b32.xlu1 %v3303_v48, %s3041_s29  ;;  %1931 = vrot.lane.b32.xlu0 %v3454_v13, %s3041_s29 }
  0xa8   :  { %1901 = vrot.lane.b32.xlu1 %v3317_v50, %s3041_s29 }
  0xac   :  { %1905 = vrot.lane.b32.xlu1 %v3331_v52, %s3041_s29 }
  0xb0   :  { %1909 = vrot.lane.b32.xlu1 %v3345_v54, %s3041_s29 }
  0xb4   :  { %1913 = vrot.lane.b32.xlu1 %v3359_v56, %s3041_s29 }
  0xb8   :  { %1917 = vrot.lane.b32.xlu1 %v3373_v58, %s3041_s29 }
  0xbc   :  { %1921 = vrot.lane.b32.xlu1 %v3387_v60, %s3041_s29 }
  0xc0   :  { %1925 = vrot.lane.b32.xlu1 %v3401_v63, %s3041_s29 }
  0xc4   :  { %1929 = vrot.lane.b32.xlu1 %v3415_v2, %s3041_s29 }
  0xc8   :  { %1933 = vrot.lane.b32.xlu1 %v3432_v7, %s3041_s29 }
  0xdd   :  { %v256_v12 = vpop.f32.mrb[0].mxu0 }
  0xde   :  { %v257_v14 = vadd.f32 %v256_v12, %v3441_v9  ;;  %v258_v15 = vpop.f32.mrb[1].mxu0 }
  0xdf   :  { %v259_v16 = vadd.f32 %v258_v15, %v3447_v11  ;;  %v260_v17 = vpop.f32.mrb[2].mxu0 }
  0xe0   :  { %v261_v18 = vadd.f32 %v260_v17, %v3441_v9  ;;  %v262_v19 = vpop.f32.mrb[3].mxu0  ;;  %v415_v21 = vmax.f32 %v257_v14, 0.0 }
  0xe1   :  { %v263_v20 = vadd.f32 %v262_v19, %v3447_v11  ;;  %v416_v23 = vmax.f32 %v259_v16, 0.0 }
  0xe2   :  { %v417_v22 = vmax.f32 %v261_v18, 0.0 }
  0xe3   :  { %v418_v24 = vmax.f32 %v263_v20, 0.0 }
  0xe4   :  { %v479_v25 = vpack.c.bf16 %v417_v22, %v415_v21 }
  0xe5   :  { %v480_v26 = vpack.c.bf16 %v418_v24, %v416_v23  ;;  %v266_v27 = vpop.f32.mrb[4].mxu0 }
  0xe6   :  { %v267_v28 = vadd.f32 %v266_v27, %v3441_v9  ;;  %v268_v29 = vpop.f32.mrb[5].mxu0 }
  0xe7   :  { %v269_v30 = vadd.f32 %v268_v29, %v3447_v11  ;;  %v270_v31 = vpop.f32.mrb[6].mxu0  ;;  %678 = vmatprep.mubr.bf16.mxu0 %v480_v26 }
  0xe8   :  { %v419_v32 = vmax.f32 %v267_v28, 0.0  ;;  %v271_v33 = vadd.f32 %v270_v31, %v3441_v9  ;;  %v272_v34 = vpop.f32.mrb[7].mxu0  ;;  %679 = vmatmul.mubr.bf16.vlgmr.msra.gmra.mrb[64].mxu0 %v479_v25 }
  0xe9   :  { %v420_v35 = vmax.f32 %v269_v30, 0.0  ;;  %v273_v36 = vadd.f32 %v272_v34, %v3447_v11 }
  0xea   :  { %v421_v37 = vmax.f32 %v271_v33, 0.0 }
  0xeb   :  { %v422_v39 = vmax.f32 %v273_v36, 0.0 }
  0xec   :  { %v481_v41 = vpack.c.bf16 %v421_v37, %v419_v32 }
  0xed   :  { %v276_v43 = vpop.f32.mrb[8].mxu0  ;;  %v482_v62 = vpack.c.bf16 %v422_v39, %v420_v35 }
  0xee   :  { %v277_v1 = vadd.f32 %v276_v43, %v3441_v9  ;;  %v278_v4 = vpop.f32.mrb[9].mxu0 }
  0xef   :  { %v279_v38 = vadd.f32 %v278_v4, %v3447_v11  ;;  %v280_v5 = vpop.f32.mrb[10].mxu0  ;;  %686 = vmatprep.mubr.bf16.mxu1 %v482_v62 }
  0xf0   :  { %v423_v6 = vmax.f32 %v277_v1, 0.0  ;;  %v281_v45 = vadd.f32 %v280_v5, %v3441_v9  ;;  %v282_v12 = vpop.f32.mrb[11].mxu0  ;;  %687 = vmatmul.mubr.bf16.vlgmr.msra.gmra.mrb[0].mxu1 %v481_v41 }
  0xf1   :  { %v424_v40 = vmax.f32 %v279_v38, 0.0  ;;  %v283_v14 = vadd.f32 %v282_v12, %v3447_v11 }
  0xf2   :  { %v425_v15 = vmax.f32 %v281_v45, 0.0 }
  0xf3   :  { %v426_v47 = vmax.f32 %v283_v14, 0.0 }
  0xf4   :  { %v483_v16 = vpack.c.bf16 %v425_v15, %v423_v6 }
  0xf5   :  { %v484_v17 = vpack.c.bf16 %v426_v47, %v424_v40  ;;  %v286_v18 = vpop.f32.mrb[12].mxu0 }
  0xf6   :  { %v287_v19 = vadd.f32 %v286_v18, %v3441_v9  ;;  %v288_v20 = vpop.f32.mrb[13].mxu0 }
  0xf7   :  { %v289_v42 = vadd.f32 %v288_v20, %v3447_v11  ;;  %v290_v21 = vpop.f32.mrb[14].mxu0  ;;  %694 = vmatprep.mubr.bf16.mxu1 %v484_v17 }
  0xf8   :  { %v427_v22 = vmax.f32 %v287_v19, 0.0  ;;  %v291_v49 = vadd.f32 %v290_v21, %v3441_v9  ;;  %v292_v23 = vpop.f32.mrb[15].mxu0  ;;  %695 = vmatmul.mubr.bf16.gmra.mrb[4].mxu1 %v483_v16 }
  0xf9   :  { %v428_v44 = vmax.f32 %v289_v42, 0.0  ;;  %v293_v24 = vadd.f32 %v292_v23, %v3447_v11 }
  0xfa   :  { %v429_v25 = vmax.f32 %v291_v49, 0.0 }
  0xfb   :  { %v430_v51 = vmax.f32 %v293_v24, 0.0 }
  0xfc   :  { %v485_v26 = vpack.c.bf16 %v429_v25, %v427_v22 }
  0xfd   :  { %v486_v27 = vpack.c.bf16 %v430_v51, %v428_v44  ;;  %v296_v28 = vpop.f32.mrb[16].mxu0 }
  0xfe   :  { %v297_v29 = vadd.f32 %v296_v28, %v3441_v9  ;;  %v298_v30 = vpop.f32.mrb[17].mxu0 }
  0xff   :  { %v299_v46 = vadd.f32 %v298_v30, %v3447_v11  ;;  %v300_v31 = vpop.f32.mrb[18].mxu0  ;;  %702 = vmatprep.mubr.bf16.mxu1 %v486_v27 }
 0x100   :  { %v431_v32 = vmax.f32 %v297_v29, 0.0  ;;  %v301_v53 = vadd.f32 %v300_v31, %v3441_v9  ;;  %v302_v33 = vpop.f32.mrb[19].mxu0  ;;  %703 = vmatmul.mubr.bf16.gmra.mrb[8].mxu1 %v485_v26 }
 0x101   :  { %v432_v48 = vmax.f32 %v299_v46, 0.0  ;;  %v303_v34 = vadd.f32 %v302_v33, %v3447_v11 }
 0x102   :  { %v433_v35 = vmax.f32 %v301_v53, 0.0 }
 0x103   :  { %v434_v55 = vmax.f32 %v303_v34, 0.0 }
 0x104   :  { %v487_v36 = vpack.c.bf16 %v433_v35, %v431_v32 }
 0x105   :  { %v488_v37 = vpack.c.bf16 %v434_v55, %v432_v48  ;;  %v306_v39 = vpop.f32.mrb[20].mxu0 }
 0x106   :  { %v307_v41 = vadd.f32 %v306_v39, %v3441_v9  ;;  %v308_v43 = vpop.f32.mrb[21].mxu0 }
 0x107   :  { %v309_v50 = vadd.f32 %v308_v43, %v3447_v11  ;;  %v310_v62 = vpop.f32.mrb[22].mxu0  ;;  %710 = vmatprep.mubr.bf16.mxu1 %v488_v37 }
 0x108   :  { %v435_v1 = vmax.f32 %v307_v41, 0.0  ;;  %v311_v57 = vadd.f32 %v310_v62, %v3441_v9  ;;  %v312_v4 = vpop.f32.mrb[23].mxu0  ;;  %711 = vmatmul.mubr.bf16.gmra.mrb[12].mxu1 %v487_v36 }
 0x109   :  { %v436_v52 = vmax.f32 %v309_v50, 0.0  ;;  %v313_v38 = vadd.f32 %v312_v4, %v3447_v11 }
 0x10a   :  { %v437_v5 = vmax.f32 %v311_v57, 0.0 }
 0x10b   :  { %v438_v59 = vmax.f32 %v313_v38, 0.0 }
 0x10c   :  { %v489_v6 = vpack.c.bf16 %v437_v5, %v435_v1 }
 0x10d   :  { %v490_v45 = vpack.c.bf16 %v438_v59, %v436_v52  ;;  %v316_v12 = vpop.f32.mrb[24].mxu0 }
 0x10e   :  { %v317_v40 = vadd.f32 %v316_v12, %v3441_v9  ;;  %v318_v14 = vpop.f32.mrb[25].mxu0 }
 0x10f   :  { %v319_v54 = vadd.f32 %v318_v14, %v3447_v11  ;;  %v320_v15 = vpop.f32.mrb[26].mxu0  ;;  %718 = vmatprep.mubr.bf16.mxu1 %v490_v45 }
 0x110   :  { %v439_v47 = vmax.f32 %v317_v40, 0.0  ;;  %v321_v61 = vadd.f32 %v320_v15, %v3441_v9  ;;  %v322_v16 = vpop.f32.mrb[27].mxu0  ;;  %719 = vmatmul.mubr.bf16.gmra.mrb[16].mxu1 %v489_v6 }
 0x111   :  { %v440_v56 = vmax.f32 %v319_v54, 0.0  ;;  %v323_v17 = vadd.f32 %v322_v16, %v3447_v11 }
 0x112   :  { %v441_v18 = vmax.f32 %v321_v61, 0.0 }
 0x113   :  { %v442_v0 = vmax.f32 %v323_v17, 0.0 }
 0x114   :  { %v491_v19 = vpack.c.bf16 %v441_v18, %v439_v47 }
 0x115   :  { %v492_v20 = vpack.c.bf16 %v442_v0, %v440_v56  ;;  %v326_v42 = vpop.f32.mrb[28].mxu0 }
 0x116   :  { %v327_v21 = vadd.f32 %v326_v42, %v3441_v9  ;;  %v328_v22 = vpop.f32.mrb[29].mxu0 }
 0x117   :  { %v329_v58 = vadd.f32 %v328_v22, %v3447_v11  ;;  %v330_v49 = vpop.f32.mrb[30].mxu0  ;;  %726 = vmatprep.mubr.bf16.mxu1 %v492_v20 }
 0x118   :  { %v443_v23 = vmax.f32 %v327_v21, 0.0  ;;  %v331_v3 = vadd.f32 %v330_v49, %v3441_v9  ;;  %v332_v44 = vpop.f32.mrb[31].mxu0  ;;  %727 = vmatmul.mubr.bf16.gmra.mrb[20].mxu1 %v491_v19 }
 0x119   :  { %v444_v60 = vmax.f32 %v329_v58, 0.0  ;;  %v333_v24 = vadd.f32 %v332_v44, %v3447_v11 }
 0x11a   :  { %v445_v25 = vmax.f32 %v331_v3, 0.0 }
 0x11b   :  { %v446_v8 = vmax.f32 %v333_v24, 0.0 }
 0x11c   :  { %v493_v51 = vpack.c.bf16 %v445_v25, %v443_v23 }
 0x11d   :  { %v494_v26 = vpack.c.bf16 %v446_v8, %v444_v60  ;;  %v336_v27 = vpop.f32.mrb[32].mxu0 }
 0x11e   :  { %v337_v28 = vadd.f32 %v336_v27, %v3441_v9  ;;  %v338_v29 = vpop.f32.mrb[33].mxu0 }
 0x11f   :  { %v339_v30 = vadd.f32 %v338_v29, %v3447_v11  ;;  %v340_v63 = vpop.f32.mrb[34].mxu0  ;;  %734 = vmatprep.mubr.bf16.mxu1 %v494_v26 }
 0x120   :  { %v447_v46 = vmax.f32 %v337_v28, 0.0  ;;  %v341_v31 = vadd.f32 %v340_v63, %v3441_v9  ;;  %v342_v32 = vpop.f32.mrb[35].mxu0  ;;  %735 = vmatmul.mubr.bf16.gmra.mrb[24].mxu1 %v493_v51 }
 0x121   :  { %v448_v13 = vmax.f32 %v339_v30, 0.0  ;;  %v343_v2 = vadd.f32 %v342_v32, %v3447_v11 }
 0x122   :  { %v449_v53 = vmax.f32 %v341_v31, 0.0 }
 0x123   :  { %v450_v33 = vmax.f32 %v343_v2, 0.0 }
 0x124   :  { %v495_v48 = vpack.c.bf16 %v449_v53, %v447_v46 }
 0x125   :  { %v496_v34 = vpack.c.bf16 %v450_v33, %v448_v13  ;;  %v346_v35 = vpop.f32.mrb[36].mxu0 }
 0x126   :  { %v347_v55 = vadd.f32 %v346_v35, %v3441_v9  ;;  %v348_v36 = vpop.f32.mrb[37].mxu0 }
 0x127   :  { %v349_v37 = vadd.f32 %v348_v36, %v3447_v11  ;;  %v350_v39 = vpop.f32.mrb[38].mxu0  ;;  %742 = vmatprep.mubr.bf16.mxu1 %v496_v34 }
 0x128   :  { %v451_v41 = vmax.f32 %v347_v55, 0.0  ;;  %v351_v43 = vadd.f32 %v350_v39, %v3441_v9  ;;  %v352_v50 = vpop.f32.mrb[39].mxu0  ;;  %743 = vmatmul.mubr.bf16.gmra.mrb[28].mxu1 %v495_v48 }
 0x129   :  { %v452_v7 = vmax.f32 %v349_v37, 0.0  ;;  %v353_v62 = vadd.f32 %v352_v50, %v3447_v11 }
 0x12a   :  { %v453_v1 = vmax.f32 %v351_v43, 0.0 }
 0x12b   :  { %v454_v57 = vmax.f32 %v353_v62, 0.0 }
 0x12c   :  { %v497_v4 = vpack.c.bf16 %v453_v1, %v451_v41 }
 0x12d   :  { %v498_v52 = vpack.c.bf16 %v454_v57, %v452_v7  ;;  %v356_v38 = vpop.f32.mrb[40].mxu0 }
 0x12e   :  { %v357_v5 = vadd.f32 %v356_v38, %v3441_v9  ;;  %v358_v59 = vpop.f32.mrb[41].mxu0 }
 0x12f   :  { %v359_v6 = vadd.f32 %v358_v59, %v3447_v11  ;;  %v360_v45 = vpop.f32.mrb[42].mxu0  ;;  %750 = vmatprep.mubr.bf16.mxu1 %v498_v52 }
 0x130   :  { %v455_v12 = vmax.f32 %v357_v5, 0.0  ;;  %v361_v40 = vadd.f32 %v360_v45, %v3441_v9  ;;  %v362_v14 = vpop.f32.mrb[43].mxu0  ;;  %751 = vmatmul.mubr.bf16.gmra.mrb[32].mxu1 %v497_v4 }
 0x131   :  { %v456_v54 = vmax.f32 %v359_v6, 0.0  ;;  %v363_v15 = vadd.f32 %v362_v14, %v3447_v11 }
 0x132   :  { %v457_v47 = vmax.f32 %v361_v40, 0.0 }
 0x133   :  { %v458_v61 = vmax.f32 %v363_v15, 0.0 }
 0x134   :  { %v499_v16 = vpack.c.bf16 %v457_v47, %v455_v12 }
 0x135   :  { %v500_v56 = vpack.c.bf16 %v458_v61, %v456_v54  ;;  %v366_v17 = vpop.f32.mrb[44].mxu0 }
 0x136   :  { %v367_v18 = vadd.f32 %v366_v17, %v3441_v9  ;;  %v368_v0 = vpop.f32.mrb[45].mxu0 }
 0x137   :  { %v369_v19 = vadd.f32 %v368_v0, %v3447_v11  ;;  %v370_v20 = vpop.f32.mrb[46].mxu0  ;;  %758 = vmatprep.mubr.bf16.mxu1 %v500_v56 }
 0x138   :  { %v459_v42 = vmax.f32 %v367_v18, 0.0  ;;  %v371_v21 = vadd.f32 %v370_v20, %v3441_v9  ;;  %v372_v22 = vpop.f32.mrb[47].mxu0  ;;  %759 = vmatmul.mubr.bf16.gmra.mrb[36].mxu1 %v499_v16 }
 0x139   :  { %v460_v58 = vmax.f32 %v369_v19, 0.0  ;;  %v373_v49 = vadd.f32 %v372_v22, %v3447_v11 }
 0x13a   :  { %v461_v23 = vmax.f32 %v371_v21, 0.0 }
 0x13b   :  { %v462_v3 = vmax.f32 %v373_v49, 0.0  ;;  %v3586_v49 = vpop.permute.xlu1 %1040 }
 0x13c   :  { %v501_v44 = vpack.c.bf16 %v461_v23, %v459_v42 }
 0x13d   :  { %v502_v60 = vpack.c.bf16 %v462_v3, %v460_v58  ;;  %v376_v24 = vpop.f32.mrb[48].mxu0  ;;  %v3590_v3 = vpop.permute.xlu0 %1036 }
 0x13e   :  { %v377_v25 = vadd.f32 %v376_v24, %v3441_v9  ;;  %v378_v8 = vpop.f32.mrb[49].mxu0 }
 0x13f   :  { %v379_v51 = vadd.f32 %v378_v8, %v3447_v11  ;;  %v380_v26 = vpop.f32.mrb[50].mxu0  ;;  %766 = vmatprep.mubr.bf16.mxu1 %v502_v60  ;;  %v3588_v23 = vpop.permute.xlu1 %1042 }
 0x140   :  { %v463_v27 = vmax.f32 %v377_v25, 0.0  ;;  %v381_v28 = vadd.f32 %v380_v26, %v3441_v9  ;;  %v382_v29 = vpop.f32.mrb[51].mxu0  ;;  %767 = vmatmul.mubr.bf16.gmra.mrb[40].mxu1 %v501_v44 }
 0x141   :  { %v464_v30 = vmax.f32 %v379_v51, 0.0  ;;  %v383_v63 = vadd.f32 %v382_v29, %v3447_v11 }
 0x142   :  { %v465_v46 = vmax.f32 %v381_v28, 0.0 }
 0x143   :  { %v466_v31 = vmax.f32 %v383_v63, 0.0  ;;  %v3592_v44 = vpop.permute.xlu1 %1046 }
 0x144   :  { %v503_v32 = vpack.c.bf16 %v465_v46, %v463_v27 }
 0x145   :  { %v504_v13 = vpack.c.bf16 %v466_v31, %v464_v30  ;;  %v386_v2 = vpop.f32.mrb[52].mxu0 }
 0x146   :  { %v387_v53 = vadd.f32 %v386_v2, %v3441_v9  ;;  %v388_v33 = vpop.f32.mrb[53].mxu0 }
 0x147   :  { %v389_v48 = vadd.f32 %v388_v33, %v3447_v11  ;;  %v390_v34 = vpop.f32.mrb[54].mxu0  ;;  %774 = vmatprep.mubr.bf16.mxu1 %v504_v13  ;;  %v3596_v60 = vpop.permute.xlu1 %1050 }
 0x148   :  { %v467_v35 = vmax.f32 %v387_v53, 0.0  ;;  %v391_v55 = vadd.f32 %v390_v34, %v3441_v9  ;;  %v392_v36 = vpop.f32.mrb[55].mxu0  ;;  %775 = vmatmul.mubr.bf16.gmra.mrb[44].mxu1 %v503_v32 }
 0x149   :  { %v468_v37 = vmax.f32 %v389_v48, 0.0  ;;  %v393_v39 = vadd.f32 %v392_v36, %v3447_v11  ;;  %v3643_v36 = vld [vmem:[%s5295_s4] ss:$0 sm:$0xff]  ;;  %s3042_s4 = smov 112  }
 0x14a   :  { %v469_v41 = vmax.f32 %v391_v55, 0.0 }
 0x14b   :  { %v470_v43 = vmax.f32 %v393_v39, 0.0 }
 0x14c   :  { %v505_v50 = vpack.c.bf16 %v469_v41, %v467_v35 }
 0x14d   :  { %v506_v7 = vpack.c.bf16 %v470_v43, %v468_v37  ;;  %v396_v62 = vpop.f32.mrb[56].mxu0 }
 0x14e   :  { %v397_v1 = vadd.f32 %v396_v62, %v3441_v9  ;;  %v398_v57 = vpop.f32.mrb[57].mxu0 }
 0x14f   :  { %v399_v4 = vadd.f32 %v398_v57, %v3447_v11  ;;  %v400_v52 = vpop.f32.mrb[58].mxu0  ;;  %782 = vmatprep.mubr.bf16.mxu1 %v506_v7 }
 0x150   :  { %v471_v38 = vmax.f32 %v397_v1, 0.0  ;;  %v401_v5 = vadd.f32 %v400_v52, %v3441_v9  ;;  %v402_v59 = vpop.f32.mrb[59].mxu0  ;;  %783 = vmatmul.mubr.bf16.gmra.mrb[48].mxu1 %v505_v50 }
 0x151   :  { %v472_v6 = vmax.f32 %v399_v4, 0.0  ;;  %v403_v45 = vadd.f32 %v402_v59, %v3447_v11 }
 0x152   :  { %v473_v12 = vmax.f32 %v401_v5, 0.0 }
 0x153   :  { %v474_v40 = vmax.f32 %v403_v45, 0.0 }
 0x154   :  { %v507_v14 = vpack.c.bf16 %v473_v12, %v471_v38 }
 0x155   :  { %v508_v54 = vpack.c.bf16 %v474_v40, %v472_v6  ;;  %v406_v15 = vpop.f32.mrb[60].mxu0 }
 0x156   :  { %v407_v47 = vadd.f32 %v406_v15, %v3441_v9  ;;  %v408_v61 = vpop.f32.mrb[61].mxu0 }
 0x157   :  { %v409_v16 = vadd.f32 %v408_v61, %v3447_v11  ;;  %v410_v56 = vpop.f32.mrb[62].mxu0  ;;  %790 = vmatprep.mubr.bf16.mxu1 %v508_v54 }
 0x158   :  { %v475_v17 = vmax.f32 %v407_v47, 0.0  ;;  %v411_v18 = vadd.f32 %v410_v56, %v3441_v9  ;;  %v412_v0 = vpop.f32.mrb[63].mxu0  ;;  %791 = vmatmul.mubr.bf16.gmra.mrb[52].mxu1 %v507_v14  ;;  %v3594_v9 = vpop.permute.xlu0 %1038 }
 0x159   :  { %v476_v19 = vmax.f32 %v409_v16, 0.0  ;;  %v413_v20 = vadd.f32 %v412_v0, %v3447_v11  ;;  %v3600_v11 = vpop.permute.xlu1 %1054 }
 0x15a   :  { %v477_v42 = vmax.f32 %v411_v18, 0.0 }
 0x15b   :  { %v478_v21 = vmax.f32 %v413_v20, 0.0 }
 0x15c   :  { %v509_v22 = vpack.c.bf16 %v477_v42, %v475_v17  ;;  %v3598_v24 = vpop.permute.xlu0 %1044 }
 0x15d   :  { %v510_v58 = vpack.c.bf16 %v478_v21, %v476_v19  ;;  %v3604_v8 = vpop.permute.xlu1 %1058 }
 0x15f   :  { %798 = vmatprep.mubr.bf16.mxu1 %v510_v58 }
 0x160   :  { %799 = vmatmul.mubr.bf16.gmra.mrb[56].mxu1 %v509_v22  ;;  %v3602_v25 = vpop.permute.xlu0 %1048 }
 0x161   :  { %v3608_v26 = vpop.permute.xlu1 %1062 }
 0x164   :  { %v3606_v51 = vpop.permute.xlu0 %1052 }
 0x165   :  { %v3612_v28 = vpop.permute.xlu1 %1066 }
 0x168   :  { %v3610_v27 = vpop.permute.xlu0 %1056 }
 0x169   :  { %v3616_v30 = vpop.permute.xlu1 %1070 }
 0x16c   :  { %v3614_v29 = vpop.permute.xlu0 %1060 }
 0x16d   :  { %v3620_v46 = vpop.permute.xlu1 %1074 }
 0x170   :  { %v3618_v63 = vpop.permute.xlu0 %1064 }
 0x171   :  { %v3624_v32 = vpop.permute.xlu1 %1078 }
 0x174   :  { %v3622_v31 = vpop.permute.xlu0 %1068 }
 0x175   :  { %v3628_v2 = vpop.permute.xlu1 %1082 }
 0x178   :  { %v3626_v13 = vpop.permute.xlu0 %1072 }
 0x179   :  { %v3632_v33 = vpop.permute.xlu1 %1086 }
 0x17c   :  { %v3630_v53 = vpop.permute.xlu0 %1076 }
 0x17d   :  { %v3636_v34 = vpop.permute.xlu1 %1090 }
 0x17e   :  { %5377 = vst [vmem:[#allocation5_spill] sm:$0xff] %v3636_v34 }
 0x180   :  { %v3634_v48 = vpop.permute.xlu0 %1080 }
 0x181   :  { %v3645_v50 = vpop.permute.xlu1 %1094 }
 0x182   :  { %5378 = vst [vmem:[#allocation6_spill] sm:$0xff] %v3645_v50 }
 0x184   :  { %v3638_v35 = vpop.permute.xlu0 %1084 }
 0x185   :  { %v3651_v6 = vpop.permute.xlu1 %1098 }
 0x186   :  { %5380 = vst [vmem:[#allocation8_spill] sm:$0xff] %v3651_v6 }
 0x188   :  { %v3648_v1 = vpop.permute.xlu0 %1088 }
 0x189   :  { %5379 = vst [vmem:[#allocation7_spill] sm:$0xff] %v3648_v1  ;;  %v3655_v16 = vpop.permute.xlu1 %1293 }
 0x18a   :  { %5382 = vst [vmem:[#allocation10_spill] sm:$0xff] %v3655_v16 }
 0x18c   :  { %v3653_v15 = vpop.permute.xlu0 %1092 }
 0x18d   :  { %5381 = vst [vmem:[#allocation9_spill] sm:$0xff] %v3653_v15  ;;  %v1872_v22 = vpop.permute.xlu1 %1871 }
 0x190   :  { %v3659_v18 = vpop.permute.xlu0 %1096 }
 0x191   :  { %5383 = vst [vmem:[#allocation11_spill] sm:$0xff] %v3659_v18 }
 0x194   :  { %v1874_v10 = vpop.permute.xlu0 %1873 }
 0x1bb   :  { %v2728_v55 = vpop.f32.mrb[64].mxu0 }
 0x1bc   :  { %v2729_v37 = vpop.f32.mrb[65].mxu0 }
 0x1bd   :  { %v2730_v39 = vadd.f32 %v2729_v37, %v2728_v55  ;;  %v2731_v41 = vpop.f32.mrb[66].mxu0 }
 0x1be   :  { %v2732_v43 = vpop.f32.mrb[67].mxu0 }
 0x1bf   :  { %v681_v7 = vadd.f32 %v2730_v39, %v3643_v36  ;;  %v2733_v62 = vadd.f32 %v2732_v43, %v2731_v41 }
 0x1c1   :  { %v812_v57 = vmax.f32 %v681_v7, -5.0  ;;  %v684_v4 = vadd.f32 %v2733_v62, %v3643_v36 }
 0x1c3   :  { %v844_v52 = vmin.f32 %v812_v57, 2.0  ;;  %v813_v38 = vmax.f32 %v684_v4, -5.0  ;;  %v2734_v5 = vpop.f32.mrb[0].mxu1 }
 0x1c4   :  { %v2735_v59 = vpop.f32.mrb[1].mxu1 }
 0x1c5   :  { %v876_v45 = vmul.f32 1.442695, %v844_v52  ;;  %v845_v12 = vmin.f32 %v813_v38, 2.0  ;;  %v2736_v40 = vadd.f32 %v2735_v59, %v2734_v5  ;;  %v2737_v14 = vpop.f32.mrb[2].mxu1 }
 0x1c6   :  { %v2738_v54 = vpop.f32.mrb[3].mxu1 }
 0x1c7   :  { %2887 = vpow2.f32 %v876_v45  ;;  %v878_v47 = vmul.f32 1.442695, %v845_v12  ;;  %v2739_v61 = vadd.f32 %v2738_v54, %v2737_v14 }
 0x1c9   :  { %2889 = vpow2.f32 %v878_v47 }
 0x1cb   :  { %v2740_v56 = vpop.f32.mrb[4].mxu1 }
 0x1cc   :  { %v2741_v17 = vpop.f32.mrb[5].mxu1 }
 0x1cd   :  { %v3661_v0 = vadd.f32 %v2741_v17, %v2740_v56  ;;  %v2743_v19 = vpop.f32.mrb[6].mxu1 }
 0x1ce   :  { %v2744_v20 = vpop.f32.mrb[7].mxu1 }
 0x1cf   :  { %v3667_v21 = vadd.f32 %v2744_v20, %v2743_v19 }
 0x1d1   :  { %v2888_v58 = vpop.eup %2887 }
 0x1d2   :  { %v3671_v55 = vsel %vm3663_vm3, %v2888_v58, %v681_v7  ;;  %v689_v58 = vadd.f32 %v2736_v40, %v3643_v36 }
 0x1d3   :  { %5386 = vst [vmem:[#allocation12_spill] sm:$0xff] %v3671_v55  ;;  %v2890_v37 = vpop.eup %2889  ;;  %v1967_v39 = vmul.f32 %v1872_v22, %v3671_v55  ;;  %v2746_v41 = vpop.f32.mrb[8].mxu1 }
 0x1d4   :  { %v3676_v43 = vsel %vm3663_vm3, %v2890_v37, %v684_v4  ;;  %v2747_v62 = vpop.f32.mrb[9].mxu1  ;;  %v692_v37 = vadd.f32 %v2739_v61, %v3643_v36 }
 0x1d5   :  { %5387 = vst [vmem:[#allocation13_spill] sm:$0xff] %v3676_v43  ;;  %v1968_v57 = vmul.f32 %v1874_v10, %v3676_v43  ;;  %v3679_v52 = vadd.f32 %v2747_v62, %v2746_v41  ;;  %v2749_v38 = vpop.f32.mrb[10].mxu1  ;;  %2031 = vrot.lane.b32.xlu0 %v1967_v39, %s3042_s4 }
 0x1d6   :  { %v2750_v7 = vpop.f32.mrb[11].mxu1 }
 0x1d7   :  { %v3682_v5 = vadd.f32 %v2750_v7, %v2749_v38  ;;  %2033 = vrot.lane.b32.xlu1 %v1968_v57, %s3042_s4  ;;  %v814_v57 = vmax.f32 %v689_v58, -5.0 }
 0x1db   :  { %v2752_v59 = vpop.f32.mrb[12].mxu1 }
 0x1dc   :  { %v2753_v45 = vpop.f32.mrb[13].mxu1 }
 0x1dd   :  { %v3685_v12 = vadd.f32 %v2753_v45, %v2752_v59  ;;  %v2755_v4 = vpop.f32.mrb[14].mxu1  ;;  %v3701_v59 = vadd.f32 %v3590_v3, %v3671_v55  ;;  %v815_v45 = vmax.f32 %v692_v37, -5.0 }
 0x1de   :  { %v2756_v14 = vpop.f32.mrb[15].mxu1 }
 0x1df   :  { %v3687_v54 = vadd.f32 %v2756_v14, %v2755_v4  ;;  %5388 = vst [vmem:[#allocation14_spill] sm:$0xff] %v3701_v59  ;;  %v846_v4 = vmin.f32 %v814_v57, 2.0  ;;  %v1165_v40 = vsel %vm1164_vm4, %v3701_v59, -inf  ;;  %v847_v61 = vmin.f32 %v815_v45, 2.0  ;;  %v1876_v59 = vpop.permute.xlu1 %1875 }
 0x1e3   :  { %v2758_v47 = vpop.f32.mrb[16].mxu1 }
 0x1e4   :  { %v2759_v56 = vpop.f32.mrb[17].mxu1 }
 0x1e5   :  { %v3689_v17 = vadd.f32 %v2759_v56, %v2758_v47  ;;  %v2761_v19 = vpop.f32.mrb[18].mxu1 }
 0x1e6   :  { %v2762_v20 = vpop.f32.mrb[19].mxu1 }
 0x1e7   :  { %v3691_v22 = vadd.f32 %v2762_v20, %v2761_v19  ;;  %v880_v20 = vmul.f32 1.442695, %v846_v4 }
 0x1e9   :  { %2891 = vpow2.f32 %v880_v20 }
 0x1eb   :  { %v2764_v10 = vpop.f32.mrb[20].mxu1 }
 0x1ec   :  { %v2765_v39 = vpop.f32.mrb[21].mxu1 }
 0x1ed   :  { %v3695_v41 = vadd.f32 %v2765_v39, %v2764_v10  ;;  %v2767_v62 = vpop.f32.mrb[22].mxu1  ;;  %v3709_v39 = vadd.f32 %v3594_v9, %v3676_v43 }
 0x1ee   :  { %v2768_v38 = vpop.f32.mrb[23].mxu1 }
 0x1ef   :  { %v3697_v7 = vadd.f32 %v2768_v38, %v2767_v62  ;;  %5389 = vst [vmem:[#allocation15_spill] sm:$0xff] %v3709_v39  ;;  %v882_v62 = vmul.f32 1.442695, %v847_v61  ;;  %v1168_v57 = vsel %vm1164_vm4, %v3709_v39, -inf }
 0x1f1   :  { %2893 = vpow2.f32 %v882_v62  ;;  %v1878_v62 = vpop.permute.xlu1 %1877 }
 0x1f3   :  { %v2770_v14 = vpop.f32.mrb[24].mxu1  ;;  %v2892_v16 = vpop.eup %2891 }
 0x1f4   :  { %v2771_v47 = vpop.f32.mrb[25].mxu1  ;;  %1166 = vmax.xlane.f32.xlu0 %v1165_v40 }
 0x1f5   :  { %v3705_v56 = vadd.f32 %v2771_v47, %v2770_v14  ;;  %v2773_v19 = vpop.f32.mrb[26].mxu1 }
 0x1f6   :  { %v2774_v10 = vpop.f32.mrb[27].mxu1 }
 0x1f7   :  { %v3711_v3 = vadd.f32 %v2774_v10, %v2773_v19 }
 0x1fb   :  { %v2776_v38 = vpop.f32.mrb[28].mxu1  ;;  %1169 = vmax.xlane.f32.xlu1 %v1168_v57  ;;  %v2894_v20 = vpop.eup %2893  ;;  %v3723_v57 = vsel %vm3663_vm3, %v2892_v16, %v689_v58 }
 0x1fc   :  { %v2777_v45 = vpop.f32.mrb[29].mxu1  ;;  %5390 = vst [vmem:[#allocation16_spill] sm:$0xff] %v3723_v57 }
 0x1fd   :  { %v3715_v14 = vadd.f32 %v2777_v45, %v2776_v38  ;;  %v2779_v40 = vpop.f32.mrb[30].mxu1  ;;  %v1969_v45 = vmul.f32 %v1876_v59, %v3723_v57 }
 0x1fe   :  { %v2780_v4 = vpop.f32.mrb[31].mxu1 }
 0x1ff   :  { %v3717_v47 = vadd.f32 %v2780_v4, %v2779_v40  ;;  %v3730_v40 = vsel %vm3663_vm3, %v2894_v20, %v692_v37 }
 0x200   :  { %5391 = vst [vmem:[#allocation17_spill] sm:$0xff] %v3730_v40  ;;  %v1970_v4 = vmul.f32 %v1878_v62, %v3730_v40 }
 0x203   :  { %v2782_v9 = vpop.f32.mrb[32].mxu1 }
 0x204   :  { %v2783_v19 = vpop.f32.mrb[33].mxu1 }
 0x205   :  { %v3719_v10 = vadd.f32 %v2783_v19, %v2782_v9  ;;  %v2785_v61 = vpop.f32.mrb[34].mxu1  ;;  %v697_v9 = vadd.f32 %v3661_v0, %v3643_v36 }
 0x206   :  { %v2786_v6 = vpop.f32.mrb[35].mxu1 }
 0x207   :  { %v3725_v38 = vadd.f32 %v2786_v6, %v2785_v61  ;;  %v816_v59 = vmax.f32 %v697_v9, -5.0 }
 0x209   :  { %v848_v37 = vmin.f32 %v816_v59, 2.0  ;;  %v3753_v59 = vadd.f32 %v3586_v49, %v3723_v57 }
 0x20a   :  { %2035 = vrot.lane.b32.xlu0 %v1969_v45, %s3042_s4 }
 0x20b   :  { %v2788_v19 = vpop.f32.mrb[36].mxu1  ;;  %v884_v50 = vmul.f32 1.442695, %v848_v37  ;;  %5392 = vst [vmem:[#allocation18_spill] sm:$0xff] %v3753_v59 }
 0x20c   :  { %v2789_v39 = vpop.f32.mrb[37].mxu1  ;;  %2037 = vrot.lane.b32.xlu1 %v1970_v4, %s3042_s4 }
 0x20d   :  { %v3737_v16 = vadd.f32 %v2789_v39, %v2788_v19  ;;  %v2791_v6 = vpop.f32.mrb[38].mxu1  ;;  %2895 = vpow2.f32 %v884_v50 }
 0x20e   :  { %v2792_v58 = vpop.f32.mrb[39].mxu1 }
 0x20f   :  { %v3739_v61 = vadd.f32 %v2792_v58, %v2791_v6  ;;  %v700_v6 = vadd.f32 %v3667_v21, %v3643_v36  ;;  %v1171_v21 = vsel %vm1164_vm4, %v3753_v59, -inf }
 0x211   :  { %v817_v37 = vmax.f32 %v700_v6, -5.0 }
 0x213   :  { %v2794_v20 = vpop.f32.mrb[40].mxu1  ;;  %v849_v49 = vmin.f32 %v817_v37, 2.0 }
 0x214   :  { %v2795_v55 = vpop.f32.mrb[41].mxu1 }
 0x215   :  { %v3741_v62 = vadd.f32 %v2795_v55, %v2794_v20  ;;  %v2797_v45 = vpop.f32.mrb[42].mxu1 }
 0x216   :  { %v2798_v18 = vpop.f32.mrb[43].mxu1 }
 0x217   :  { %v3743_v0 = vadd.f32 %v2798_v18, %v2797_v45  ;;  %v2896_v18 = vpop.eup %2895 }
 0x21b   :  { %v2800_v43 = vpop.f32.mrb[44].mxu1 }
 0x21c   :  { %v2801_v4 = vpop.f32.mrb[45].mxu1 }
 0x21d   :  { %v3745_v39 = vadd.f32 %v2801_v4, %v2800_v43  ;;  %v2803_v19 = vpop.f32.mrb[46].mxu1  ;;  %v3767_v4 = vadd.f32 %v3588_v23, %v3730_v40 }
 0x21e   :  { %v2804_v15 = vpop.f32.mrb[47].mxu1 }
 0x21f   :  { %v3747_v34 = vadd.f32 %v2804_v15, %v2803_v19  ;;  %v3761_v15 = vsel %vm3663_vm3, %v2896_v18, %v697_v9  ;;  %5394 = vst [vmem:[#allocation20_spill] sm:$0xff] %v3767_v4  ;;  %v886_v9 = vmul.f32 1.442695, %v849_v49 }
 0x220   :  { %5393 = vst [vmem:[#allocation19_spill] sm:$0xff] %v3761_v15 }
 0x221   :  { %2897 = vpow2.f32 %v886_v9  ;;  %v1880_v9 = vpop.permute.xlu0 %1879 }
 0x223   :  { %v2806_v58 = vpop.f32.mrb[48].mxu1 }
 0x224   :  { %v2807_v55 = vpop.f32.mrb[49].mxu1 }
 0x225   :  { %v3755_v50 = vadd.f32 %v2807_v55, %v2806_v58  ;;  %v2809_v20 = vpop.f32.mrb[50].mxu1  ;;  %v3771_v58 = vadd.f32 %v3598_v24, %v3761_v15 }
 0x226   :  { %v2810_v43 = vpop.f32.mrb[51].mxu1 }
 0x227   :  { %v3757_v45 = vadd.f32 %v2810_v43, %v2809_v20  ;;  %v1174_v20 = vsel %vm1164_vm4, %v3767_v4, -inf  ;;  %v1177_v23 = vsel %vm1164_vm4, %v3771_v58, -inf }
 0x229   :  { %1172 = vmax.xlane.f32.xlu0 %v1171_v21 }
 0x22b   :  { %v2812_v19 = vpop.f32.mrb[52].mxu1  ;;  %v2898_v49 = vpop.eup %2897 }
 0x22c   :  { %v2813_v55 = vpop.f32.mrb[53].mxu1 }
 0x22d   :  { %v3775_v18 = vadd.f32 %v2813_v55, %v2812_v19  ;;  %v2815_v43 = vpop.f32.mrb[54].mxu1  ;;  %1175 = vmax.xlane.f32.xlu0 %v1174_v20  ;;  %v1882_v19 = vpop.permute.xlu1 %1881  ;;  %v3787_v55 = vsel %vm3663_vm3, %v2898_v49, %v700_v6  ;;  %v705_v20 = vadd.f32 %v3679_v52, %v3643_v36  ;;  %v708_v6 = vadd.f32 %v3682_v5, %v3643_v36 }
 0x22e   :  { %v2816_v57 = vpop.f32.mrb[55].mxu1  ;;  %5395 = vst [vmem:[#allocation21_spill] sm:$0xff] %v3787_v55  ;;  %v3803_v52 = vadd.f32 %v3592_v44, %v3787_v55 }
 0x22f   :  { %v3777_v59 = vadd.f32 %v2816_v57, %v2815_v43  ;;  %v1972_v57 = vmul.f32 %v1882_v19, %v3787_v55  ;;  %v1971_v43 = vmul.f32 %v1880_v9, %v3761_v15 }
 0x230   :  { %1178 = vmax.xlane.f32.xlu1 %v1177_v23  ;;  %v1180_v9 = vsel %vm1164_vm4, %v3803_v52, -inf }
 0x233   :  { %v2818_v37 = vpop.f32.mrb[56].mxu1 }
 0x234   :  { %v2819_v24 = vpop.f32.mrb[57].mxu1 }
 0x235   :  { %v3781_v21 = vadd.f32 %v2819_v24, %v2818_v37  ;;  %v2821_v40 = vpop.f32.mrb[58].mxu1  ;;  %v819_v24 = vmax.f32 %v708_v6, -5.0 }
 0x236   :  { %v2822_v1 = vpop.f32.mrb[59].mxu1 }
 0x237   :  { %v3783_v4 = vadd.f32 %v2822_v1, %v2821_v40  ;;  %v818_v1 = vmax.f32 %v705_v20, -5.0  ;;  %v851_v19 = vmin.f32 %v819_v24, 2.0 }
 0x239   :  { %v850_v40 = vmin.f32 %v818_v1, 2.0  ;;  %v1886_v1 = vpop.permute.xlu1 %1885 }
 0x23b   :  { %v888_v23 = vmul.f32 1.442695, %v850_v40 }
 0x23d   :  { %2899 = vpow2.f32 %v888_v23  ;;  %v1884_v23 = vpop.permute.xlu0 %1883 }
 0x241   :  { %2041 = vrot.lane.b32.xlu1 %v1972_v57, %s3042_s4 }
 0x243   :  { %2039 = vrot.lane.b32.xlu0 %v1971_v43, %s3042_s4  ;;  %v890_v43 = vmul.f32 1.442695, %v851_v19 }
 0x245   :  { %2901 = vpow2.f32 %v890_v43 }
 0x247   :  { %v2900_v37 = vpop.eup %2899 }
 0x248   :  { %v3799_v49 = vsel %vm3663_vm3, %v2900_v37, %v705_v20 }
 0x249   :  { %5396 = vst [vmem:[#allocation22_spill] sm:$0xff] %v3799_v49  ;;  %v3807_v57 = vadd.f32 %v3602_v25, %v3799_v49  ;;  %v713_v25 = vadd.f32 %v3685_v12, %v3643_v36  ;;  %v1973_v37 = vmul.f32 %v1884_v23, %v3799_v49 }
 0x24b   :  { %v1183_v5 = vsel %vm1164_vm4, %v3807_v57, -inf  ;;  %v820_v24 = vmax.f32 %v713_v25, -5.0 }
 0x24d   :  { %v852_v19 = vmin.f32 %v820_v24, 2.0  ;;  %v1890_v24 = vpop.permute.xlu1 %1889 }
 0x24f   :  { %v2902_v20 = vpop.eup %2901 }
 0x250   :  { %v3815_v44 = vsel %vm3663_vm3, %v2902_v20, %v708_v6  ;;  %v716_v6 = vadd.f32 %v3687_v54, %v3643_v36 }
 0x251   :  { %5397 = vst [vmem:[#allocation23_spill] sm:$0xff] %v3815_v44  ;;  %v1974_v40 = vmul.f32 %v1886_v1, %v3815_v44  ;;  %v3831_v12 = vadd.f32 %v3596_v60, %v3815_v44 }
 0x253   :  { %v1186_v23 = vsel %vm1164_vm4, %v3831_v12, -inf }
 0x262   :  { %1181 = vmax.xlane.f32.xlu0 %v1180_v9  ;;  %v892_v9 = vmul.f32 1.442695, %v852_v19 }
 0x264   :  { %2903 = vpow2.f32 %v892_v9  ;;  %v1888_v9 = vpop.permute.xlu0 %1887 }
 0x265   :  { %1184 = vmax.xlane.f32.xlu1 %v1183_v5  ;;  %v821_v5 = vmax.f32 %v716_v6, -5.0 }
 0x267   :  { %v853_v1 = vmin.f32 %v821_v5, 2.0 }
 0x26e   :  { %v2904_v43 = vpop.eup %2903 }
 0x26f   :  { %v3827_v20 = vsel %vm3663_vm3, %v2904_v43, %v713_v25 }
 0x270   :  { %5398 = vst [vmem:[#allocation24_spill] sm:$0xff] %v3827_v20  ;;  %v1975_v43 = vmul.f32 %v1888_v9, %v3827_v20 }
 0x276   :  { %2045 = vrot.lane.b32.xlu1 %v1974_v40, %s3042_s4  ;;  %v3835_v40 = vadd.f32 %v3606_v51, %v3827_v20  ;;  %v721_v51 = vadd.f32 %v3689_v17, %v3643_v36 }
 0x278   :  { %2043 = vrot.lane.b32.xlu0 %v1973_v37, %s3042_s4  ;;  %v894_v37 = vmul.f32 1.442695, %v853_v1  ;;  %v1189_v54 = vsel %vm1164_vm4, %v3835_v40, -inf  ;;  %v822_v5 = vmax.f32 %v721_v51, -5.0 }
 0x27a   :  { %2905 = vpow2.f32 %v894_v37  ;;  %v854_v1 = vmin.f32 %v822_v5, 2.0  ;;  %v1894_v5 = vpop.permute.xlu1 %1893 }
 0x284   :  { %v2906_v25 = vpop.eup %2905 }
 0x285   :  { %v3843_v60 = vsel %vm3663_vm3, %v2906_v25, %v716_v6  ;;  %v724_v6 = vadd.f32 %v3691_v22, %v3643_v36 }
 0x286   :  { %5399 = vst [vmem:[#allocation25_spill] sm:$0xff] %v3843_v60  ;;  %v1976_v19 = vmul.f32 %v1890_v24, %v3843_v60  ;;  %v3859_v17 = vadd.f32 %v3600_v11, %v3843_v60 }
 0x288   :  { %v1192_v9 = vsel %vm1164_vm4, %v3859_v17, -inf }
 0x297   :  { %1187 = vmax.xlane.f32.xlu0 %v1186_v23  ;;  %v896_v23 = vmul.f32 1.442695, %v854_v1 }
 0x299   :  { %2907 = vpow2.f32 %v896_v23  ;;  %v1892_v23 = vpop.permute.xlu0 %1891 }
 0x29a   :  { %1190 = vmax.xlane.f32.xlu1 %v1189_v54  ;;  %v823_v54 = vmax.f32 %v724_v6, -5.0 }
 0x29c   :  { %v855_v24 = vmin.f32 %v823_v54, 2.0 }
 0x2a3   :  { %v2908_v37 = vpop.eup %2907 }
 0x2a4   :  { %v3855_v25 = vsel %vm3663_vm3, %v2908_v37, %v721_v51 }
 0x2a5   :  { %5400 = vst [vmem:[#allocation26_spill] sm:$0xff] %v3855_v25  ;;  %v1977_v37 = vmul.f32 %v1892_v23, %v3855_v25 }
 0x2ab   :  { %2049 = vrot.lane.b32.xlu1 %v1976_v19, %s3042_s4  ;;  %v3863_v19 = vadd.f32 %v3610_v27, %v3855_v25  ;;  %v729_v27 = vadd.f32 %v3695_v41, %v3643_v36 }
 0x2ad   :  { %2047 = vrot.lane.b32.xlu0 %v1975_v43, %s3042_s4  ;;  %v898_v43 = vmul.f32 1.442695, %v855_v24  ;;  %v1195_v22 = vsel %vm1164_vm4, %v3863_v19, -inf  ;;  %v824_v54 = vmax.f32 %v729_v27, -5.0 }
 0x2af   :  { %2909 = vpow2.f32 %v898_v43  ;;  %v856_v24 = vmin.f32 %v824_v54, 2.0  ;;  %v1898_v54 = vpop.permute.xlu1 %1897 }
 0x2b9   :  { %v2910_v51 = vpop.eup %2909 }
 0x2ba   :  { %v3871_v11 = vsel %vm3663_vm3, %v2910_v51, %v724_v6  ;;  %v732_v6 = vadd.f32 %v3697_v7, %v3643_v36 }
 0x2bb   :  { %5401 = vst [vmem:[#allocation27_spill] sm:$0xff] %v3871_v11  ;;  %v1978_v1 = vmul.f32 %v1894_v5, %v3871_v11  ;;  %v3887_v41 = vadd.f32 %v3604_v8, %v3871_v11 }
 0x2bd   :  { %v1198_v23 = vsel %vm1164_vm4, %v3887_v41, -inf }
 0x2cc   :  { %1193 = vmax.xlane.f32.xlu0 %v1192_v9  ;;  %v900_v9 = vmul.f32 1.442695, %v856_v24 }
 0x2ce   :  { %2911 = vpow2.f32 %v900_v9  ;;  %v1896_v9 = vpop.permute.xlu0 %1895 }
 0x2cf   :  { %1196 = vmax.xlane.f32.xlu1 %v1195_v22  ;;  %v825_v22 = vmax.f32 %v732_v6, -5.0 }
 0x2d1   :  { %v857_v5 = vmin.f32 %v825_v22, 2.0 }
 0x2d8   :  { %v2912_v43 = vpop.eup %2911 }
 0x2d9   :  { %v3883_v51 = vsel %vm3663_vm3, %v2912_v43, %v729_v27 }
 0x2da   :  { %5402 = vst [vmem:[#allocation28_spill] sm:$0xff] %v3883_v51  ;;  %v1979_v43 = vmul.f32 %v1896_v9, %v3883_v51 }
 0x2e0   :  { %2053 = vrot.lane.b32.xlu1 %v1978_v1, %s3042_s4  ;;  %v3891_v1 = vadd.f32 %v3614_v29, %v3883_v51  ;;  %v737_v29 = vadd.f32 %v3705_v56, %v3643_v36 }
 0x2e2   :  { %2051 = vrot.lane.b32.xlu0 %v1977_v37, %s3042_s4  ;;  %v902_v37 = vmul.f32 1.442695, %v857_v5  ;;  %v1201_v7 = vsel %vm1164_vm4, %v3891_v1, -inf  ;;  %v826_v22 = vmax.f32 %v737_v29, -5.0 }
 0x2e4   :  { %2913 = vpow2.f32 %v902_v37  ;;  %v858_v5 = vmin.f32 %v826_v22, 2.0  ;;  %v1902_v22 = vpop.permute.xlu1 %1901 }
 0x2ee   :  { %v2914_v27 = vpop.eup %2913 }
 0x2ef   :  { %v3899_v8 = vsel %vm3663_vm3, %v2914_v27, %v732_v6  ;;  %v740_v6 = vadd.f32 %v3711_v3, %v3643_v36 }
 0x2f0   :  { %5403 = vst [vmem:[#allocation29_spill] sm:$0xff] %v3899_v8  ;;  %v1980_v24 = vmul.f32 %v1898_v54, %v3899_v8  ;;  %v3915_v56 = vadd.f32 %v3608_v26, %v3899_v8 }
 0x2f2   :  { %v1204_v9 = vsel %vm1164_vm4, %v3915_v56, -inf }
 0x301   :  { %1199 = vmax.xlane.f32.xlu0 %v1198_v23  ;;  %v904_v23 = vmul.f32 1.442695, %v858_v5 }
 0x303   :  { %2915 = vpow2.f32 %v904_v23  ;;  %v1900_v23 = vpop.permute.xlu0 %1899 }
 0x304   :  { %1202 = vmax.xlane.f32.xlu1 %v1201_v7  ;;  %v827_v7 = vmax.f32 %v740_v6, -5.0 }
 0x306   :  { %v859_v54 = vmin.f32 %v827_v7, 2.0 }
 0x30d   :  { %v2916_v37 = vpop.eup %2915 }
 0x30e   :  { %v3911_v27 = vsel %vm3663_vm3, %v2916_v37, %v737_v29 }
 0x30f   :  { %5404 = vst [vmem:[#allocation30_spill] sm:$0xff] %v3911_v27  ;;  %v1981_v37 = vmul.f32 %v1900_v23, %v3911_v27 }
 0x315   :  { %2057 = vrot.lane.b32.xlu1 %v1980_v24, %s3042_s4  ;;  %v3919_v24 = vadd.f32 %v3618_v63, %v3911_v27  ;;  %v745_v63 = vadd.f32 %v3715_v14, %v3643_v36 }
 0x317   :  { %2055 = vrot.lane.b32.xlu0 %v1979_v43, %s3042_s4  ;;  %v906_v43 = vmul.f32 1.442695, %v859_v54  ;;  %v1207_v3 = vsel %vm1164_vm4, %v3919_v24, -inf  ;;  %v828_v7 = vmax.f32 %v745_v63, -5.0 }
 0x319   :  { %2917 = vpow2.f32 %v906_v43  ;;  %v860_v54 = vmin.f32 %v828_v7, 2.0  ;;  %v1906_v7 = vpop.permute.xlu1 %1905 }
 0x323   :  { %v2918_v29 = vpop.eup %2917 }
 0x324   :  { %v3927_v26 = vsel %vm3663_vm3, %v2918_v29, %v740_v6  ;;  %v748_v6 = vadd.f32 %v3717_v47, %v3643_v36 }
 0x325   :  { %5405 = vst [vmem:[#allocation31_spill] sm:$0xff] %v3927_v26  ;;  %v1982_v5 = vmul.f32 %v1902_v22, %v3927_v26  ;;  %v3943_v14 = vadd.f32 %v3612_v28, %v3927_v26 }
 0x327   :  { %v1210_v23 = vsel %vm1164_vm4, %v3943_v14, -inf }
 0x336   :  { %1205 = vmax.xlane.f32.xlu0 %v1204_v9  ;;  %v908_v9 = vmul.f32 1.442695, %v860_v54 }
 0x338   :  { %2919 = vpow2.f32 %v908_v9  ;;  %v1904_v9 = vpop.permute.xlu0 %1903 }
 0x339   :  { %1208 = vmax.xlane.f32.xlu1 %v1207_v3  ;;  %v829_v3 = vmax.f32 %v748_v6, -5.0 }
 0x33b   :  { %v861_v22 = vmin.f32 %v829_v3, 2.0 }
 0x342   :  { %v2920_v43 = vpop.eup %2919 }
 0x343   :  { %v3939_v29 = vsel %vm3663_vm3, %v2920_v43, %v745_v63 }
 0x344   :  { %5406 = vst [vmem:[#allocation32_spill] sm:$0xff] %v3939_v29  ;;  %v1983_v43 = vmul.f32 %v1904_v9, %v3939_v29 }
 0x34a   :  { %2061 = vrot.lane.b32.xlu1 %v1982_v5, %s3042_s4  ;;  %v3947_v5 = vadd.f32 %v3622_v31, %v3939_v29  ;;  %v753_v31 = vadd.f32 %v3719_v10, %v3643_v36 }
 0x34c   :  { %2059 = vrot.lane.b32.xlu0 %v1981_v37, %s3042_s4  ;;  %v910_v37 = vmul.f32 1.442695, %v861_v22  ;;  %v1213_v47 = vsel %vm1164_vm4, %v3947_v5, -inf  ;;  %v830_v3 = vmax.f32 %v753_v31, -5.0 }
 0x34e   :  { %2921 = vpow2.f32 %v910_v37  ;;  %v862_v22 = vmin.f32 %v830_v3, 2.0  ;;  %v1910_v3 = vpop.permute.xlu1 %1909 }
 0x358   :  { %v2922_v63 = vpop.eup %2921 }
 0x359   :  { %v3955_v28 = vsel %vm3663_vm3, %v2922_v63, %v748_v6  ;;  %v756_v6 = vadd.f32 %v3725_v38, %v3643_v36 }
 0x35a   :  { %5407 = vst [vmem:[#allocation33_spill] sm:$0xff] %v3955_v28  ;;  %v1984_v54 = vmul.f32 %v1906_v7, %v3955_v28  ;;  %v3971_v10 = vadd.f32 %v3616_v30, %v3955_v28 }
 0x35c   :  { %v1216_v9 = vsel %vm1164_vm4, %v3971_v10, -inf }
 0x36b   :  { %1211 = vmax.xlane.f32.xlu0 %v1210_v23  ;;  %v912_v23 = vmul.f32 1.442695, %v862_v22 }
 0x36d   :  { %2923 = vpow2.f32 %v912_v23  ;;  %v1908_v23 = vpop.permute.xlu0 %1907 }
 0x36e   :  { %1214 = vmax.xlane.f32.xlu1 %v1213_v47  ;;  %v831_v47 = vmax.f32 %v756_v6, -5.0 }
 0x370   :  { %v863_v7 = vmin.f32 %v831_v47, 2.0 }
 0x377   :  { %v2924_v37 = vpop.eup %2923 }
 0x378   :  { %v3967_v63 = vsel %vm3663_vm3, %v2924_v37, %v753_v31 }
 0x379   :  { %5408 = vst [vmem:[#allocation34_spill] sm:$0xff] %v3967_v63  ;;  %v1985_v37 = vmul.f32 %v1908_v23, %v3967_v63 }
 0x37f   :  { %2065 = vrot.lane.b32.xlu1 %v1984_v54, %s3042_s4  ;;  %v3975_v54 = vadd.f32 %v3626_v13, %v3967_v63  ;;  %v761_v13 = vadd.f32 %v3737_v16, %v3643_v36 }
 0x381   :  { %2063 = vrot.lane.b32.xlu0 %v1983_v43, %s3042_s4  ;;  %v914_v43 = vmul.f32 1.442695, %v863_v7  ;;  %v1219_v38 = vsel %vm1164_vm4, %v3975_v54, -inf  ;;  %v832_v47 = vmax.f32 %v761_v13, -5.0 }
 0x383   :  { %2925 = vpow2.f32 %v914_v43  ;;  %v864_v7 = vmin.f32 %v832_v47, 2.0  ;;  %v1914_v47 = vpop.permute.xlu1 %1913 }
 0x38d   :  { %v2926_v31 = vpop.eup %2925 }
 0x38e   :  { %v3983_v30 = vsel %vm3663_vm3, %v2926_v31, %v756_v6  ;;  %v764_v6 = vadd.f32 %v3739_v61, %v3643_v36 }
 0x38f   :  { %5409 = vst [vmem:[#allocation35_spill] sm:$0xff] %v3983_v30  ;;  %v1986_v22 = vmul.f32 %v1910_v3, %v3983_v30  ;;  %v3999_v16 = vadd.f32 %v3620_v46, %v3983_v30 }
 0x391   :  { %5411 = vst [vmem:[#allocation37_spill] sm:$0xff] %v3999_v16  ;;  %v1222_v23 = vsel %vm1164_vm4, %v3999_v16, -inf }
 0x3a0   :  { %1217 = vmax.xlane.f32.xlu0 %v1216_v9  ;;  %v916_v9 = vmul.f32 1.442695, %v864_v7 }
 0x3a2   :  { %2927 = vpow2.f32 %v916_v9  ;;  %v1912_v9 = vpop.permute.xlu0 %1911 }
 0x3a3   :  { %1220 = vmax.xlane.f32.xlu1 %v1219_v38  ;;  %v833_v38 = vmax.f32 %v764_v6, -5.0 }
 0x3a5   :  { %v865_v3 = vmin.f32 %v833_v38, 2.0 }
 0x3ac   :  { %v2928_v43 = vpop.eup %2927 }
 0x3ad   :  { %v3995_v31 = vsel %vm3663_vm3, %v2928_v43, %v761_v13 }
 0x3ae   :  { %5410 = vst [vmem:[#allocation36_spill] sm:$0xff] %v3995_v31  ;;  %v1987_v43 = vmul.f32 %v1912_v9, %v3995_v31 }
 0x3b4   :  { %2069 = vrot.lane.b32.xlu1 %v1986_v22, %s3042_s4  ;;  %v4003_v22 = vadd.f32 %v3630_v53, %v3995_v31  ;;  %v769_v53 = vadd.f32 %v3741_v62, %v3643_v36 }
 0x3b6   :  { %2067 = vrot.lane.b32.xlu0 %v1985_v37, %s3042_s4  ;;  %5412 = vst [vmem:[#allocation38_spill] sm:$0xff] %v4003_v22  ;;  %v918_v37 = vmul.f32 1.442695, %v865_v3  ;;  %v1225_v61 = vsel %vm1164_vm4, %v4003_v22, -inf  ;;  %v834_v38 = vmax.f32 %v769_v53, -5.0 }
 0x3b8   :  { %2929 = vpow2.f32 %v918_v37  ;;  %v866_v3 = vmin.f32 %v834_v38, 2.0  ;;  %v1918_v38 = vpop.permute.xlu1 %1917 }
 0x3c2   :  { %v2930_v13 = vpop.eup %2929 }
 0x3c3   :  { %v4011_v46 = vsel %vm3663_vm3, %v2930_v13, %v764_v6  ;;  %v772_v6 = vadd.f32 %v3743_v0, %v3643_v36 }
 0x3c4   :  { %5413 = vst [vmem:[#allocation39_spill] sm:$0xff] %v4011_v46  ;;  %v1988_v7 = vmul.f32 %v1914_v47, %v4011_v46  ;;  %v4027_v62 = vadd.f32 %v3624_v32, %v4011_v46 }
 0x3c6   :  { %5415 = vst [vmem:[#allocation41_spill] sm:$0xff] %v4027_v62  ;;  %v1228_v9 = vsel %vm1164_vm4, %v4027_v62, -inf }
 0x3d5   :  { %1223 = vmax.xlane.f32.xlu0 %v1222_v23  ;;  %v920_v23 = vmul.f32 1.442695, %v866_v3 }
 0x3d7   :  { %2931 = vpow2.f32 %v920_v23  ;;  %v1916_v23 = vpop.permute.xlu0 %1915 }
 0x3d8   :  { %1226 = vmax.xlane.f32.xlu1 %v1225_v61  ;;  %v835_v61 = vmax.f32 %v772_v6, -5.0 }
 0x3da   :  { %v867_v47 = vmin.f32 %v835_v61, 2.0 }
 0x3e1   :  { %v2932_v37 = vpop.eup %2931 }
 0x3e2   :  { %v4023_v13 = vsel %vm3663_vm3, %v2932_v37, %v769_v53 }
 0x3e3   :  { %5414 = vst [vmem:[#allocation40_spill] sm:$0xff] %v4023_v13  ;;  %v1989_v37 = vmul.f32 %v1916_v23, %v4023_v13 }
 0x3e9   :  { %2073 = vrot.lane.b32.xlu1 %v1988_v7, %s3042_s4  ;;  %v4031_v7 = vadd.f32 %v3634_v48, %v4023_v13  ;;  %v777_v48 = vadd.f32 %v3745_v39, %v3643_v36 }
 0x3eb   :  { %2071 = vrot.lane.b32.xlu0 %v1987_v43, %s3042_s4  ;;  %5416 = vst [vmem:[#allocation42_spill] sm:$0xff] %v4031_v7  ;;  %v922_v43 = vmul.f32 1.442695, %v867_v47  ;;  %v1231_v0 = vsel %vm1164_vm4, %v4031_v7, -inf  ;;  %v836_v61 = vmax.f32 %v777_v48, -5.0 }
 0x3ed   :  { %2933 = vpow2.f32 %v922_v43  ;;  %v868_v47 = vmin.f32 %v836_v61, 2.0  ;;  %v1922_v61 = vpop.permute.xlu1 %1921 }
 0x3f7   :  { %v2934_v53 = vpop.eup %2933 }
 0x3f8   :  { %v4039_v32 = vsel %vm3663_vm3, %v2934_v53, %v772_v6  ;;  %v780_v6 = vadd.f32 %v3747_v34, %v3643_v36 }
 0x3f9   :  { %5417 = vst [vmem:[#allocation43_spill] sm:$0xff] %v4039_v32  ;;  %v1990_v3 = vmul.f32 %v1918_v38, %v4039_v32  ;;  %v4055_v39 = vadd.f32 %v3628_v2, %v4039_v32 }
 0x3fb   :  { %5419 = vst [vmem:[#allocation45_spill] sm:$0xff] %v4055_v39  ;;  %v1234_v23 = vsel %vm1164_vm4, %v4055_v39, -inf  ;;  %v5441_v39 = vld [vmem:[#allocation17_spill] sm:$0xff] }
 0x40a   :  { %1229 = vmax.xlane.f32.xlu0 %v1228_v9  ;;  %v924_v9 = vmul.f32 1.442695, %v868_v47 }
 0x40c   :  { %2935 = vpow2.f32 %v924_v9  ;;  %v1920_v9 = vpop.permute.xlu0 %1919 }
 0x40d   :  { %1232 = vmax.xlane.f32.xlu1 %v1231_v0  ;;  %v837_v0 = vmax.f32 %v780_v6, -5.0 }
 0x40f   :  { %v869_v38 = vmin.f32 %v837_v0, 2.0 }
 0x416   :  { %v2936_v43 = vpop.eup %2935 }
 0x417   :  { %v4051_v53 = vsel %vm3663_vm3, %v2936_v43, %v777_v48 }
 0x418   :  { %5418 = vst [vmem:[#allocation44_spill] sm:$0xff] %v4051_v53  ;;  %v1991_v43 = vmul.f32 %v1920_v9, %v4051_v53  ;;  %v5424_v9 = vld [vmem:[#allocation7_spill] sm:$0xff] }
 0x41e   :  { %2077 = vrot.lane.b32.xlu1 %v1990_v3, %s3042_s4  ;;  %v4059_v3 = vadd.f32 %v3638_v35, %v4051_v53  ;;  %v785_v35 = vadd.f32 %v3755_v50, %v3643_v36 }
 0x420   :  { %2075 = vrot.lane.b32.xlu0 %v1989_v37, %s3042_s4  ;;  %5420 = vst [vmem:[#allocation46_spill] sm:$0xff] %v4059_v3  ;;  %v926_v37 = vmul.f32 1.442695, %v869_v38  ;;  %v1237_v34 = vsel %vm1164_vm4, %v4059_v3, -inf  ;;  %v838_v0 = vmax.f32 %v785_v35, -5.0 }
 0x422   :  { %2937 = vpow2.f32 %v926_v37  ;;  %v870_v38 = vmin.f32 %v838_v0, 2.0 }
 0x42c   :  { %v2938_v48 = vpop.eup %2937 }
 0x42d   :  { %v4067_v2 = vsel %vm3663_vm3, %v2938_v48, %v780_v6  ;;  %v788_v6 = vadd.f32 %v3757_v45, %v3643_v36 }
 0x42e   :  { %5421 = vst [vmem:[#allocation47_spill] sm:$0xff] %v4067_v2  ;;  %v1992_v47 = vmul.f32 %v1922_v61, %v4067_v2  ;;  %v4083_v61 = vadd.f32 %v3632_v33, %v4067_v2 }
 0x42f   :  { %v839_v37 = vmax.f32 %v788_v6, -5.0 }
 0x430   :  { %5423 = vst [vmem:[#allocation49_spill] sm:$0xff] %v4083_v61  ;;  %v1240_v0 = vsel %vm1164_vm4, %v4083_v61, -inf }
 0x431   :  { %v871_v48 = vmin.f32 %v839_v37, 2.0  ;;  %v793_v37 = vadd.f32 %v3775_v18, %v3643_v36 }
 0x43f   :  { %1235 = vmax.xlane.f32.xlu0 %v1234_v23  ;;  %v928_v23 = vmul.f32 1.442695, %v870_v38  ;;  %v1926_v38 = vpop.permute.xlu1 %1925 }
 0x441   :  { %2939 = vpow2.f32 %v928_v23 }
 0x442   :  { %1238 = vmax.xlane.f32.xlu1 %v1237_v34 }
 0x44b   :  { %v2940_v34 = vpop.eup %2939 }
 0x44c   :  { %v4079_v50 = vsel %vm3663_vm3, %v2940_v34, %v785_v35  ;;  %v1924_v34 = vpop.permute.xlu0 %1923 }
 0x44d   :  { %5422 = vst [vmem:[#allocation48_spill] sm:$0xff] %v4079_v50 }
 0x453   :  { %2081 = vrot.lane.b32.xlu1 %v1992_v47, %s3042_s4  ;;  %v930_v47 = vmul.f32 1.442695, %v871_v48  ;;  %v1993_v48 = vmul.f32 %v1924_v34, %v4079_v50  ;;  %v5427_v34 = vld [vmem:[#allocation5_spill] sm:$0xff] }
 0x455   :  { %2079 = vrot.lane.b32.xlu0 %v1991_v43, %s3042_s4  ;;  %v4087_v43 = vadd.f32 %v5424_v9, %v4079_v50  ;;  %2941 = vpow2.f32 %v930_v47  ;;  %v840_v47 = vmax.f32 %v793_v37, -5.0 }
 0x457   :  { %5425 = vst [vmem:[#allocation7_spill] sm:$0xff] %v4087_v43  ;;  %v1243_v45 = vsel %vm1164_vm4, %v4087_v43, -inf  ;;  %v872_v9 = vmin.f32 %v840_v47, 2.0 }
 0x45f   :  { %v2942_v35 = vpop.eup %2941 }
 0x460   :  { %v4095_v33 = vsel %vm3663_vm3, %v2942_v35, %v788_v6  ;;  %v796_v6 = vadd.f32 %v3777_v59, %v3643_v36 }
 0x461   :  { %5426 = vst [vmem:[#allocation50_spill] sm:$0xff] %v4095_v33  ;;  %v1994_v23 = vmul.f32 %v1926_v38, %v4095_v33  ;;  %v4111_v43 = vadd.f32 %v5427_v34, %v4095_v33  ;;  %v1928_v34 = vpop.permute.xlu0 %1927 }
 0x463   :  { %5428 = vst [vmem:[#allocation5_spill] sm:$0xff] %v4111_v43 }
 0x474   :  { %1241 = vmax.xlane.f32.xlu0 %v1240_v0  ;;  %v932_v0 = vmul.f32 1.442695, %v872_v9  ;;  %v1246_v9 = vsel %vm1164_vm4, %v4111_v43, -inf }
 0x476   :  { %2943 = vpow2.f32 %v932_v0 }
 0x477   :  { %1244 = vmax.xlane.f32.xlu1 %v1243_v45  ;;  %v841_v45 = vmax.f32 %v796_v6, -5.0 }
 0x479   :  { %v873_v38 = vmin.f32 %v841_v45, 2.0 }
 0x480   :  { %v2944_v35 = vpop.eup %2943 }
 0x481   :  { %v4107_v18 = vsel %vm3663_vm3, %v2944_v35, %v793_v37  ;;  %v1930_v37 = vpop.permute.xlu1 %1929 }
 0x482   :  { %v1995_v61 = vmul.f32 %v1928_v34, %v4107_v18  ;;  %v804_v34 = vadd.f32 %v3783_v4, %v3643_v36 }
 0x485   :  { %v1934_v45 = vpop.permute.xlu1 %1933 }
 0x488   :  { %2085 = vrot.lane.b32.xlu1 %v1994_v23, %s3042_s4  ;;  %v934_v23 = vmul.f32 1.442695, %v873_v38 }
 0x48a   :  { %2083 = vrot.lane.b32.xlu0 %v1993_v48, %s3042_s4  ;;  %v5429_v48 = vld [vmem:[#allocation9_spill] sm:$0xff]  ;;  %2945 = vpow2.f32 %v934_v23 }
 0x48b   :  { %v4115_v47 = vadd.f32 %v5429_v48, %v4107_v18  ;;  %v2034_v48 = vpop.permute.xlu1 %2033  ;;  %v5432_v23 = vld [vmem:[#allocation13_spill] sm:$0xff] }
 0x48d   :  { %5430 = vst [vmem:[#allocation9_spill] sm:$0xff] %v4115_v47  ;;  %v1249_v59 = vsel %vm1164_vm4, %v4115_v47, -inf }
 0x48f   :  { %v4146_v43 = vpop.xlane.xlu1 %1169 }
 0x494   :  { %v2946_v0 = vpop.eup %2945 }
 0x495   :  { %v4123_v35 = vsel %vm3663_vm3, %v2946_v0, %v796_v6 }
 0x496   :  { %5431 = vst [vmem:[#allocation51_spill] sm:$0xff] %v4123_v35  ;;  %v1996_v38 = vmul.f32 %v1930_v37, %v4123_v35 }
 0x4a9   :  { %1247 = vmax.xlane.f32.xlu0 %v1246_v9  ;;  %v4129_v9 = vadd.f32 %v2034_v48, %v5432_v23  ;;  %v5434_v48 = vld [vmem:[#allocation6_spill] sm:$0xff] }
 0x4aa   :  { %v4140_v23 = vadd.f32 %v5434_v48, %v4123_v35 }
 0x4ab   :  { %5433 = vst [vmem:[#allocation52_spill] sm:$0xff] %v4129_v9 }
 0x4ac   :  { %1250 = vmax.xlane.f32.xlu1 %v1249_v59  ;;  %v801_v59 = vadd.f32 %v3781_v21, %v3643_v36  ;;  %5435 = vst [vmem:[#allocation6_spill] sm:$0xff] %v4140_v23  ;;  %v5437_v36 = vld [vmem:[#allocation11_spill] sm:$0xff] }
 0x4ae   :  { %v842_v6 = vmax.f32 %v801_v59, -5.0 }
 0x4b0   :  { %v874_v37 = vmin.f32 %v842_v6, 2.0  ;;  %v1252_v6 = vsel %vm1164_vm4, %v4140_v23, -inf }
 0x4b2   :  { %v936_v0 = vmul.f32 1.442695, %v874_v37 }
 0x4b4   :  { %2947 = vpow2.f32 %v936_v0  ;;  %v2038_v0 = vpop.permute.xlu1 %2037 }
 0x4b5   :  { %v4170_v7 = vadd.f32 %v2038_v0, %v5441_v39 }
 0x4b7   :  { %5442 = vst [vmem:[#allocation55_spill] sm:$0xff] %v4170_v7 }
 0x4b8   :  { %v4156_v48 = vpop.xlane.xlu1 %1178 }
 0x4b9   :  { %vm1265_vm13 = vcmp.ge.f32.partialorder %v3771_v58, %v4156_v48 }
 0x4bd   :  { %2089 = vrot.lane.b32.xlu1 %v1996_v38, %s3042_s4  ;;  %v843_v38 = vmax.f32 %v804_v34, -5.0 }
 0x4bf   :  { %2087 = vrot.lane.b32.xlu0 %v1995_v61, %s3042_s4  ;;  %v2948_v61 = vpop.eup %2947  ;;  %v875_v47 = vmin.f32 %v843_v38, 2.0 }
 0x4c0   :  { %v4144_v21 = vsel %vm3663_vm3, %v2948_v61, %v801_v59  ;;  %v1932_v59 = vpop.permute.xlu0 %1931  ;;  %v2042_v61 = vpop.permute.xlu1 %2041 }
 0x4c1   :  { %2257 = vrot.lane.b32.xlu1 %v4129_v9, %s3043_s30  ;;  %5436 = vst [vmem:[#allocation53_spill] sm:$0xff] %v4144_v21  ;;  %v938_v37 = vmul.f32 1.442695, %v875_v47  ;;  %v4152_v4 = vadd.f32 %v5437_v36, %v4144_v21  ;;  %v5440_v36 = vld [vmem:[#allocation12_spill] sm:$0xff] }
 0x4c3   :  { %5438 = vst [vmem:[#allocation11_spill] sm:$0xff] %v4152_v4  ;;  %2949 = vpow2.f32 %v938_v37  ;;  %v1255_v38 = vsel %vm1164_vm4, %v4152_v4, -inf }
 0x4c4   :  { %v2032_v3 = vpop.permute.xlu0 %2031  ;;  %v4162_v47 = vpop.xlane.xlu1 %1184 }
 0x4c5   :  { %v2127_v23 = vadd.f32 %v2032_v3, %v5440_v36  ;;  %v4178_v3 = vadd.f32 %v2042_v61, %v3787_v55  ;;  %v5449_v55 = vld [vmem:[#allocation10_spill] sm:$0xff]  ;;  %vm1267_vm1 = vcmp.ge.f32.partialorder %v3807_v57, %v4162_v47 }
 0x4c7   :  { %5443 = vst [vmem:[#allocation56_spill] sm:$0xff] %v4178_v3  ;;  %2951 = vtanh.f32 %v2127_v23 }
 0x4c8   :  { %v2046_v4 = vpop.permute.xlu1 %2045  ;;  %v1167_v0 = vpop.xlane.xlu0 %1166 }
 0x4cc   :  { %v4175_v42 = vpop.xlane.xlu1 %1190 }
 0x4cd   :  { %v2950_v9 = vpop.eup %2949  ;;  %vm1269_vm9 = vcmp.ge.f32.partialorder %v3835_v40, %v4175_v42 }
 0x4d1   :  { %v2952_v36 = vpop.eup %2951 }
 0x4de   :  { %1253 = vmax.xlane.f32.xlu0 %v1252_v6  ;;  %v4160_v6 = vsel %vm3663_vm3, %v2950_v9, %v804_v34  ;;  %v2050_v9 = vpop.permute.xlu1 %2049 }
 0x4df   :  { %5439 = vst [vmem:[#allocation54_spill] sm:$0xff] %v4160_v6  ;;  %v1998_v37 = vmul.f32 %v1934_v45, %v4160_v6  ;;  %v4183_v45 = vadd.f32 %v2046_v4, %v3815_v44  ;;  %v4188_v34 = vadd.f32 %v2050_v9, %v3843_v60  ;;  %v5448_v44 = vld [vmem:[#allocation18_spill] sm:$0xff] }
 0x4e1   :  { %5444 = vst [vmem:[#allocation57_spill] sm:$0xff] %v4183_v45  ;;  %5445 = vst [vmem:[#allocation58_spill] sm:$0xff] %v4188_v34 }
 0x4e5   :  { %1256 = vmax.xlane.f32.xlu1 %v1255_v38  ;;  %v1997_v38 = vmul.f32 %v1932_v59, %v4144_v21  ;;  %v5446_v59 = vld [vmem:[#allocation8_spill] sm:$0xff] }
 0x4e6   :  { %v4194_v61 = vadd.f32 %v5446_v59, %v4160_v6 }
 0x4e8   :  { %5447 = vst [vmem:[#allocation8_spill] sm:$0xff] %v4194_v61  ;;  %v1258_v4 = vsel %vm1164_vm4, %v4194_v61, -inf }
 0x4f4   :  { %2255 = vrot.lane.b32.xlu0 %v2127_v23, %s3043_s30 }
 0x4f6   :  { %2093 = vrot.lane.b32.xlu1 %v1998_v37, %s3042_s4  ;;  %v2036_v37 = vpop.permute.xlu0 %2035 }
 0x4f8   :  { %2091 = vrot.lane.b32.xlu0 %v1997_v38, %s3042_s4 }
 0x4fa   :  { %2261 = vrot.lane.b32.xlu1 %v4170_v7, %s3043_s30  ;;  %v1173_v38 = vpop.xlane.xlu0 %1172 }
 0x4fb   :  { %vm1263_vm5 = vcmp.ge.f32.partialorder %v5448_v44, %v1173_v38  ;;  %v5450_v44 = vld [vmem:[#allocation16_spill] sm:$0xff] }
 0x4fc   :  { %v1297_v39 = vsel %vm1263_vm5, %v5449_v55, 4  ;;  %v4214_v38 = vadd.f32 %v2036_v37, %v5450_v44 }
 0x4fd   :  { %v4203_v60 = vsel %vm1164_vm4, %v1297_v39, 2147483647 }
 0x4fe   :  { %2265 = vrot.lane.b32.xlu1 %v4178_v3, %s3043_s30  ;;  %v4200_v9 = vpop.xlane.xlu0 %1175  ;;  %v1359_v59 = vshra.s32 %v4203_v60, 16  ;;  %2953 = vtanh.f32 %v4214_v38 }
 0x500   :  { %v4210_v7 = vcvt.s32.f32 %v1359_v59 }
 0x502   :  { %2269 = vrot.lane.b32.xlu1 %v4183_v45, %s3043_s30  ;;  %v4205_v45 = vpop.xlane.xlu1 %1196 }
 0x503   :  { %vm1271_vm12 = vcmp.ge.f32.partialorder %v3863_v19, %v4205_v45 }
 0x506   :  { %2273 = vrot.lane.b32.xlu1 %v4188_v34, %s3043_s30  ;;  %v2040_v34 = vpop.permute.xlu0 %2039 }
 0x507   :  { %v4222_v59 = vadd.f32 %v2040_v34, %v3761_v15 }
 0x509   :  { %2955 = vtanh.f32 %v4222_v59 }
 0x50a   :  { %v4208_v3 = vpop.xlane.xlu0 %1181 }
 0x50b   :  { %vm1266_vm14 = vcmp.ge.f32.partialorder %v3803_v52, %v4208_v3 }
 0x50e   :  { %v2044_v39 = vpop.permute.xlu0 %2043 }
 0x50f   :  { %v4227_v37 = vadd.f32 %v2044_v39, %v3799_v49 }
 0x511   :  { %2957 = vtanh.f32 %v4227_v37 }
 0x512   :  { %v1188_v23 = vpop.xlane.xlu0 %1187 }
 0x513   :  { %vm1268_vm8 = vcmp.ge.f32.partialorder %v3831_v12, %v1188_v23 }
 0x516   :  { %v2048_v44 = vpop.permute.xlu0 %2047 }
 0x517   :  { %1259 = vmax.xlane.f32.xlu0 %v1258_v4  ;;  %v2054_v4 = vpop.permute.xlu1 %2053 }
 0x518   :  { %v4232_v35 = vadd.f32 %v2054_v4, %v3871_v11 }
 0x51a   :  { %5451 = vst [vmem:[#allocation18_spill] sm:$0xff] %v4232_v35 }
 0x51b   :  { %v4218_v61 = vpop.xlane.xlu1 %1202 }
 0x51c   :  { %vm1273_vm0 = vcmp.ge.f32.partialorder %v3891_v1, %v4218_v61 }
 0x51f   :  { %v2058_v6 = vpop.permute.xlu1 %2057 }
 0x520   :  { %v4242_v34 = vadd.f32 %v2058_v6, %v3899_v8  ;;  %v5455_v6 = vld [vmem:[#allocation15_spill] sm:$0xff] }
 0x521   :  { %vm1262_vm7 = vcmp.ge.f32.partialorder %v5455_v6, %v4146_v43  ;;  %v1194_v6 = vpop.xlane.xlu0 %1193 }
 0x522   :  { %5452 = vst [vmem:[#allocation10_spill] sm:$0xff] %v4242_v34  ;;  %vm1270_vm11 = vcmp.ge.f32.partialorder %v3859_v17, %v1194_v6 }
 0x523   :  { %v4229_v62 = vpop.xlane.xlu1 %1208 }
 0x524   :  { %vm1275_vm3 = vcmp.ge.f32.partialorder %v3919_v24, %v4229_v62 }
 0x527   :  { %v2062_v39 = vpop.permute.xlu1 %2061 }
 0x528   :  { %v4249_v4 = vadd.f32 %v2062_v39, %v3927_v26 }
 0x52a   :  { %1362 = vmin.xlane.f32.xlu1 %v4210_v7  ;;  %5453 = vst [vmem:[#allocation59_spill] sm:$0xff] %v4249_v4 }
 0x52d   :  { %2259 = vrot.lane.b32.xlu0 %v4214_v38, %s3043_s30  ;;  %v2954_v38 = vpop.eup %2953 }
 0x531   :  { %2383 = vrot.lane.b32.xlu0 %v2952_v36, %s3044_s7  ;;  %v4237_v36 = vadd.f32 %v2048_v44, %v3827_v20  ;;  %v5454_v44 = vld [vmem:[#allocation14_spill] sm:$0xff] }
 0x532   :  { %vm1261_vm6 = vcmp.ge.f32.partialorder %v5454_v44, %v1167_v0  ;;  %v1302_v44 = vsel %vm1268_vm8, %v5449_v55, 4 }
 0x533   :  { %v1295_v11 = vsel %vm1261_vm6, %v5449_v55, 4  ;;  %2959 = vtanh.f32 %v4237_v36 }
 0x534   :  { %v4258_v8 = vsel %vm1164_vm4, %v1295_v11, 2147483647  ;;  %v4274_v11 = vsel %vm1164_vm4, %v1302_v44, 2147483647  ;;  %v4291_v44 = vpop.xlane.xlu1 %1214 }
 0x535   :  { %2263 = vrot.lane.b32.xlu0 %v4222_v59, %s3043_s30  ;;  %v1434_v12 = vshra.s32 %v4274_v11, 16  ;;  %vm1277_vm6 = vcmp.ge.f32.partialorder %v3947_v5, %v4291_v44 }
 0x539   :  { %2267 = vrot.lane.b32.xlu0 %v4227_v37, %s3043_s30 }
 0x53b   :  { %2277 = vrot.lane.b32.xlu1 %v4232_v35, %s3043_s30  ;;  %v1296_v35 = vsel %vm1262_vm7, %v5449_v55, 4 }
 0x53c   :  { %v4263_v39 = vsel %vm1164_vm4, %v1296_v35, 2147483647  ;;  %v1303_v35 = vsel %vm1269_vm9, %v5449_v55, 4 }
 0x53d   :  { %2271 = vrot.lane.b32.xlu0 %v4237_v36, %s3043_s30  ;;  %v1344_v0 = vshra.s32 %v4263_v39, 16  ;;  %v4282_v23 = vsel %vm1164_vm4, %v1303_v35, 2147483647  ;;  %v2066_v35 = vpop.permute.xlu1 %2065 }
 0x53e   :  { %v1449_v40 = vshra.s32 %v4282_v23, 16 }
 0x53f   :  { %2281 = vrot.lane.b32.xlu1 %v4242_v34, %s3043_s30  ;;  %v1329_v34 = vshra.s32 %v4258_v8, 16  ;;  %v4276_v43 = vcvt.s32.f32 %v1344_v0  ;;  %v2052_v0 = vpop.permute.xlu0 %2051 }
 0x540   :  { %v4288_v42 = vcvt.s32.f32 %v1449_v40  ;;  %v5457_v40 = vld [vmem:[#allocation20_spill] sm:$0xff] }
 0x541   :  { %v4266_v26 = vcvt.s32.f32 %v1329_v34  ;;  %v4284_v34 = vcvt.s32.f32 %v1434_v12  ;;  %v4299_v12 = vadd.f32 %v2066_v35, %v3955_v28  ;;  %vm1264_vm10 = vcmp.ge.f32.partialorder %v5457_v40, %v4200_v9 }
 0x542   :  { %v1298_v20 = vsel %vm1264_vm10, %v5449_v55, 4  ;;  %v1304_v35 = vsel %vm1270_vm11, %v5449_v55, 4  ;;  %v1305_v40 = vsel %vm1271_vm12, %v5449_v55, 4 }
 0x543   :  { %2285 = vrot.lane.b32.xlu1 %v4249_v4, %s3043_s30  ;;  %v4294_v4 = vadd.f32 %v2052_v0, %v3855_v25  ;;  %5456 = vst [vmem:[#allocation14_spill] sm:$0xff] %v4299_v12  ;;  %v4307_v49 = vsel %vm1164_vm4, %v1298_v20, 2147483647  ;;  %v4318_v9 = vsel %vm1164_vm4, %v1304_v35, 2147483647 }
 0x544   :  { %v1374_v0 = vshra.s32 %v4307_v49, 16  ;;  %v1464_v20 = vshra.s32 %v4318_v9, 16  ;;  %v4323_v28 = vsel %vm1164_vm4, %v1305_v40, 2147483647 }
 0x545   :  { %v1479_v6 = vshra.s32 %v4323_v28, 16  ;;  %2961 = vtanh.f32 %v4294_v4 }
 0x546   :  { %v4311_v25 = vcvt.s32.f32 %v1374_v0  ;;  %v4325_v17 = vcvt.s32.f32 %v1464_v20  ;;  %v1200_v0 = vpop.xlane.xlu0 %1199 }
 0x547   :  { %v4329_v19 = vcvt.s32.f32 %v1479_v6  ;;  %v1299_v6 = vsel %vm1265_vm13, %v5449_v55, 4  ;;  %vm1272_vm15 = vcmp.ge.f32.partialorder %v3887_v41, %v1200_v0 }
 0x548   :  { %v1306_v52 = vsel %vm1272_vm15, %v5449_v55, 4 }
 0x549   :  { %5458 = vst [vmem:[#allocation15_spill] sm:$0xff] %v4329_v19 }
 0x54a   :  { %v2056_v45 = vpop.permute.xlu0 %2055 }
 0x54b   :  { %v4333_v35 = vadd.f32 %v2056_v45, %v3883_v51  ;;  %v4350_v45 = vsel %vm1164_vm4, %v1299_v6, 2147483647  ;;  %v1300_v51 = vsel %vm1266_vm14, %v5449_v55, 4 }
 0x54c   :  { %v1389_v15 = vshra.s32 %v4350_v45, 16 }
 0x54d   :  { %2963 = vtanh.f32 %v4333_v35 }
 0x54e   :  { %v1206_v3 = vpop.xlane.xlu0 %1205 }
 0x54f   :  { %vm1274_vm2 = vcmp.ge.f32.partialorder %v3915_v56, %v1206_v3 }
 0x552   :  { %v2060_v1 = vpop.permute.xlu0 %2059 }
 0x556   :  { %v4383_v6 = vpop.xlane.xlu0 %1211 }
 0x557   :  { %vm1276_vm5 = vcmp.ge.f32.partialorder %v3943_v14, %v4383_v6  ;;  %v1311_v14 = vsel %vm1277_vm6, %v5449_v55, 4 }
 0x558   :  { %v1310_v59 = vsel %vm1276_vm5, %v5449_v55, 4  ;;  %v4517_v5 = vsel %vm1164_vm4, %v1311_v14, 2147483647 }
 0x559   :  { %v4506_v36 = vsel %vm1164_vm4, %v1310_v59, 2147483647  ;;  %v1569_v59 = vshra.s32 %v4517_v5, 16 }
 0x55c   :  { %1332 = vmin.xlane.f32.xlu0 %v4266_v26 }
 0x560   :  { %1347 = vmin.xlane.f32.xlu0 %v4276_v43 }
 0x567   :  { %1437 = vmin.xlane.f32.xlu1 %v4284_v34 }
 0x56b   :  { %1452 = vmin.xlane.f32.xlu1 %v4288_v42 }
 0x576   :  { %2275 = vrot.lane.b32.xlu0 %v4294_v4, %s3043_s30 }
 0x57c   :  { %2289 = vrot.lane.b32.xlu1 %v4299_v12, %s3043_s30  ;;  %v4335_v12 = vpop.xlane.xlu1 %1220 }
 0x57d   :  { %vm1279_vm8 = vcmp.ge.f32.partialorder %v3975_v54, %v4335_v12 }
 0x580   :  { %v2070_v40 = vpop.permute.xlu1 %2069 }
 0x581   :  { %v4340_v20 = vadd.f32 %v2070_v40, %v3983_v30  ;;  %v4355_v40 = vsel %vm1164_vm4, %v1300_v51, 2147483647  ;;  %v4357_v30 = vcvt.s32.f32 %v1389_v15  ;;  %v4369_v51 = vsel %vm1164_vm4, %v1306_v52, 2147483647 }
 0x582   :  { %5460 = vst [vmem:[#allocation60_spill] sm:$0xff] %v4369_v51  ;;  %v1307_v15 = vsel %vm1273_vm0, %v5449_v55, 4  ;;  %v1494_v48 = vshra.s32 %v4369_v51, 16  ;;  %v4386_v52 = vadd.f32 %v2060_v1, %v3911_v27  ;;  %v1301_v1 = vsel %vm1267_vm1, %v5449_v55, 4 }
 0x583   :  { %5459 = vst [vmem:[#allocation20_spill] sm:$0xff] %v4340_v20  ;;  %v4374_v41 = vsel %vm1164_vm4, %v1307_v15, 2147483647  ;;  %v2064_v15 = vpop.permute.xlu0 %2063 }
 0x584   :  { %5461 = vst [vmem:[#allocation61_spill] sm:$0xff] %v4374_v41  ;;  %v4376_v0 = vcvt.s32.f32 %v1494_v48  ;;  %v4388_v22 = vpop.xlane.xlu1 %1226  ;;  %2965 = vtanh.f32 %v4386_v52 }
 0x585   :  { %5464 = vst [vmem:[#allocation64_spill] sm:$0xff] %v4388_v22  ;;  %v4405_v22 = vsel %vm1164_vm4, %v1301_v1, 2147483647  ;;  %v1309_v1 = vsel %vm1275_vm3, %v5449_v55, 4 }
 0x586   :  { %5462 = vst [vmem:[#allocation62_spill] sm:$0xff] %v4376_v0  ;;  %v4425_v16 = vsel %vm1164_vm4, %v1309_v1, 2147483647 }
 0x587   :  { %v4392_v48 = vpop.xlane.xlu0 %1217 }
 0x588   :  { %vm1278_vm7 = vcmp.ge.f32.partialorder %v3971_v10, %v4392_v48 }
 0x595   :  { %1377 = vmin.xlane.f32.xlu0 %v4311_v25 }
 0x5a0   :  { %1467 = vmin.xlane.f32.xlu1 %v4325_v17 }
 0x5a4   :  { %1482 = vmin.xlane.f32.xlu1 %v4329_v19 }
 0x5ab   :  { %2279 = vrot.lane.b32.xlu0 %v4333_v35, %s3043_s30 }
 0x5b5   :  { %2293 = vrot.lane.b32.xlu1 %v4340_v20, %s3043_s30  ;;  %v1404_v20 = vshra.s32 %v4355_v40, 16 }
 0x5b7   :  { %v4362_v58 = vcvt.s32.f32 %v1404_v20  ;;  %v1509_v20 = vshra.s32 %v4374_v41, 16  ;;  %v2074_v41 = vpop.permute.xlu1 %2073 }
 0x5b9   :  { %v4380_v61 = vcvt.s32.f32 %v1509_v20  ;;  %v2068_v20 = vpop.permute.xlu0 %2067 }
 0x5ba   :  { %v2145_v1 = vadd.f32 %v2068_v20, %v3967_v63 }
 0x5bb   :  { %5463 = vst [vmem:[#allocation63_spill] sm:$0xff] %v4380_v61 }
 0x5ca   :  { %1392 = vmin.xlane.f32.xlu0 %v4357_v30 }
 0x5ce   :  { %1407 = vmin.xlane.f32.xlu0 %v4362_v58 }
 0x5d9   :  { %1497 = vmin.xlane.f32.xlu1 %v4376_v0  ;;  %v4395_v0 = vadd.f32 %v2074_v41, %v4011_v46  ;;  %v1419_v41 = vshra.s32 %v4405_v22, 16 }
 0x5db   :  { %5465 = vst [vmem:[#allocation65_spill] sm:$0xff] %v4395_v0  ;;  %v4410_v46 = vcvt.s32.f32 %v1419_v41 }
 0x5dd   :  { %1512 = vmin.xlane.f32.xlu1 %v4380_v61  ;;  %v4399_v61 = vpop.xlane.xlu0 %1223 }
 0x5e1   :  { %v2072_v27 = vpop.permute.xlu0 %2071 }
 0x5e4   :  { %2283 = vrot.lane.b32.xlu0 %v4386_v52, %s3043_s30  ;;  %v4529_v52 = vcvt.s32.f32 %v1569_v59 }
 0x5e5   :  { %v4407_v51 = vpop.xlane.xlu0 %1229 }
 0x5e6   :  { %5466 = vst [vmem:[#allocation66_spill] sm:$0xff] %v4407_v51 }
 0x5e9   :  { %v2076_v19 = vpop.permute.xlu0 %2075 }
 0x5ed   :  { %v4415_v57 = vpop.xlane.xlu0 %1235 }
 0x5ee   :  { %2297 = vrot.lane.b32.xlu1 %v4395_v0, %s3043_s30  ;;  %v1308_v0 = vsel %vm1274_vm2, %v5449_v55, 4  ;;  %5467 = vst [vmem:[#allocation67_spill] sm:$0xff] %v4415_v57  ;;  %v1539_v57 = vshra.s32 %v4425_v16, 16 }
 0x5ef   :  { %v4420_v47 = vsel %vm1164_vm4, %v1308_v0, 2147483647  ;;  %v2143_v0 = vadd.f32 %v2064_v15, %v3939_v29  ;;  %v4450_v15 = vadd.f32 %v2076_v19, %v4023_v13 }
 0x5f0   :  { %5468 = vst [vmem:[#allocation68_spill] sm:$0xff] %v4420_v47  ;;  %v1524_v41 = vshra.s32 %v4420_v47, 16  ;;  %v4433_v24 = vcvt.s32.f32 %v1539_v57 }
 0x5f1   :  { %v2080_v51 = vpop.permute.xlu0 %2079  ;;  %2967 = vtanh.f32 %v2143_v0 }
 0x5f2   :  { %v4429_v3 = vcvt.s32.f32 %v1524_v41  ;;  %5470 = vst [vmem:[#allocation70_spill] sm:$0xff] %v4433_v24  ;;  %v4445_v41 = vadd.f32 %v2072_v27, %v3995_v31  ;;  %v4460_v20 = vadd.f32 %v2080_v51, %v4051_v53  ;;  %2969 = vtanh.f32 %v2145_v1 }
 0x5f4   :  { %2971 = vtanh.f32 %v4445_v41 }
 0x5f5   :  { %v4427_v56 = vpop.xlane.xlu0 %1241  ;;  %2973 = vtanh.f32 %v4450_v15 }
 0x5f6   :  { %5469 = vst [vmem:[#allocation69_spill] sm:$0xff] %v4427_v56  ;;  %v4441_v56 = vpop.xlane.xlu1 %1232  ;;  %2975 = vtanh.f32 %v4460_v20 }
 0x5f9   :  { %v2084_v62 = vpop.permute.xlu0 %2083 }
 0x5fa   :  { %v4471_v13 = vadd.f32 %v2084_v62, %v4079_v50  ;;  %v2956_v50 = vpop.eup %2955 }
 0x5fb   :  { %v2958_v37 = vpop.eup %2957 }
 0x5fc   :  { %2977 = vtanh.f32 %v4471_v13 }
 0x5fd   :  { %v4438_v47 = vpop.xlane.xlu0 %1247 }
 0x5fe   :  { %5471 = vst [vmem:[#allocation71_spill] sm:$0xff] %v4438_v47 }
 0x601   :  { %v2088_v57 = vpop.permute.xlu0 %2087 }
 0x602   :  { %v4477_v51 = vadd.f32 %v2088_v57, %v4107_v18 }
 0x603   :  { %1422 = vmin.xlane.f32.xlu0 %v4410_v46 }
 0x604   :  { %2979 = vtanh.f32 %v4477_v51 }
 0x605   :  { %v4452_v29 = vpop.xlane.xlu0 %1253 }
 0x609   :  { %v4466_v27 = vpop.permute.xlu0 %2255 }
 0x612   :  { %1527 = vmin.xlane.f32.xlu1 %v4429_v3 }
 0x616   :  { %1542 = vmin.xlane.f32.xlu1 %v4433_v24  ;;  %v2078_v24 = vpop.permute.xlu1 %2077 }
 0x617   :  { %v4455_v47 = vadd.f32 %v2078_v24, %v4039_v32  ;;  %v2092_v24 = vpop.permute.xlu0 %2091 }
 0x618   :  { %v4483_v32 = vadd.f32 %v2092_v24, %v4144_v21 }
 0x619   :  { %2287 = vrot.lane.b32.xlu0 %v2143_v0, %s3043_s30  ;;  %5472 = vst [vmem:[#allocation72_spill] sm:$0xff] %v4455_v47 }
 0x61a   :  { %v4468_v19 = vpop.xlane.xlu1 %1238  ;;  %5473 = vst [vmem:[#allocation73_spill] sm:$0xff] %v4483_v32 }
 0x61b   :  { %v4509_v6 = vpop.xlane.xlu0 %1259 }
 0x61c   :  { %5474 = vst [vmem:[#allocation74_spill] sm:$0xff] %v4509_v6 }
 0x61d   :  { %2291 = vrot.lane.b32.xlu0 %v2145_v1, %s3043_s30 }
 0x61e   :  { %v2082_v53 = vpop.permute.xlu1 %2081 }
 0x621   :  { %2295 = vrot.lane.b32.xlu0 %v4445_v41, %s3043_s30  ;;  %v4552_v41 = vadd.f32 %v2082_v53, %v4067_v2 }
 0x622   :  { %v4485_v62 = vpop.xlane.xlu1 %1244 }
 0x623   :  { %5478 = vst [vmem:[#allocation78_spill] sm:$0xff] %v4552_v41 }
 0x625   :  { %2299 = vrot.lane.b32.xlu0 %v4450_v15, %s3043_s30 }
 0x626   :  { %v4492_v57 = vpop.permute.xlu1 %2085 }
 0x627   :  { %2301 = vrot.lane.b32.xlu1 %v4455_v47, %s3043_s30 }
 0x629   :  { %2303 = vrot.lane.b32.xlu0 %v4460_v20, %s3043_s30 }
 0x62a   :  { %v4499_v24 = vpop.xlane.xlu1 %1250 }
 0x62d   :  { %2307 = vrot.lane.b32.xlu0 %v4471_v13, %s3043_s30 }
 0x62e   :  { %v4511_v4 = vpop.permute.xlu1 %2089 }
 0x631   :  { %2311 = vrot.lane.b32.xlu0 %v4477_v51, %s3043_s30 }
 0x632   :  { %v4525_v21 = vpop.permute.xlu1 %2257 }
 0x633   :  { %5475 = vst [vmem:[#allocation75_spill] sm:$0xff] %v4525_v21 }
 0x635   :  { %2315 = vrot.lane.b32.xlu0 %v4483_v32, %s3043_s30 }
 0x636   :  { %v4531_v14 = vpop.xlane.xlu1 %1256 }
 0x637   :  { %5476 = vst [vmem:[#allocation76_spill] sm:$0xff] %v4531_v14 }
 0x639   :  { %2387 = vrot.lane.b32.xlu0 %v2954_v38, %s3044_s7  ;;  %v1554_v38 = vshra.s32 %v4506_v36, 16 }
 0x63a   :  { %v4538_v32 = vpop.permute.xlu1 %2093 }
 0x63b   :  { %v4520_v35 = vcvt.s32.f32 %v1554_v38 }
 0x63d   :  { %2391 = vrot.lane.b32.xlu0 %v2956_v50, %s3044_s7  ;;  %v2960_v50 = vpop.eup %2959 }
 0x63e   :  { %v2962_v44 = vpop.eup %2961 }
 0x641   :  { %2395 = vrot.lane.b32.xlu0 %v2958_v37, %s3044_s7  ;;  %v4523_v37 = vpop.permute.xlu0 %2259 }
 0x645   :  { %2399 = vrot.lane.b32.xlu0 %v2960_v50, %s3044_s7  ;;  %v2964_v50 = vpop.eup %2963 }
 0x646   :  { %v2966_v38 = vpop.eup %2965 }
 0x647   :  { %v2968_v0 = vpop.eup %2967 }
 0x648   :  { %v2970_v1 = vpop.eup %2969 }
 0x649   :  { %2403 = vrot.lane.b32.xlu0 %v2962_v44, %s3044_s7  ;;  %v4534_v44 = vpop.permute.xlu0 %2383  ;;  %v2972_v31 = vpop.eup %2971 }
 0x64a   :  { %v2974_v15 = vpop.eup %2973 }
 0x64b   :  { %1557 = vmin.xlane.f32.xlu1 %v4520_v35 }
 0x64d   :  { %2407 = vrot.lane.b32.xlu0 %v2964_v50, %s3044_s7  ;;  %v4542_v59 = vpop.permute.xlu0 %2263  ;;  %v4546_v50 = vpop.permute.xlu1 %2261 }
 0x64e   :  { %5477 = vst [vmem:[#allocation77_spill] sm:$0xff] %v4546_v50 }
 0x64f   :  { %1572 = vmin.xlane.f32.xlu1 %v4529_v52 }
 0x651   :  { %2411 = vrot.lane.b32.xlu0 %v2966_v38, %s3044_s7  ;;  %v4548_v38 = vpop.permute.xlu0 %2267 }
 0x655   :  { %2415 = vrot.lane.b32.xlu0 %v2968_v0, %s3044_s7  ;;  %v4557_v0 = vpop.permute.xlu1 %2265  ;;  %v4561_v20 = vpop.permute.xlu0 %2271 }
 0x656   :  { %5479 = vst [vmem:[#allocation79_spill] sm:$0xff] %v4557_v0  ;;  %5480 = vst [vmem:[#allocation80_spill] sm:$0xff] %v4561_v20  ;;  %v1358_v20 = vand.u32 65535, %v4203_v60 }
 0x659   :  { %2419 = vrot.lane.b32.xlu0 %v2970_v1, %s3044_s7  ;;  %v2976_v1 = vpop.eup %2975  ;;  %v4566_v53 = vpop.permute.xlu1 %2269 }
 0x65a   :  { %5481 = vst [vmem:[#allocation81_spill] sm:$0xff] %v4566_v53  ;;  %v2978_v13 = vpop.eup %2977 }
 0x65b   :  { %v2980_v2 = vpop.eup %2979 }
 0x65d   :  { %2423 = vrot.lane.b32.xlu0 %v2972_v31, %s3044_s7  ;;  %v4564_v31 = vpop.xlane.xlu0 %1332  ;;  %v4571_v0 = vpop.permute.xlu1 %2273 }
 0x65e   :  { %5482 = vst [vmem:[#allocation82_spill] sm:$0xff] %v4571_v0  ;;  %vm1334_vm9 = vcmp.eq.f32.partialorder %v4266_v26, %v4564_v31  ;;  %v1360_v26 = vcvt.s32.f32 %v1358_v20 }
 0x660   :  { %2305 = vrot.lane.b32.xlu1 %v4552_v41, %s3043_s30 }
 0x661   :  { %2427 = vrot.lane.b32.xlu0 %v2974_v15, %s3044_s7  ;;  %v4569_v50 = vpop.xlane.xlu0 %1347  ;;  %v4574_v51 = vpop.xlane.xlu1 %1362 }
 0x662   :  { %vm1349_vm10 = vcmp.eq.f32.partialorder %v4276_v43, %v4569_v50  ;;  %vm1364_vm11 = vcmp.eq.f32.partialorder %v4210_v7, %v4574_v51 }
 0x665   :  { %2431 = vrot.lane.b32.xlu0 %v2976_v1, %s3044_s7  ;;  %v4576_v15 = vpop.permute.xlu0 %2275  ;;  %v4582_v53 = vpop.permute.xlu1 %2277 }
 0x666   :  { %5483 = vst [vmem:[#allocation83_spill] sm:$0xff] %v4576_v15  ;;  %5484 = vst [vmem:[#allocation84_spill] sm:$0xff] %v4582_v53 }
 0x669   :  { %2435 = vrot.lane.b32.xlu0 %v2978_v13, %s3044_s7  ;;  %v4580_v1 = vpop.xlane.xlu0 %1377  ;;  %v1312_v13 = vsel %vm1278_vm7, %v5449_v55, 4  ;;  %v4593_v63 = vpop.permute.xlu1 %2281 }
 0x66a   :  { %v4588_v0 = vsel %vm1164_vm4, %v1312_v13, 2147483647  ;;  %5486 = vst [vmem:[#allocation86_spill] sm:$0xff] %v4593_v63  ;;  %v1328_v13 = vand.u32 65535, %v4258_v8  ;;  %vm1379_vm12 = vcmp.eq.f32.partialorder %v4311_v25, %v4580_v1 }
 0x66b   :  { %v1584_v10 = vshra.s32 %v4588_v0, 16 }
 0x66d   :  { %2439 = vrot.lane.b32.xlu0 %v2980_v2, %s3044_s7  ;;  %v1313_v2 = vsel %vm1279_vm8, %v5449_v55, 4  ;;  %v4591_v21 = vpop.permute.xlu0 %2279  ;;  %v4601_v41 = vcvt.s32.f32 %v1584_v10  ;;  %v4604_v12 = vpop.permute.xlu1 %2285  ;;  %v1343_v10 = vand.u32 65535, %v4263_v39  ;;  %v1373_v39 = vand.u32 65535, %v4307_v49 }
 0x66e   :  { %5485 = vst [vmem:[#allocation85_spill] sm:$0xff] %v4591_v21  ;;  %v4597_v48 = vsel %vm1164_vm4, %v1313_v2, 2147483647  ;;  %5487 = vst [vmem:[#allocation87_spill] sm:$0xff] %v4604_v12  ;;  %v1330_v2 = vcvt.s32.f32 %v1328_v13 }
 0x66f   :  { %v1599_v54 = vshra.s32 %v4597_v48, 16  ;;  %v1375_v60 = vcvt.s32.f32 %v1373_v39  ;;  %v1418_v39 = vand.u32 65535, %v4405_v22 }
 0x670   :  { %v1335_v15 = vsel %vm1334_vm9, %v1330_v2, inf  ;;  %v4639_v2 = vadd.f32 %v4492_v57, %v4095_v33  ;;  %v5505_v33 = vld [vmem:[#allocation68_spill] sm:$0xff] }
 0x671   :  { %v4599_v53 = vpop.xlane.xlu0 %1392  ;;  %v4610_v63 = vcvt.s32.f32 %v1599_v54  ;;  %v4612_v21 = vpop.xlane.xlu1 %1437  ;;  %v1345_v54 = vcvt.s32.f32 %v1343_v10  ;;  %v1380_v20 = vsel %vm1379_vm12, %v1375_v60, inf  ;;  %v1403_v10 = vand.u32 65535, %v4355_v40 }
 0x672   :  { %vm1394_vm13 = vcmp.eq.f32.partialorder %v4357_v30, %v4599_v53  ;;  %v1420_v40 = vcvt.s32.f32 %v1418_v39  ;;  %v1433_v60 = vand.u32 65535, %v4274_v11  ;;  %vm1439_vm0 = vcmp.eq.f32.partialorder %v4284_v34, %v4612_v21 }
 0x673   :  { %v1350_v6 = vsel %vm1349_vm10, %v1345_v54, inf }
 0x674   :  { %v1435_v22 = vcvt.s32.f32 %v1433_v60 }
 0x675   :  { %v4608_v47 = vpop.xlane.xlu0 %1407  ;;  %v4622_v8 = vpop.xlane.xlu1 %1452 }
 0x676   :  { %5488 = vst [vmem:[#allocation88_spill] sm:$0xff] %v4608_v47  ;;  %vm1409_vm14 = vcmp.eq.f32.partialorder %v4362_v58, %v4608_v47  ;;  %vm1454_vm1 = vcmp.eq.f32.partialorder %v4288_v42, %v4622_v8  ;;  %v5495_v42 = vld [vmem:[#allocation37_spill] sm:$0xff] }
 0x677   :  { %vm1280_vm3 = vcmp.ge.f32.partialorder %v5495_v42, %v4399_v61 }
 0x679   :  { %v4618_v12 = vpop.permute.xlu0 %2283  ;;  %v4630_v13 = vpop.permute.xlu1 %2289 }
 0x67a   :  { %5489 = vst [vmem:[#allocation89_spill] sm:$0xff] %v4630_v13  ;;  %v1568_v13 = vand.u32 65535, %v4517_v5  ;;  %v5513_v5 = vld [vmem:[#allocation66_spill] sm:$0xff] }
 0x67d   :  { %v4641_v7 = vpop.xlane.xlu1 %1467 }
 0x67e   :  { %vm1469_vm2 = vcmp.eq.f32.partialorder %v4325_v17, %v4641_v7  ;;  %v1314_v17 = vsel %vm1280_vm3, %v5449_v55, 4 }
 0x67f   :  { %v4696_v61 = vsel %vm1164_vm4, %v1314_v17, 2147483647  ;;  %v5504_v17 = vld [vmem:[#allocation63_spill] sm:$0xff] }
 0x681   :  { %v4654_v57 = vpop.xlane.xlu1 %1482 }
 0x684   :  { %1587 = vmin.xlane.f32.xlu1 %v4601_v41 }
 0x688   :  { %1602 = vmin.xlane.f32.xlu1 %v4610_v63 }
 0x68c   :  { %1336 = vmin.xlane.f32.xlu0 %v1335_v15  ;;  %v1365_v15 = vsel %vm1364_vm11, %v1360_v26, inf  ;;  %v1405_v26 = vcvt.s32.f32 %v1403_v10 }
 0x690   :  { %1351 = vmin.xlane.f32.xlu0 %v1350_v6  ;;  %v4625_v14 = vpop.xlane.xlu0 %1422  ;;  %v1388_v6 = vand.u32 65535, %v4350_v45 }
 0x691   :  { %vm1424_vm15 = vcmp.eq.f32.partialorder %v4410_v46, %v4625_v14 }
 0x692   :  { %v1390_v25 = vcvt.s32.f32 %v1388_v6  ;;  %v4662_v6 = vpop.permute.xlu1 %2293 }
 0x693   :  { %5492 = vst [vmem:[#allocation92_spill] sm:$0xff] %v4662_v6 }
 0x694   :  { %1366 = vmin.xlane.f32.xlu0 %v1365_v15  ;;  %v4632_v43 = vpop.permute.xlu0 %2287  ;;  %v1395_v45 = vsel %vm1394_vm13, %v1390_v25, inf  ;;  %v1410_v15 = vsel %vm1409_vm14, %v1405_v26, inf  ;;  %v1448_v25 = vand.u32 65535, %v4282_v23  ;;  %v1463_v26 = vand.u32 65535, %v4318_v9 }
 0x695   :  { %vm2479_vm14 = vcmask 293888  }
 0x696   :  { %v4669_v10 = vpop.xlane.xlu1 %1497  ;;  %v1450_v11 = vcvt.s32.f32 %v1448_v25  ;;  %v5498_v25 = vld [vmem:[#allocation60_spill] sm:$0xff] }
 0x698   :  { %1381 = vmin.xlane.f32.xlu0 %v1380_v20  ;;  %v4643_v49 = vpop.permute.xlu0 %2291  ;;  %v1425_v20 = vsel %vm1424_vm15, %v1420_v40, inf  ;;  %v1455_v39 = vsel %vm1454_vm1, %v1450_v11, inf  ;;  %v1478_v40 = vand.u32 65535, %v4323_v28  ;;  %v5499_v11 = vld [vmem:[#allocation64_spill] sm:$0xff]  ;;  %vm2512_vm15 = vcmask 424960  }
 0x699   :  { %2309 = vrot.lane.b32.xlu1 %v4639_v2, %s3043_s30 }
 0x69a   :  { %v4680_v23 = vpop.xlane.xlu1 %1512 }
 0x69b   :  { %vm1514_vm8 = vcmp.eq.f32.partialorder %v5504_v17, %v4680_v23 }
 0x69c   :  { %1396 = vmin.xlane.f32.xlu0 %v1395_v45  ;;  %v4650_v54 = vpop.permute.xlu0 %2295  ;;  %v1440_v45 = vsel %vm1439_vm0, %v1435_v22, inf  ;;  %v1480_v22 = vcvt.s32.f32 %v1478_v40 }
 0x69d   :  { %5490 = vst [vmem:[#allocation90_spill] sm:$0xff] %v4650_v54 }
 0x6a0   :  { %1411 = vmin.xlane.f32.xlu0 %v1410_v15  ;;  %v4657_v30 = vpop.permute.xlu0 %2299  ;;  %v1465_v15 = vcvt.s32.f32 %v1463_v26  ;;  %v4693_v26 = vpop.permute.xlu1 %2297 }
 0x6a1   :  { %5491 = vst [vmem:[#allocation91_spill] sm:$0xff] %v4657_v30 }
 0x6a2   :  { %v1470_v60 = vsel %vm1469_vm2, %v1465_v15, inf  ;;  %v5502_v15 = vld [vmem:[#allocation62_spill] sm:$0xff] }
 0x6a3   :  { %vm1499_vm7 = vcmp.eq.f32.partialorder %v5502_v15, %v4669_v10 }
 0x6a4   :  { %1426 = vmin.xlane.f32.xlu0 %v1425_v20  ;;  %v4666_v58 = vpop.permute.xlu0 %2303  ;;  %v5496_v20 = vld [vmem:[#allocation15_spill] sm:$0xff] }
 0x6a5   :  { %5493 = vst [vmem:[#allocation93_spill] sm:$0xff] %v4666_v58  ;;  %vm1484_vm5 = vcmp.eq.f32.partialorder %v5496_v20, %v4654_v57  ;;  %5501 = vst [vmem:[#allocation15_spill] sm:$0xff] %v4693_v26  ;;  %v5503_v20 = vld [vmem:[#allocation61_spill] sm:$0xff] }
 0x6a6   :  { %v1485_v28 = vsel %vm1484_vm5, %v1480_v22, inf  ;;  %vm2545_vm5 = vcmask 556032  }
 0x6a8   :  { %1441 = vmin.xlane.f32.xlu0 %v1440_v45  ;;  %v4673_v46 = vpop.permute.xlu0 %2307  ;;  %v1493_v45 = vand.u32 65535, %v5498_v25  ;;  %v1508_v25 = vand.u32 65535, %v5503_v20 }
 0x6a9   :  { %5494 = vst [vmem:[#allocation94_spill] sm:$0xff] %v4673_v46  ;;  %v1523_v46 = vand.u32 65535, %v5505_v33 }
 0x6aa   :  { %v1495_v40 = vcvt.s32.f32 %v1493_v45  ;;  %v1510_v15 = vcvt.s32.f32 %v1508_v25  ;;  %v1538_v25 = vand.u32 65535, %v4425_v16  ;;  %v5507_v16 = vld [vmem:[#allocation51_spill] sm:$0xff] }
 0x6ac   :  { %1456 = vmin.xlane.f32.xlu0 %v1455_v39  ;;  %v4678_v34 = vpop.permute.xlu0 %2311  ;;  %v5500_v39 = vld [vmem:[#allocation38_spill] sm:$0xff]  ;;  %v1515_v45 = vsel %vm1514_vm8, %v1510_v15, inf }
 0x6ad   :  { %vm1281_vm6 = vcmp.ge.f32.partialorder %v5500_v39, %v5499_v11  ;;  %v1500_v11 = vsel %vm1499_vm7, %v1495_v40, inf  ;;  %v1614_v39 = vshra.s32 %v4696_v61, 16  ;;  %vm2578_vm7 = vcmask 564224  }
 0x6af   :  { %v4715_v58 = vcvt.s32.f32 %v1614_v39  ;;  %v5506_v39 = vld [vmem:[#allocation70_spill] sm:$0xff] }
 0x6b0   :  { %1471 = vmin.xlane.f32.xlu0 %v1470_v60  ;;  %v4687_v9 = vpop.permute.xlu0 %2315  ;;  %v1315_v60 = vsel %vm1281_vm6, %v5449_v55, 4 }
 0x6b1   :  { %5497 = vst [vmem:[#allocation37_spill] sm:$0xff] %v4687_v9  ;;  %v4704_v9 = vpop.xlane.xlu1 %1527  ;;  %v4708_v22 = vsel %vm1164_vm4, %v1315_v60, 2147483647 }
 0x6b2   :  { %v1629_v20 = vshra.s32 %v4708_v22, 16  ;;  %vm1529_vm9 = vcmp.eq.f32.partialorder %v4429_v3, %v4704_v9  ;;  %v1540_v3 = vcvt.s32.f32 %v1538_v25 }
 0x6b4   :  { %1486 = vmin.xlane.f32.xlu0 %v1485_v28  ;;  %v4700_v42 = vpop.permute.xlu0 %2387  ;;  %v4726_v33 = vcvt.s32.f32 %v1629_v20  ;;  %v4741_v20 = vadd.f32 %v4511_v4, %v5507_v16 }
 0x6b5   :  { %v4722_v40 = vpop.xlane.xlu1 %1542 }
 0x6b6   :  { %vm1544_vm10 = vcmp.eq.f32.partialorder %v5506_v39, %v4722_v40  ;;  %v1553_v39 = vand.u32 65535, %v4506_v36 }
 0x6b8   :  { %1501 = vmin.xlane.f32.xlu0 %v1500_v11  ;;  %v4712_v28 = vpop.permute.xlu0 %2391  ;;  %v1525_v11 = vcvt.s32.f32 %v1523_v46  ;;  %v1555_v6 = vcvt.s32.f32 %v1553_v39 }
 0x6ba   :  { %v1530_v17 = vsel %vm1529_vm9, %v1525_v11, inf }
 0x6bc   :  { %1516 = vmin.xlane.f32.xlu0 %v1515_v45  ;;  %v4720_v60 = vpop.permute.xlu0 %2395  ;;  %v1545_v45 = vsel %vm1544_vm10, %v1540_v3, inf }
 0x6bd   :  { %1617 = vmin.xlane.f32.xlu1 %v4715_v58 }
 0x6c0   :  { %1531 = vmin.xlane.f32.xlu0 %v1530_v17  ;;  %v4730_v15 = vpop.permute.xlu0 %2399  ;;  %v4747_v17 = vpop.permute.xlu1 %2301 }
 0x6c1   :  { %1632 = vmin.xlane.f32.xlu1 %v4726_v33  ;;  %5508 = vst [vmem:[#allocation60_spill] sm:$0xff] %v4747_v17  ;;  %v1570_v17 = vcvt.s32.f32 %v1568_v13 }
 0x6c4   :  { %1546 = vmin.xlane.f32.xlu0 %v1545_v45  ;;  %v4733_v30 = vpop.permute.xlu0 %2403 }
 0x6c8   :  { %v4735_v26 = vpop.permute.xlu0 %2407 }
 0x6cc   :  { %v4737_v46 = vpop.permute.xlu0 %2411 }
 0x6d0   :  { %v4743_v11 = vpop.permute.xlu0 %2415 }
 0x6d2   :  { %2313 = vrot.lane.b32.xlu1 %v4741_v20, %s3043_s30 }
 0x6d4   :  { %v4749_v25 = vpop.permute.xlu0 %2419 }
 0x6d8   :  { %v4752_v3 = vpop.xlane.xlu1 %1557  ;;  %v4754_v45 = vpop.permute.xlu0 %2423 }
 0x6d9   :  { %5509 = vst [vmem:[#allocation64_spill] sm:$0xff] %v4754_v45  ;;  %vm1559_vm11 = vcmp.eq.f32.partialorder %v4520_v35, %v4752_v3  ;;  %v5514_v45 = vld [vmem:[#allocation41_spill] sm:$0xff]  ;;  %v2508_v35 = vsel %vm2479_vm14, %v4107_v18, %v4678_v34 }
 0x6da   :  { %v1560_v4 = vsel %vm1559_vm11, %v1555_v6, inf  ;;  %vm1282_vm13 = vcmp.ge.f32.partialorder %v5514_v45, %v5513_v5 }
 0x6db   :  { %1561 = vmin.xlane.f32.xlu0 %v1560_v4 }
 0x6dc   :  { %v4759_v16 = vpop.xlane.xlu1 %1572  ;;  %v4761_v54 = vpop.permute.xlu0 %2427 }
 0x6dd   :  { %5510 = vst [vmem:[#allocation38_spill] sm:$0xff] %v4761_v54  ;;  %vm1574_vm12 = vcmp.eq.f32.partialorder %v4529_v52, %v4759_v16  ;;  %v1316_v52 = vsel %vm1282_vm13, %v5449_v55, 4 }
 0x6de   :  { %v1575_v36 = vsel %vm1574_vm12, %v1570_v17, inf  ;;  %v5516_v17 = vld [vmem:[#allocation42_spill] sm:$0xff]  ;;  %v4781_v4 = vsel %vm1164_vm4, %v1316_v52, 2147483647 }
 0x6df   :  { %1576 = vmin.xlane.f32.xlu0 %v1575_v36  ;;  %vm1283_vm0 = vcmp.ge.f32.partialorder %v5516_v17, %v4441_v56  ;;  %v1644_v36 = vshra.s32 %v4781_v4, 16  ;;  %v5517_v56 = vld [vmem:[#allocation54_spill] sm:$0xff]  ;;  %v1583_v17 = vand.u32 65535, %v4588_v0 }
 0x6e0   :  { %v4765_v47 = vpop.permute.xlu0 %2431  ;;  %v1317_v45 = vsel %vm1283_vm0, %v5449_v55, 4  ;;  %v4801_v52 = vpop.permute.xlu1 %2305 }
 0x6e1   :  { %5511 = vst [vmem:[#allocation62_spill] sm:$0xff] %v4765_v47  ;;  %v4786_v5 = vsel %vm1164_vm4, %v1317_v45, 2147483647  ;;  %v4788_v18 = vcvt.s32.f32 %v1644_v36  ;;  %5518 = vst [vmem:[#allocation68_spill] sm:$0xff] %v4801_v52  ;;  %v1585_v36 = vcvt.s32.f32 %v1583_v17 }
 0x6e2   :  { %v1659_v34 = vshra.s32 %v4786_v5, 16 }
 0x6e4   :  { %v4767_v39 = vpop.permute.xlu0 %2435 }
 0x6e5   :  { %5512 = vst [vmem:[#allocation61_spill] sm:$0xff] %v4767_v39 }
 0x6e8   :  { %v2440_v6 = vpop.permute.xlu0 %2439 }
 0x6e9   :  { %v4775_v13 = vsel %vm2512_vm15, %v2508_v35, %v2440_v6  ;;  %v4792_v35 = vcvt.s32.f32 %v1659_v34  ;;  %v4797_v6 = vadd.f32 %v4538_v32, %v5517_v56  ;;  %v1339_v56 = vcvt.f32.s32 %v4564_v31  ;;  %v5521_v31 = vld [vmem:[#allocation12_spill] sm:$0xff] }
 0x6ea   :  { %5515 = vst [vmem:[#allocation63_spill] sm:$0xff] %v4775_v13  ;;  %v1598_v13 = vand.u32 65535, %v4597_v48 }
 0x6eb   :  { %v1340_v47 = vshll.u32 %v1339_v56, 16 }
 0x6ec   :  { %v1600_v32 = vcvt.s32.f32 %v1598_v13  ;;  %v5520_v13 = vld [vmem:[#allocation45_spill] sm:$0xff] }
 0x6f6   :  { %1647 = vmin.xlane.f32.xlu1 %v4788_v18 }
 0x6fa   :  { %1662 = vmin.xlane.f32.xlu1 %v4792_v35 }
 0x70b   :  { %2317 = vrot.lane.b32.xlu1 %v4797_v6, %s3043_s30 }
 0x711   :  { %v4804_v45 = vpop.xlane.xlu1 %1587 }
 0x712   :  { %vm1589_vm1 = vcmp.eq.f32.partialorder %v4601_v41, %v4804_v45  ;;  %v1369_v41 = vcvt.f32.s32 %v4574_v51 }
 0x713   :  { %v1590_v34 = vsel %vm1589_vm1, %v1585_v36, inf }
 0x714   :  { %1591 = vmin.xlane.f32.xlu0 %v1590_v34  ;;  %v5519_v34 = vld [vmem:[#allocation67_spill] sm:$0xff] }
 0x715   :  { %v4809_v39 = vpop.xlane.xlu1 %1602  ;;  %vm1284_vm6 = vcmp.ge.f32.partialorder %v5520_v13, %v5519_v34 }
 0x716   :  { %vm1604_vm2 = vcmp.eq.f32.partialorder %v4610_v63, %v4809_v39  ;;  %v2480_v63 = vsel %vm2479_vm14, %v5521_v31, %v4466_v27 }
 0x717   :  { %v1605_v52 = vsel %vm1604_vm2, %v1600_v32, inf  ;;  %v2513_v56 = vsel %vm2512_vm15, %v2480_v63, %v4534_v44  ;;  %v1370_v32 = vshll.u32 %v1369_v41, 16  ;;  %v1399_v41 = vcvt.f32.s32 %v4599_v53  ;;  %v5523_v63 = vld [vmem:[#allocation69_spill] sm:$0xff]  ;;  %v5526_v53 = vld [vmem:[#allocation7_spill] sm:$0xff] }
 0x718   :  { %1606 = vmin.xlane.f32.xlu0 %v1605_v52  ;;  %vm1287_vm11 = vcmp.ge.f32.partialorder %v5526_v53, %v4485_v62  ;;  %v5530_v53 = vld [vmem:[#allocation19_spill] sm:$0xff] }
 0x719   :  { %v1337_v0 = vpop.xlane.xlu0 %1336 }
 0x71a   :  { %v1338_v17 = vcvt.f32.s32 %v1337_v0 }
 0x71c   :  { %v1341_v54 = vadd.s32 %v1340_v47, %v1338_v17  ;;  %v1318_v17 = vsel %vm1284_vm6, %v5449_v55, 4 }
 0x71d   :  { %v4814_v48 = vpop.xlane.xlu0 %1351 }
 0x71e   :  { %vm1807_vm3 = vcmp.lt.s32.totalorder %v1341_v54, 3 }
 0x71f   :  { %v1808_v36 = vsel %vm1807_vm3, %v1341_v54, 3  ;;  %v5522_v54 = vld [vmem:[#allocation46_spill] sm:$0xff] }
 0x720   :  { %v2191_v52 = vcvt.s32.f32 %v1808_v36  ;;  %vm1285_vm8 = vcmp.ge.f32.partialorder %v5522_v54, %v4468_v19  ;;  %v4832_v36 = vsel %vm1164_vm4, %v1318_v17, 2147483647  ;;  %v5525_v19 = vld [vmem:[#allocation16_spill] sm:$0xff]  ;;  %v1400_v54 = vshll.u32 %v1399_v41, 16  ;;  %v5528_v41 = vld [vmem:[#allocation71_spill] sm:$0xff] }
 0x721   :  { %v1367_v47 = vpop.xlane.xlu0 %1366  ;;  %v1319_v44 = vsel %vm1285_vm8, %v5449_v55, 4  ;;  %v1674_v17 = vshra.s32 %v4832_v36, 16 }
 0x722   :  { %v2546_v0 = vsel %vm2545_vm5, %v2513_v56, %v2191_v52  ;;  %v1368_v51 = vcvt.f32.s32 %v1367_v47  ;;  %v5524_v52 = vld [vmem:[#allocation49_spill] sm:$0xff]  ;;  %v2482_v56 = vsel %vm2479_vm14, %v5525_v19, %v4523_v37 }
 0x723   :  { %v2579_v34 = vsel %vm2578_vm7, %v2546_v0, 0.0  ;;  %vm1286_vm10 = vcmp.ge.f32.partialorder %v5524_v52, %v5523_v63  ;;  %v2515_v0 = vsel %vm2512_vm15, %v2482_v56, %v4700_v42  ;;  %v1321_v42 = vsel %vm1287_vm11, %v5449_v55, 4  ;;  %v5529_v56 = vld [vmem:[#allocation5_spill] sm:$0xff] }
 0x724   :  { %2611 = vst [vmem:[#allocation2] sm:$0xff] %v2579_v34  ;;  %v1371_v13 = vadd.s32 %v1370_v32, %v1368_v51  ;;  %v4842_v32 = vsel %vm1164_vm4, %v1319_v44, 2147483647  ;;  %v1320_v63 = vsel %vm1286_vm10, %v5449_v55, 4  ;;  %v4856_v19 = vcvt.s32.f32 %v1674_v17 }
 0x725   :  { %v4829_v27 = vpop.xlane.xlu0 %1381  ;;  %v4859_v62 = vsel %vm1164_vm4, %v1320_v63, 2147483647  ;;  %vm1288_vm12 = vcmp.ge.f32.partialorder %v5529_v56, %v5528_v41  ;;  %v2484_v17 = vsel %vm2479_vm14, %v5530_v53, %v4542_v59  ;;  %v5531_v63 = vld [vmem:[#allocation9_spill] sm:$0xff] }
 0x726   :  { %vm1811_vm9 = vcmp.lt.s32.totalorder %v1371_v13, 3  ;;  %vm1289_vm0 = vcmp.ge.f32.partialorder %v5531_v63, %v4499_v24  ;;  %v1459_v63 = vcvt.f32.s32 %v4622_v8 }
 0x727   :  { %v1812_v31 = vsel %vm1811_vm9, %v1371_v13, 3 }
 0x728   :  { %v2193_v47 = vcvt.s32.f32 %v1812_v31  ;;  %v1689_v31 = vshra.s32 %v4842_v32, 16 }
 0x729   :  { %v1397_v51 = vpop.xlane.xlu0 %1396 }
 0x72a   :  { %v2548_v34 = vsel %vm2545_vm5, %v2515_v0, %v2193_v47  ;;  %v1398_v13 = vcvt.f32.s32 %v1397_v51  ;;  %v1429_v47 = vcvt.f32.s32 %v4625_v14  ;;  %v4866_v51 = vsel %vm1164_vm4, %v1321_v42, 2147483647 }
 0x72b   :  { %v2581_v37 = vsel %vm2578_vm7, %v2548_v34, 0.0  ;;  %v4871_v34 = vcvt.s32.f32 %v1689_v31  ;;  %v2517_v14 = vsel %vm2512_vm15, %v2484_v17, %v4712_v28  ;;  %v1444_v42 = vcvt.f32.s32 %v4612_v21  ;;  %v5532_v17 = vld [vmem:[#allocation6_spill] sm:$0xff] }
 0x72c   :  { %2613 = vst [vmem:[#allocation2 + $0x10] sm:$0xff] %v2581_v37  ;;  %v1401_v44 = vadd.s32 %v1400_v54, %v1398_v13  ;;  %v1322_v13 = vsel %vm1288_vm12, %v5449_v55, 4  ;;  %v1430_v41 = vshll.u32 %v1429_v47, 16  ;;  %v1323_v28 = vsel %vm1289_vm0, %v5449_v55, 4 }
 0x72d   :  { %v4854_v52 = vpop.xlane.xlu0 %1411  ;;  %v4885_v53 = vsel %vm1164_vm4, %v1322_v13, 2147483647  ;;  %vm1290_vm1 = vcmp.ge.f32.partialorder %v5532_v17, %v4452_v29  ;;  %v5533_v13 = vld [vmem:[#allocation22_spill] sm:$0xff] }
 0x72e   :  { %5527 = vst [vmem:[#allocation70_spill] sm:$0xff] %v4854_v52  ;;  %vm1815_vm13 = vcmp.lt.s32.totalorder %v1401_v44, 3  ;;  %v1734_v29 = vshra.s32 %v4885_v53, 16  ;;  %v1324_v8 = vsel %vm1290_vm1, %v5449_v55, 4 }
 0x72f   :  { %v1816_v0 = vsel %vm1815_vm13, %v1401_v44, 3  ;;  %1677 = vmin.xlane.f32.xlu1 %v4856_v19  ;;  %v1704_v44 = vshra.s32 %v4859_v62, 16 }
 0x730   :  { %v2195_v54 = vcvt.s32.f32 %v1816_v0  ;;  %v1719_v0 = vshra.s32 %v4866_v51, 16 }
 0x731   :  { %v1427_v37 = vpop.xlane.xlu0 %1426  ;;  %v4890_v47 = vcvt.s32.f32 %v1704_v44  ;;  %v4903_v44 = vsel %vm1164_vm4, %v1323_v28, 2147483647 }
 0x732   :  { %v2550_v56 = vsel %vm2545_vm5, %v2517_v14, %v2195_v54  ;;  %v1428_v59 = vcvt.f32.s32 %v1427_v37  ;;  %v1445_v54 = vshll.u32 %v1444_v42, 16  ;;  %v5535_v42 = vld [vmem:[#allocation76_spill] sm:$0xff] }
 0x733   :  { %v2583_v31 = vsel %vm2578_vm7, %v2550_v56, 0.0  ;;  %1692 = vmin.xlane.f32.xlu1 %v4871_v34  ;;  %v2486_v56 = vsel %vm2479_vm14, %v5533_v13, %v4548_v38  ;;  %v1474_v38 = vcvt.f32.s32 %v4641_v7  ;;  %v1749_v13 = vshra.s32 %v4903_v44, 16 }
 0x734   :  { %2615 = vst [vmem:[#allocation2 + $0x20] sm:$0xff] %v2583_v31  ;;  %v1431_v24 = vadd.s32 %v1430_v41, %v1428_v59  ;;  %v4894_v41 = vcvt.s32.f32 %v1719_v0  ;;  %v2519_v0 = vsel %vm2512_vm15, %v2486_v56, %v4720_v60  ;;  %v5537_v56 = vld [vmem:[#allocation74_spill] sm:$0xff] }
 0x735   :  { %v1442_v21 = vpop.xlane.xlu0 %1441  ;;  %v4930_v52 = vcvt.s32.f32 %v1749_v13 }
 0x736   :  { %vm1819_vm2 = vcmp.lt.s32.totalorder %v1431_v24, 3  ;;  %v1443_v14 = vcvt.f32.s32 %v1442_v21  ;;  %v1460_v21 = vshll.u32 %v1459_v63, 16  ;;  %v5538_v63 = vld [vmem:[#allocation8_spill] sm:$0xff] }
 0x737   :  { %v1820_v37 = vsel %vm1819_vm2, %v1431_v24, 3  ;;  %1707 = vmin.xlane.f32.xlu1 %v4890_v47  ;;  %v5536_v24 = vld [vmem:[#allocation11_spill] sm:$0xff]  ;;  %vm1292_vm6 = vcmp.ge.f32.partialorder %v5538_v63, %v5537_v56 }
 0x738   :  { %v2197_v59 = vcvt.s32.f32 %v1820_v37  ;;  %v4899_v31 = vadd.s32 %v1445_v54, %v1443_v14  ;;  %vm1291_vm3 = vcmp.ge.f32.partialorder %v5536_v24, %v5535_v42  ;;  %v4916_v42 = vsel %vm1164_vm4, %v1324_v8, 2147483647 }
 0x739   :  { %v1457_v17 = vpop.xlane.xlu0 %1456  ;;  %v1325_v60 = vsel %vm1291_vm3, %v5449_v55, 4  ;;  %v4921_v24 = vcvt.s32.f32 %v1734_v29  ;;  %v1764_v56 = vshra.s32 %v4916_v42, 16 }
 0x73a   :  { %5534 = vst [vmem:[#allocation66_spill] sm:$0xff] %v4899_v31  ;;  %v2552_v54 = vsel %vm2545_vm5, %v2519_v0, %v2197_v59  ;;  %v1458_v14 = vcvt.f32.s32 %v1457_v17  ;;  %v1475_v59 = vshll.u32 %v1474_v38, 16  ;;  %v1489_v0 = vcvt.f32.s32 %v4654_v57 }
 0x73b   :  { %v2585_v37 = vsel %vm2578_vm7, %v2552_v54, 0.0  ;;  %1722 = vmin.xlane.f32.xlu1 %v4894_v41  ;;  %v4933_v29 = vsel %vm1164_vm4, %v1325_v60, 2147483647  ;;  %v1326_v38 = vsel %vm1292_vm6, %v5449_v55, 4  ;;  %v1613_v55 = vand.u32 65535, %v4696_v61  ;;  %v5544_v61 = vld [vmem:[#allocation26_spill] sm:$0xff] }
 0x73c   :  { %2617 = vst [vmem:[#allocation2 + $0x30] sm:$0xff] %v2585_v37  ;;  %v1461_v28 = vadd.s32 %v1460_v21, %v1458_v14  ;;  %v5539_v21 = vld [vmem:[#allocation80_spill] sm:$0xff]  ;;  %v1490_v63 = vshll.u32 %v1489_v0, 16  ;;  %v1779_v0 = vshra.s32 %v4933_v29, 16 }
 0x73d   :  { %v1472_v7 = vpop.xlane.xlu0 %1471  ;;  %v5540_v14 = vld [vmem:[#allocation24_spill] sm:$0xff] }
 0x73e   :  { %vm1823_vm8 = vcmp.lt.s32.totalorder %v1461_v28, 3  ;;  %v1473_v17 = vcvt.f32.s32 %v1472_v7  ;;  %v2488_v8 = vsel %vm2479_vm14, %v5540_v14, %v5539_v21  ;;  %v1504_v7 = vcvt.f32.s32 %v4669_v10 }
 0x73f   :  { %v1824_v54 = vsel %vm1823_vm8, %v1461_v28, 3  ;;  %1737 = vmin.xlane.f32.xlu1 %v4921_v24  ;;  %v2521_v57 = vsel %vm2512_vm15, %v2488_v8, %v4730_v15  ;;  %v4947_v21 = vcvt.s32.f32 %v1764_v56  ;;  %v1519_v14 = vcvt.f32.s32 %v4680_v23  ;;  %v4951_v8 = vpop.permute.xlu1 %2309 }
 0x740   :  { %v2199_v37 = vcvt.s32.f32 %v1824_v54  ;;  %v4928_v31 = vadd.s32 %v1475_v59, %v1473_v17  ;;  %v4945_v17 = vsel %vm1164_vm4, %v1326_v38, 2147483647  ;;  %v1505_v10 = vshll.u32 %v1504_v7, 16  ;;  %5542 = vst [vmem:[#allocation42_spill] sm:$0xff] %v4951_v8 }
 0x741   :  { %v1487_v28 = vpop.xlane.xlu0 %1486  ;;  %v1615_v56 = vcvt.s32.f32 %v1613_v55  ;;  %v4961_v23 = vcvt.s32.f32 %v1779_v0  ;;  %v1534_v8 = vcvt.f32.s32 %v4704_v9 }
 0x742   :  { %5541 = vst [vmem:[#allocation41_spill] sm:$0xff] %v4928_v31  ;;  %v2554_v54 = vsel %vm2545_vm5, %v2521_v57, %v2199_v37  ;;  %v1488_v59 = vcvt.f32.s32 %v1487_v28  ;;  %v5543_v28 = vld [vmem:[#allocation83_spill] sm:$0xff] }
 0x743   :  { %v2587_v13 = vsel %vm2578_vm7, %v2554_v54, 0.0  ;;  %1752 = vmin.xlane.f32.xlu1 %v4930_v52  ;;  %v2490_v38 = vsel %vm2479_vm14, %v5544_v61, %v5543_v28 }
 0x744   :  { %2619 = vst [vmem:[#allocation2 + $0x40] sm:$0xff] %v2587_v13  ;;  %v1491_v60 = vadd.s32 %v1490_v63, %v1488_v59  ;;  %v2523_v7 = vsel %vm2512_vm15, %v2490_v38, %v4733_v30  ;;  %v1794_v13 = vshra.s32 %v4945_v17, 16 }
 0x745   :  { %v1502_v15 = vpop.xlane.xlu0 %1501 }
 0x746   :  { %vm1827_vm9 = vcmp.lt.s32.totalorder %v1491_v60, 3  ;;  %v1503_v37 = vcvt.f32.s32 %v1502_v15  ;;  %v1520_v15 = vshll.u32 %v1519_v14, 16  ;;  %v1535_v14 = vshll.u32 %v1534_v8, 16 }
 0x747   :  { %v1828_v57 = vsel %vm1827_vm9, %v1491_v60, 3  ;;  %1767 = vmin.xlane.f32.xlu1 %v4947_v21  ;;  %v1628_v60 = vand.u32 65535, %v4708_v22 }
 0x748   :  { %v2201_v63 = vcvt.s32.f32 %v1828_v57  ;;  %v4957_v54 = vadd.s32 %v1505_v10, %v1503_v37  ;;  %v4973_v10 = vcvt.s32.f32 %v1794_v13  ;;  %v1549_v37 = vcvt.f32.s32 %v4722_v40 }
 0x749   :  { %v1517_v59 = vpop.xlane.xlu0 %1516  ;;  %v1630_v9 = vcvt.s32.f32 %v1628_v60 }
 0x74a   :  { %v2556_v31 = vsel %vm2545_vm5, %v2523_v7, %v2201_v63  ;;  %v1518_v28 = vcvt.f32.s32 %v1517_v59  ;;  %v4967_v57 = vpop.xlane.xlu1 %1617  ;;  %v5546_v63 = vld [vmem:[#allocation28_spill] sm:$0xff]  ;;  %v1550_v60 = vshll.u32 %v1549_v37, 16 }
 0x74b   :  { %v2589_v55 = vsel %vm2578_vm7, %v2556_v31, 0.0  ;;  %vm1619_vm4 = vcmp.eq.f32.partialorder %v4715_v58, %v4967_v57  ;;  %1782 = vmin.xlane.f32.xlu1 %v4961_v23  ;;  %v5545_v58 = vld [vmem:[#allocation85_spill] sm:$0xff] }
 0x74c   :  { %2621 = vst [vmem:[#allocation2 + $0x50] sm:$0xff] %v2589_v55  ;;  %v1521_v30 = vadd.s32 %v1520_v15, %v1518_v28  ;;  %v1620_v0 = vsel %vm1619_vm4, %v1615_v56, inf  ;;  %v2492_v56 = vsel %vm2479_vm14, %v5546_v63, %v5545_v58  ;;  %v5550_v58 = vld [vmem:[#allocation56_spill] sm:$0xff] }
 0x74d   :  { %1621 = vmin.xlane.f32.xlu0 %v1620_v0  ;;  %v1532_v22 = vpop.xlane.xlu0 %1531  ;;  %v2525_v40 = vsel %vm2512_vm15, %v2492_v56, %v4735_v26  ;;  %v5549_v26 = vld [vmem:[#allocation55_spill] sm:$0xff]  ;;  %v5551_v56 = vld [vmem:[#allocation57_spill] sm:$0xff] }
 0x74e   :  { %vm1831_vm10 = vcmp.lt.s32.totalorder %v1521_v30, 3  ;;  %v1533_v61 = vcvt.f32.s32 %v1532_v22  ;;  %v4976_v38 = vpop.xlane.xlu1 %1632  ;;  %v5548_v22 = vld [vmem:[#allocation30_spill] sm:$0xff] }
 0x74f   :  { %v1832_v31 = vsel %vm1831_vm10, %v1521_v30, 3  ;;  %vm1634_vm11 = vcmp.eq.f32.partialorder %v4726_v33, %v4976_v38  ;;  %1797 = vmin.xlane.f32.xlu1 %v4973_v10  ;;  %v5547_v30 = vld [vmem:[#allocation52_spill] sm:$0xff] }
 0x750   :  { %v2203_v7 = vcvt.s32.f32 %v1832_v31  ;;  %v4984_v59 = vadd.s32 %v1535_v14, %v1533_v61  ;;  %v1635_v8 = vsel %vm1634_vm11, %v1630_v9, inf  ;;  %2981 = vtanh.f32 %v5547_v30 }
 0x751   :  { %1636 = vmin.xlane.f32.xlu0 %v1635_v8  ;;  %v1547_v13 = vpop.xlane.xlu0 %1546  ;;  %v2494_v9 = vsel %vm2479_vm14, %v5548_v22, %v4618_v12  ;;  %2983 = vtanh.f32 %v5549_v26  ;;  %v5552_v12 = vld [vmem:[#allocation58_spill] sm:$0xff]  ;;  %v1564_v8 = vcvt.f32.s32 %v4752_v3  ;;  %v5555_v26 = vld [vmem:[#allocation59_spill] sm:$0xff] }
 0x752   :  { %v2558_v15 = vsel %vm2545_vm5, %v2525_v40, %v2203_v7  ;;  %v1548_v28 = vcvt.f32.s32 %v1547_v13  ;;  %v2527_v37 = vsel %vm2512_vm15, %v2494_v9, %v4737_v46  ;;  %2985 = vtanh.f32 %v5550_v58  ;;  %v5553_v13 = vld [vmem:[#allocation18_spill] sm:$0xff] }
 0x753   :  { %v2591_v33 = vsel %vm2578_vm7, %v2558_v15, 0.0  ;;  %2987 = vtanh.f32 %v5551_v56  ;;  %v1579_v15 = vcvt.f32.s32 %v4759_v16  ;;  %v5557_v56 = vld [vmem:[#allocation14_spill] sm:$0xff] }
 0x754   :  { %2623 = vst [vmem:[#allocation2 + $0x60] sm:$0xff] %v2591_v33  ;;  %v1551_v55 = vadd.s32 %v1550_v60, %v1548_v28  ;;  %2989 = vtanh.f32 %v5552_v12  ;;  %v1565_v60 = vshll.u32 %v1564_v8, 16 }
 0x755   :  { %2991 = vtanh.f32 %v5553_v13  ;;  %v1580_v22 = vshll.u32 %v1579_v15, 16  ;;  %v5027_v13 = vpop.permute.xlu1 %2313  ;;  %v5560_v15 = vld [vmem:[#allocation72_spill] sm:$0xff] }
 0x756   :  { %vm1835_vm12 = vcmp.lt.s32.totalorder %v1551_v55, 3 }
 0x757   :  { %v1836_v0 = vsel %vm1835_vm12, %v1551_v55, 3 }
 0x758   :  { %v2205_v14 = vcvt.s32.f32 %v1836_v0  ;;  %v5554_v0 = vld [vmem:[#allocation10_spill] sm:$0xff] }
 0x759   :  { %2993 = vtanh.f32 %v5554_v0  ;;  %v1658_v0 = vand.u32 65535, %v4786_v5 }
 0x75a   :  { %v2560_v61 = vsel %vm2545_vm5, %v2527_v37, %v2205_v14  ;;  %v2982_v63 = vpop.eup %2981  ;;  %2995 = vtanh.f32 %v5555_v26 }
 0x75b   :  { %v2593_v31 = vsel %vm2578_vm7, %v2560_v61, 0.0  ;;  %v2984_v7 = vpop.eup %2983  ;;  %v5556_v61 = vld [vmem:[#allocation32_spill] sm:$0xff]  ;;  %2997 = vtanh.f32 %v5557_v56 }
 0x75c   :  { %2625 = vst [vmem:[#allocation2 + $0x70] sm:$0xff] %v2593_v31  ;;  %v2986_v46 = vpop.eup %2985  ;;  %v2496_v31 = vsel %vm2479_vm14, %v5556_v61, %v4632_v43  ;;  %v5559_v43 = vld [vmem:[#allocation65_spill] sm:$0xff] }
 0x75d   :  { %v2988_v33 = vpop.eup %2987 }
 0x75e   :  { %v2990_v9 = vpop.eup %2989 }
 0x75f   :  { %v2992_v16 = vpop.eup %2991 }
 0x760   :  { %2385 = vrot.lane.b32.xlu1 %v2982_v63, %s3044_s7  ;;  %v2529_v63 = vsel %vm2512_vm15, %v2496_v31, %v4743_v11 }
 0x763   :  { %v2994_v8 = vpop.eup %2993 }
 0x764   :  { %2389 = vrot.lane.b32.xlu1 %v2984_v7, %s3044_s7 }
 0x768   :  { %2393 = vrot.lane.b32.xlu1 %v2986_v46, %s3044_s7  ;;  %v1562_v40 = vpop.xlane.xlu0 %1561  ;;  %v5558_v46 = vld [vmem:[#allocation20_spill] sm:$0xff] }
 0x769   :  { %v1563_v28 = vcvt.f32.s32 %v1562_v40  ;;  %2999 = vtanh.f32 %v5558_v46  ;;  %v2996_v40 = vpop.eup %2995  ;;  %v5562_v46 = vld [vmem:[#allocation34_spill] sm:$0xff] }
 0x76a   :  { %3001 = vtanh.f32 %v5559_v43  ;;  %v2998_v11 = vpop.eup %2997 }
 0x76b   :  { %v5008_v55 = vadd.s32 %v1565_v60, %v1563_v28  ;;  %v1643_v60 = vand.u32 65535, %v4781_v4  ;;  %3003 = vtanh.f32 %v5560_v15  ;;  %v1673_v15 = vand.u32 65535, %v4832_v36 }
 0x76c   :  { %2397 = vrot.lane.b32.xlu1 %v2988_v33, %s3044_s7  ;;  %v1577_v30 = vpop.xlane.xlu0 %1576 }
 0x76d   :  { %v1578_v3 = vcvt.f32.s32 %v1577_v30  ;;  %v1645_v30 = vcvt.s32.f32 %v1643_v60 }
 0x76f   :  { %v1581_v14 = vadd.s32 %v1580_v22, %v1578_v3  ;;  %v5561_v22 = vld [vmem:[#allocation78_spill] sm:$0xff] }
 0x770   :  { %2401 = vrot.lane.b32.xlu1 %v2990_v9, %s3044_s7  ;;  %3005 = vtanh.f32 %v5561_v22 }
 0x771   :  { %vm1839_vm13 = vcmp.lt.s32.totalorder %v1581_v14, 3  ;;  %3007 = vtanh.f32 %v4639_v2  ;;  %v1594_v2 = vcvt.f32.s32 %v4804_v45 }
 0x772   :  { %v1840_v37 = vsel %vm1839_vm13, %v1581_v14, 3  ;;  %v1660_v14 = vcvt.s32.f32 %v1658_v0  ;;  %3009 = vtanh.f32 %v4741_v20  ;;  %v1609_v20 = vcvt.f32.s32 %v4809_v39 }
 0x773   :  { %v2207_v58 = vcvt.s32.f32 %v1840_v37  ;;  %v3000_v28 = vpop.eup %2999  ;;  %3011 = vtanh.f32 %v4797_v6  ;;  %v1595_v31 = vshll.u32 %v1594_v2, 16  ;;  %v1688_v0 = vand.u32 65535, %v4842_v32 }
 0x774   :  { %2405 = vrot.lane.b32.xlu1 %v2992_v16, %s3044_s7  ;;  %v3002_v4 = vpop.eup %3001  ;;  %v1610_v6 = vshll.u32 %v1609_v20, 16  ;;  %v1718_v32 = vand.u32 65535, %v4866_v51  ;;  %v1748_v51 = vand.u32 65535, %v4903_v44  ;;  %v1763_v2 = vand.u32 65535, %v4916_v42 }
 0x775   :  { %v2562_v7 = vsel %vm2545_vm5, %v2529_v63, %v2207_v58  ;;  %v1690_v22 = vcvt.s32.f32 %v1688_v0  ;;  %v1383_v42 = vcvt.f32.s32 %v4829_v27 }
 0x776   :  { %v2595_v12 = vsel %vm2578_vm7, %v2562_v7, 0.0  ;;  %v1765_v20 = vcvt.s32.f32 %v1763_v2  ;;  %v5570_v2 = vld [vmem:[#allocation36_spill] sm:$0xff] }
 0x777   :  { %2627 = vst [vmem:[#allocation2 + $0x80] sm:$0xff] %v2595_v12 }
 0x778   :  { %2409 = vrot.lane.b32.xlu1 %v2994_v8, %s3044_s7 }
 0x77c   :  { %2413 = vrot.lane.b32.xlu1 %v2996_v40, %s3044_s7  ;;  %v2498_v40 = vsel %vm2479_vm14, %v5562_v46, %v4643_v49 }
 0x77d   :  { %v2531_v45 = vsel %vm2512_vm15, %v2498_v40, %v4749_v25  ;;  %v1639_v40 = vcvt.f32.s32 %v4976_v38 }
 0x780   :  { %2417 = vrot.lane.b32.xlu1 %v2998_v11, %s3044_s7 }
 0x783   :  { %v5032_v33 = vpop.xlane.xlu1 %1647 }
 0x784   :  { %vm1649_vm0 = vcmp.eq.f32.partialorder %v4788_v18, %v5032_v33  ;;  %2421 = vrot.lane.b32.xlu1 %v3000_v28, %s3044_s7  ;;  %v3004_v18 = vpop.eup %3003 }
 0x785   :  { %v1650_v3 = vsel %vm1649_vm0, %v1645_v30, inf  ;;  %v3006_v26 = vpop.eup %3005  ;;  %v1675_v30 = vcvt.s32.f32 %v1673_v15 }
 0x786   :  { %1651 = vmin.xlane.f32.xlu0 %v1650_v3  ;;  %v3008_v37 = vpop.eup %3007  ;;  %v1703_v3 = vand.u32 65535, %v4859_v62  ;;  %v1733_v62 = vand.u32 65535, %v4885_v53  ;;  %v1750_v53 = vcvt.s32.f32 %v1748_v51 }
 0x787   :  { %v5039_v9 = vpop.xlane.xlu1 %1662 }
 0x788   :  { %vm1664_vm1 = vcmp.eq.f32.partialorder %v4792_v35, %v5039_v9  ;;  %2425 = vrot.lane.b32.xlu1 %v3002_v4, %s3044_s7  ;;  %v3010_v35 = vpop.eup %3009 }
 0x789   :  { %v1665_v5 = vsel %vm1664_vm1, %v1660_v14, inf  ;;  %v3012_v16 = vpop.eup %3011  ;;  %v1705_v14 = vcvt.s32.f32 %v1703_v3 }
 0x78a   :  { %1666 = vmin.xlane.f32.xlu0 %v1665_v5 }
 0x78b   :  { %v5063_v60 = vpop.permute.xlu1 %2317 }
 0x78c   :  { %2429 = vrot.lane.b32.xlu1 %v3004_v18, %s3044_s7  ;;  %v1720_v18 = vcvt.s32.f32 %v1718_v32 }
 0x790   :  { %2433 = vrot.lane.b32.xlu1 %v3006_v26, %s3044_s7 }
 0x794   :  { %2437 = vrot.lane.b32.xlu1 %v3008_v37, %s3044_s7  ;;  %v1735_v37 = vcvt.s32.f32 %v1733_v62  ;;  %v5567_v62 = vld [vmem:[#allocation77_spill] sm:$0xff] }
 0x798   :  { %2441 = vrot.lane.b32.xlu1 %v3010_v35, %s3044_s7  ;;  %v1354_v35 = vcvt.f32.s32 %v4569_v50  ;;  %v1778_v50 = vand.u32 65535, %v4933_v29 }
 0x79a   :  { %v1355_v44 = vshll.u32 %v1354_v35, 16 }
 0x79c   :  { %2445 = vrot.lane.b32.xlu1 %v3012_v16, %s3044_s7 }
 0x7a1   :  { %v1592_v61 = vpop.xlane.xlu0 %1591 }
 0x7a2   :  { %v1593_v58 = vcvt.f32.s32 %v1592_v61 }
 0x7a4   :  { %v5054_v63 = vadd.s32 %v1595_v31, %v1593_v58  ;;  %v1384_v31 = vcvt.f32.s32 %v4580_v1  ;;  %v1793_v1 = vand.u32 65535, %v4945_v17 }
 0x7a5   :  { %v1607_v56 = vpop.xlane.xlu0 %1606 }
 0x7a6   :  { %v1608_v7 = vcvt.f32.s32 %v1607_v56 }
 0x7a8   :  { %v1611_v12 = vadd.s32 %v1610_v6, %v1608_v7 }
 0x7aa   :  { %vm1843_vm2 = vcmp.lt.s32.totalorder %v1611_v12, 3 }
 0x7ab   :  { %v1844_v8 = vsel %vm1843_vm2, %v1611_v12, 3  ;;  %v1780_v12 = vcvt.s32.f32 %v1778_v50 }
 0x7ac   :  { %v2209_v43 = vcvt.s32.f32 %v1844_v8  ;;  %v5564_v8 = vld [vmem:[#allocation70_spill] sm:$0xff] }
 0x7ae   :  { %v2564_v11 = vsel %vm2545_vm5, %v2531_v45, %v2209_v43 }
 0x7af   :  { %v2597_v39 = vsel %vm2578_vm7, %v2564_v11, 0.0  ;;  %v1795_v11 = vcvt.s32.f32 %v1793_v1 }
 0x7b0   :  { %2629 = vst [vmem:[#allocation2 + $0x90] sm:$0xff] %v2597_v39 }
 0x7bc   :  { %v5066_v28 = vpop.xlane.xlu1 %1677 }
 0x7bd   :  { %vm1679_vm3 = vcmp.eq.f32.partialorder %v4856_v19, %v5066_v28 }
 0x7be   :  { %v1680_v49 = vsel %vm1679_vm3, %v1675_v30, inf  ;;  %v1640_v30 = vshll.u32 %v1639_v40, 16  ;;  %v5575_v40 = vld [vmem:[#allocation73_spill] sm:$0xff] }
 0x7bf   :  { %1681 = vmin.xlane.f32.xlu0 %v1680_v49  ;;  %v5565_v49 = vld [vmem:[#allocation75_spill] sm:$0xff]  ;;  %3013 = vtanh.f32 %v5575_v40 }
 0x7c0   :  { %v5071_v25 = vpop.xlane.xlu1 %1692 }
 0x7c1   :  { %vm1694_vm6 = vcmp.eq.f32.partialorder %v4871_v34, %v5071_v25 }
 0x7c2   :  { %v1695_v4 = vsel %vm1694_vm6, %v1690_v22, inf  ;;  %v5566_v22 = vld [vmem:[#allocation13_spill] sm:$0xff] }
 0x7c3   :  { %1696 = vmin.xlane.f32.xlu0 %v1695_v4  ;;  %v2481_v38 = vsel %vm2479_vm14, %v5566_v22, %v5565_v49 }
 0x7c4   :  { %v5076_v36 = vpop.xlane.xlu1 %1707 }
 0x7c5   :  { %vm1709_vm8 = vcmp.eq.f32.partialorder %v4890_v47, %v5076_v36 }
 0x7c6   :  { %v1710_v19 = vsel %vm1709_vm8, %v1705_v14, inf }
 0x7c7   :  { %1711 = vmin.xlane.f32.xlu0 %v1710_v19 }
 0x7c8   :  { %v5081_v5 = vpop.xlane.xlu1 %1722 }
 0x7c9   :  { %vm1724_vm9 = vcmp.eq.f32.partialorder %v4894_v41, %v5081_v5  ;;  %v1353_v41 = vcvt.f32.s32 %v4814_v48  ;;  %v5563_v48 = vld [vmem:[#allocation88_spill] sm:$0xff] }
 0x7ca   :  { %v1725_v34 = vsel %vm1724_vm9, %v1720_v18, inf  ;;  %v1414_v6 = vcvt.f32.s32 %v5563_v48  ;;  %v5573_v48 = vld [vmem:[#allocation79_spill] sm:$0xff]  ;;  %vm1829_vm9 = vcmp.lt.s32.totalorder %v4957_v54, 3 }
 0x7cb   :  { %1726 = vmin.xlane.f32.xlu0 %v1725_v34  ;;  %v1356_v58 = vadd.s32 %v1355_v44, %v1353_v41  ;;  %v5568_v34 = vld [vmem:[#allocation17_spill] sm:$0xff] }
 0x7cc   :  { %v5086_v26 = vpop.xlane.xlu1 %1737  ;;  %v1415_v43 = vshll.u32 %v1414_v6, 16  ;;  %v5574_v6 = vld [vmem:[#allocation21_spill] sm:$0xff] }
 0x7cd   :  { %vm1739_vm4 = vcmp.eq.f32.partialorder %v4921_v24, %v5086_v26  ;;  %vm1809_vm13 = vcmp.lt.s32.totalorder %v1356_v58, 3 }
 0x7ce   :  { %v1740_v47 = vsel %vm1739_vm4, %v1735_v37, inf  ;;  %v1810_v39 = vsel %vm1809_vm13, %v1356_v58, 3  ;;  %v2483_v37 = vsel %vm2479_vm14, %v5568_v34, %v5567_v62  ;;  %v5572_v58 = vld [vmem:[#allocation66_spill] sm:$0xff]  ;;  %vm1833_vm4 = vcmp.lt.s32.totalorder %v4984_v59, 3 }
 0x7cf   :  { %1741 = vmin.xlane.f32.xlu0 %v1740_v47  ;;  %v2192_v3 = vcvt.s32.f32 %v1810_v39  ;;  %vm1821_vm6 = vcmp.lt.s32.totalorder %v5572_v58, 3 }
 0x7d0   :  { %v5092_v16 = vpop.xlane.xlu1 %1752 }
 0x7d1   :  { %vm1754_vm10 = vcmp.eq.f32.partialorder %v4930_v52, %v5092_v16  ;;  %v1385_v52 = vshll.u32 %v1384_v31, 16 }
 0x7d2   :  { %v1755_v61 = vsel %vm1754_vm10, %v1750_v53, inf  ;;  %v5569_v53 = vld [vmem:[#allocation90_spill] sm:$0xff]  ;;  %vm1837_vm10 = vcmp.lt.s32.totalorder %v5008_v55, 3 }
 0x7d3   :  { %1756 = vmin.xlane.f32.xlu0 %v1755_v61  ;;  %v1386_v29 = vadd.s32 %v1385_v52, %v1383_v42  ;;  %v2500_v41 = vsel %vm2479_vm14, %v5570_v2, %v5569_v53 }
 0x7d4   :  { %v5099_v24 = vpop.xlane.xlu1 %1767 }
 0x7d5   :  { %vm1769_vm11 = vcmp.eq.f32.partialorder %v4947_v21, %v5099_v24  ;;  %v1413_v21 = vcvt.f32.s32 %v5564_v8  ;;  %vm1813_vm1 = vcmp.lt.s32.totalorder %v1386_v29, 3 }
 0x7d6   :  { %v1770_v56 = vsel %vm1769_vm11, %v1765_v20, inf  ;;  %v1814_v14 = vsel %vm1813_vm1, %v1386_v29, 3  ;;  %v5571_v20 = vld [vmem:[#allocation64_spill] sm:$0xff]  ;;  %vm1841_vm11 = vcmp.lt.s32.totalorder %v5054_v63, 3 }
 0x7d7   :  { %1771 = vmin.xlane.f32.xlu0 %v1770_v56  ;;  %v1416_v17 = vadd.s32 %v1415_v43, %v1413_v21  ;;  %v2194_v51 = vcvt.s32.f32 %v1814_v14  ;;  %v2533_v50 = vsel %vm2512_vm15, %v2500_v41, %v5571_v20  ;;  %v1822_v21 = vsel %vm1821_vm6, %v5572_v58, 3  ;;  %v5576_v43 = vld [vmem:[#allocation41_spill] sm:$0xff]  ;;  %v5583_v58 = vld [vmem:[#allocation86_spill] sm:$0xff] }
 0x7d8   :  { %v5106_v7 = vpop.xlane.xlu1 %1782  ;;  %vm1825_vm8 = vcmp.lt.s32.totalorder %v5576_v43, 3  ;;  %v5580_v14 = vld [vmem:[#allocation25_spill] sm:$0xff]  ;;  %v1624_v41 = vcvt.f32.s32 %v4967_v57 }
 0x7d9   :  { %vm1784_vm12 = vcmp.eq.f32.partialorder %v4961_v23, %v5106_v7  ;;  %vm1817_vm2 = vcmp.lt.s32.totalorder %v1416_v17, 3  ;;  %v1826_v49 = vsel %vm1825_vm8, %v5576_v43, 3  ;;  %v1842_v43 = vsel %vm1841_vm11, %v5054_v63, 3 }
 0x7da   :  { %v5112_v46 = vpop.xlane.xlu0 %1621  ;;  %v1785_v27 = vsel %vm1784_vm12, %v1780_v12, inf  ;;  %v1818_v61 = vsel %vm1817_vm2, %v1416_v17, 3  ;;  %v2485_v12 = vsel %vm2479_vm14, %v5574_v6, %v5573_v48  ;;  %v5577_v17 = vld [vmem:[#allocation81_spill] sm:$0xff]  ;;  %v1838_v48 = vsel %vm1837_vm10, %v5008_v55, 3 }
 0x7db   :  { %1786 = vmin.xlane.f32.xlu0 %v1785_v27  ;;  %v2196_v1 = vcvt.s32.f32 %v1818_v61 }
 0x7dc   :  { %v5115_v45 = vpop.xlane.xlu1 %1797 }
 0x7dd   :  { %vm1799_vm0 = vcmp.eq.f32.partialorder %v4973_v10, %v5115_v45 }
 0x7de   :  { %v1637_v23 = vpop.xlane.xlu0 %1636  ;;  %v1800_v15 = vsel %vm1799_vm0, %v1795_v11, inf }
 0x7df   :  { %v1638_v0 = vcvt.f32.s32 %v1637_v23  ;;  %1801 = vmin.xlane.f32.xlu0 %v1800_v15  ;;  %v5578_v23 = vld [vmem:[#allocation23_spill] sm:$0xff] }
 0x7e0   :  { %v2386_v4 = vpop.permute.xlu1 %2385  ;;  %v2487_v15 = vsel %vm2479_vm14, %v5578_v23, %v5577_v17  ;;  %v5587_v17 = vld [vmem:[#allocation89_spill] sm:$0xff] }
 0x7e1   :  { %v1641_v32 = vadd.s32 %v1640_v30, %v1638_v0  ;;  %v2514_v19 = vsel %vm2512_vm15, %v2481_v38, %v2386_v4  ;;  %v2198_v30 = vcvt.s32.f32 %v1822_v21  ;;  %v5579_v4 = vld [vmem:[#allocation82_spill] sm:$0xff]  ;;  %v5588_v23 = vld [vmem:[#allocation33_spill] sm:$0xff] }
 0x7e2   :  { %v2547_v10 = vsel %vm2545_vm5, %v2514_v19, %v2192_v3  ;;  %v2200_v19 = vcvt.s32.f32 %v1826_v49 }
 0x7e3   :  { %vm1847_vm3 = vcmp.lt.s32.totalorder %v1641_v32, 3  ;;  %v2580_v18 = vsel %vm2578_vm7, %v2547_v10, 0.0 }
 0x7e4   :  { %v1848_v47 = vsel %vm1847_vm3, %v1641_v32, 3  ;;  %2612 = vst [vmem:[#allocation2 + $0x8] sm:$0xff] %v2580_v18  ;;  %v2390_v35 = vpop.permute.xlu1 %2389  ;;  %v2489_v32 = vsel %vm2479_vm14, %v5580_v14, %v5579_v4  ;;  %v1830_v18 = vsel %vm1829_vm9, %v4957_v54, 3  ;;  %v1834_v54 = vsel %vm1833_vm4, %v4984_v59, 3  ;;  %v5590_v4 = vld [vmem:[#allocation35_spill] sm:$0xff] }
 0x7e5   :  { %v2211_v44 = vcvt.s32.f32 %v1848_v47  ;;  %v2516_v31 = vsel %vm2512_vm15, %v2483_v37, %v2390_v35  ;;  %v5581_v47 = vld [vmem:[#allocation84_spill] sm:$0xff]  ;;  %v5582_v35 = vld [vmem:[#allocation27_spill] sm:$0xff]  ;;  %v2202_v2 = vcvt.s32.f32 %v1830_v18 }
 0x7e6   :  { %v2549_v42 = vsel %vm2545_vm5, %v2516_v31, %v2194_v51  ;;  %v3014_v51 = vpop.eup %3013  ;;  %v2491_v53 = vsel %vm2479_vm14, %v5582_v35, %v5581_v47  ;;  %v1623_v31 = vcvt.f32.s32 %v5112_v46  ;;  %v1669_v47 = vcvt.f32.s32 %v5039_v9 }
 0x7e7   :  { %v2566_v56 = vsel %vm2545_vm5, %v2533_v50, %v2211_v44  ;;  %v2582_v52 = vsel %vm2578_vm7, %v2549_v42, 0.0  ;;  %v5584_v42 = vld [vmem:[#allocation29_spill] sm:$0xff] }
 0x7e8   :  { %v2599_v29 = vsel %vm2578_vm7, %v2566_v56, 0.0  ;;  %2614 = vst [vmem:[#allocation2 + $0x18] sm:$0xff] %v2582_v52  ;;  %v2394_v8 = vpop.permute.xlu1 %2393  ;;  %v2493_v57 = vsel %vm2479_vm14, %v5584_v42, %v5583_v58  ;;  %v1625_v56 = vshll.u32 %v1624_v41, 16  ;;  %v2204_v52 = vcvt.s32.f32 %v1834_v54 }
 0x7e9   :  { %2631 = vst [vmem:[#allocation2 + $0xa0] sm:$0xff] %v2599_v29  ;;  %v2518_v27 = vsel %vm2512_vm15, %v2485_v12, %v2394_v8  ;;  %v5585_v29 = vld [vmem:[#allocation87_spill] sm:$0xff]  ;;  %v1670_v41 = vshll.u32 %v1669_v47, 16 }
 0x7ea   :  { %v2551_v11 = vsel %vm2545_vm5, %v2518_v27, %v2196_v1  ;;  %v1626_v12 = vadd.s32 %v1625_v56, %v1623_v31  ;;  %v5586_v8 = vld [vmem:[#allocation31_spill] sm:$0xff]  ;;  %v2206_v27 = vcvt.s32.f32 %v1838_v48 }
 0x7eb   :  { %v2584_v39 = vsel %vm2578_vm7, %v2551_v11, 0.0  ;;  %v2495_v21 = vsel %vm2479_vm14, %v5586_v8, %v5585_v29  ;;  %v5591_v31 = vld [vmem:[#allocation15_spill] sm:$0xff]  ;;  %v1684_v8 = vcvt.f32.s32 %v5066_v28 }
 0x7ec   :  { %2616 = vst [vmem:[#allocation2 + $0x28] sm:$0xff] %v2584_v39  ;;  %v2398_v0 = vpop.permute.xlu1 %2397  ;;  %vm1845_vm12 = vcmp.lt.s32.totalorder %v1626_v12, 3 }
 0x7ed   :  { %v2520_v22 = vsel %vm2512_vm15, %v2487_v15, %v2398_v0  ;;  %v2497_v15 = vsel %vm2479_vm14, %v5588_v23, %v5587_v17  ;;  %v1846_v49 = vsel %vm1845_vm12, %v1626_v12, 3  ;;  %v5595_v12 = vld [vmem:[#allocation38_spill] sm:$0xff]  ;;  %v1714_v17 = vcvt.f32.s32 %v5076_v36 }
 0x7ee   :  { %v2553_v38 = vsel %vm2545_vm5, %v2520_v22, %v2198_v30  ;;  %v2208_v30 = vcvt.s32.f32 %v1842_v43 }
 0x7ef   :  { %v2586_v3 = vsel %vm2578_vm7, %v2553_v38, 0.0 }
 0x7f0   :  { %2618 = vst [vmem:[#allocation2 + $0x38] sm:$0xff] %v2586_v3  ;;  %v2402_v10 = vpop.permute.xlu1 %2401  ;;  %v5589_v3 = vld [vmem:[#allocation92_spill] sm:$0xff] }
 0x7f1   :  { %v2522_v62 = vsel %vm2512_vm15, %v2489_v32, %v2402_v10  ;;  %v2499_v14 = vsel %vm2479_vm14, %v5590_v4, %v5589_v3  ;;  %v2210_v32 = vcvt.s32.f32 %v1846_v49  ;;  %v5597_v49 = vld [vmem:[#allocation43_spill] sm:$0xff]  ;;  %v1715_v4 = vshll.u32 %v1714_v17, 16 }
 0x7f2   :  { %v2555_v34 = vsel %vm2545_vm5, %v2522_v62, %v2200_v19 }
 0x7f3   :  { %v2588_v37 = vsel %vm2578_vm7, %v2555_v34, 0.0  ;;  %v1654_v34 = vcvt.f32.s32 %v5032_v33 }
 0x7f4   :  { %2620 = vst [vmem:[#allocation2 + $0x48] sm:$0xff] %v2588_v37  ;;  %v2406_v61 = vpop.permute.xlu1 %2405 }
 0x7f5   :  { %v2524_v44 = vsel %vm2512_vm15, %v2491_v53, %v2406_v61  ;;  %2443 = vrot.lane.b32.xlu0 %v3014_v51, %s3044_s7  ;;  %v1655_v51 = vshll.u32 %v1654_v34, 16 }
 0x7f6   :  { %v2557_v20 = vsel %vm2545_vm5, %v2524_v44, %v2202_v2 }
 0x7f7   :  { %v2590_v50 = vsel %vm2578_vm7, %v2557_v20, 0.0  ;;  %v5592_v20 = vld [vmem:[#allocation39_spill] sm:$0xff] }
 0x7f8   :  { %2622 = vst [vmem:[#allocation2 + $0x58] sm:$0xff] %v2590_v50  ;;  %v2410_v59 = vpop.permute.xlu1 %2409  ;;  %v2501_v50 = vsel %vm2479_vm14, %v5592_v20, %v5591_v31  ;;  %v5601_v31 = vld [vmem:[#allocation68_spill] sm:$0xff]  ;;  %v5602_v20 = vld [vmem:[#allocation47_spill] sm:$0xff] }
 0x7f9   :  { %v2526_v6 = vsel %vm2512_vm15, %v2493_v57, %v2410_v59  ;;  %v5594_v59 = vld [vmem:[#allocation40_spill] sm:$0xff] }
 0x7fa   :  { %v2559_v46 = vsel %vm2545_vm5, %v2526_v6, %v2204_v52  ;;  %v5593_v52 = vld [vmem:[#allocation91_spill] sm:$0xff] }
 0x7fb   :  { %v2592_v1 = vsel %vm2578_vm7, %v2559_v46, 0.0  ;;  %v2502_v48 = vsel %vm2479_vm14, %v5594_v59, %v5593_v52 }
 0x7fc   :  { %2624 = vst [vmem:[#allocation2 + $0x68] sm:$0xff] %v2592_v1  ;;  %v2414_v40 = vpop.permute.xlu1 %2413  ;;  %v2535_v46 = vsel %vm2512_vm15, %v2502_v48, %v5595_v12  ;;  %v5604_v12 = vld [vmem:[#allocation48_spill] sm:$0xff] }
 0x7fd   :  { %v2528_v55 = vsel %vm2512_vm15, %v2495_v21, %v2414_v40  ;;  %v1699_v40 = vcvt.f32.s32 %v5071_v25 }
 0x7fe   :  { %v2561_v11 = vsel %vm2545_vm5, %v2528_v55, %v2206_v27  ;;  %v1685_v27 = vshll.u32 %v1684_v8, 16  ;;  %v5605_v8 = vld [vmem:[#allocation61_spill] sm:$0xff] }
 0x7ff   :  { %v2594_v39 = vsel %vm2578_vm7, %v2561_v11, 0.0 }
 0x800   :  { %2626 = vst [vmem:[#allocation2 + $0x78] sm:$0xff] %v2594_v39  ;;  %v2418_v0 = vpop.permute.xlu1 %2417  ;;  %v1700_v39 = vshll.u32 %v1699_v40, 16  ;;  %v1774_v40 = vcvt.f32.s32 %v5099_v24 }
 0x801   :  { %v2530_v22 = vsel %vm2512_vm15, %v2497_v15, %v2418_v0  ;;  %v5596_v0 = vld [vmem:[#allocation60_spill] sm:$0xff] }
 0x802   :  { %v2563_v38 = vsel %vm2545_vm5, %v2530_v22, %v2208_v30  ;;  %v2503_v22 = vsel %vm2479_vm14, %v5597_v49, %v5596_v0 }
 0x803   :  { %v2596_v63 = vsel %vm2578_vm7, %v2563_v38, 0.0 }
 0x804   :  { %2628 = vst [vmem:[#allocation2 + $0x88] sm:$0xff] %v2596_v63  ;;  %v2422_v19 = vpop.permute.xlu1 %2421  ;;  %v1729_v63 = vcvt.f32.s32 %v5081_v5 }
 0x805   :  { %v2532_v10 = vsel %vm2512_vm15, %v2499_v14, %v2422_v19 }
 0x806   :  { %v2565_v18 = vsel %vm2545_vm5, %v2532_v10, %v2210_v32  ;;  %v5598_v10 = vld [vmem:[#allocation93_spill] sm:$0xff]  ;;  %v1730_v47 = vshll.u32 %v1729_v63, 16 }
 0x807   :  { %v2598_v62 = vsel %vm2578_vm7, %v2565_v18, 0.0  ;;  %v5599_v18 = vld [vmem:[#allocation44_spill] sm:$0xff] }
 0x808   :  { %2630 = vst [vmem:[#allocation2 + $0x98] sm:$0xff] %v2598_v62  ;;  %v2426_v61 = vpop.permute.xlu1 %2425  ;;  %v2504_v62 = vsel %vm2479_vm14, %v5599_v18, %v5598_v10  ;;  %v1804_v10 = vcvt.f32.s32 %v5115_v45 }
 0x809   :  { %v2534_v33 = vsel %vm2512_vm15, %v2501_v50, %v2426_v61  ;;  %v2505_v50 = vsel %vm2479_vm14, %v5602_v20, %v5601_v31 }
 0x80a   :  { %v1805_v45 = vshll.u32 %v1804_v10, 16 }
 0x80c   :  { %v2430_v23 = vpop.permute.xlu1 %2429 }
 0x80d   :  { %v2536_v25 = vsel %vm2512_vm15, %v2503_v22, %v2430_v23  ;;  %v5606_v23 = vld [vmem:[#allocation42_spill] sm:$0xff]  ;;  %v1789_v22 = vcvt.f32.s32 %v5106_v7  ;;  %v5608_v7 = vld [vmem:[#allocation63_spill] sm:$0xff] }
 0x813   :  { %v1652_v37 = vpop.xlane.xlu0 %1651 }
 0x814   :  { %v1653_v35 = vcvt.f32.s32 %v1652_v37 }
 0x816   :  { %v1656_v53 = vadd.s32 %v1655_v51, %v1653_v35  ;;  %v5600_v51 = vld [vmem:[#allocation62_spill] sm:$0xff] }
 0x817   :  { %v1667_v2 = vpop.xlane.xlu0 %1666  ;;  %v2537_v5 = vsel %vm2512_vm15, %v2504_v62, %v5600_v51 }
 0x818   :  { %vm1849_vm13 = vcmp.lt.s32.totalorder %v1656_v53, 3  ;;  %v1668_v54 = vcvt.f32.s32 %v1667_v2  ;;  %v2434_v2 = vpop.permute.xlu1 %2433 }
 0x819   :  { %v1850_v44 = vsel %vm1849_vm13, %v1656_v53, 3  ;;  %v1744_v53 = vcvt.f32.s32 %v5086_v26 }
 0x81a   :  { %v2212_v58 = vcvt.s32.f32 %v1850_v44  ;;  %v1671_v42 = vadd.s32 %v1670_v41, %v1668_v54 }
 0x81c   :  { %v2567_v57 = vsel %vm2545_vm5, %v2534_v33, %v2212_v58  ;;  %vm1851_vm0 = vcmp.lt.s32.totalorder %v1671_v42, 3  ;;  %v1759_v33 = vcvt.f32.s32 %v5092_v16 }
 0x81d   :  { %v2600_v9 = vsel %vm2578_vm7, %v2567_v57, 0.0  ;;  %v1852_v56 = vsel %vm1851_vm0, %v1671_v42, 3  ;;  %v2538_v57 = vsel %vm2512_vm15, %v2505_v50, %v2434_v2 }
 0x81e   :  { %2632 = vst [vmem:[#allocation2 + $0xa8] sm:$0xff] %v2600_v9  ;;  %v2213_v6 = vcvt.s32.f32 %v1852_v56  ;;  %v1745_v9 = vshll.u32 %v1744_v53, 16 }
 0x820   :  { %v2568_v1 = vsel %vm2545_vm5, %v2535_v46, %v2213_v6  ;;  %v5603_v6 = vld [vmem:[#allocation94_spill] sm:$0xff] }
 0x821   :  { %v2601_v29 = vsel %vm2578_vm7, %v2568_v1, 0.0  ;;  %v2506_v46 = vsel %vm2479_vm14, %v5604_v12, %v5603_v6 }
 0x822   :  { %2633 = vst [vmem:[#allocation2 + $0xb0] sm:$0xff] %v2601_v29  ;;  %v2539_v16 = vsel %vm2512_vm15, %v2506_v46, %v5605_v8 }
 0x84c   :  { %v1682_v21 = vpop.xlane.xlu0 %1681 }
 0x84d   :  { %v1683_v43 = vcvt.f32.s32 %v1682_v21  ;;  %v1760_v21 = vshll.u32 %v1759_v33, 16 }
 0x84f   :  { %v1686_v55 = vadd.s32 %v1685_v27, %v1683_v43  ;;  %v2438_v43 = vpop.permute.xlu1 %2437 }
 0x850   :  { %v1697_v11 = vpop.xlane.xlu0 %1696 }
 0x851   :  { %vm1853_vm1 = vcmp.lt.s32.totalorder %v1686_v55, 3  ;;  %v1698_v15 = vcvt.f32.s32 %v1697_v11 }
 0x852   :  { %v1854_v30 = vsel %vm1853_vm1, %v1686_v55, 3 }
 0x853   :  { %v2214_v38 = vcvt.s32.f32 %v1854_v30  ;;  %v1701_v28 = vadd.s32 %v1700_v39, %v1698_v15  ;;  %v5607_v15 = vld [vmem:[#allocation50_spill] sm:$0xff]  ;;  %v2442_v18 = vpop.permute.xlu1 %2441 }
 0x854   :  { %v1712_v3 = vpop.xlane.xlu0 %1711  ;;  %v2507_v30 = vsel %vm2479_vm14, %v5607_v15, %v5606_v23 }
 0x855   :  { %v2569_v14 = vsel %vm2545_vm5, %v2536_v25, %v2214_v38  ;;  %vm1855_vm2 = vcmp.lt.s32.totalorder %v1701_v28, 3  ;;  %v1713_v36 = vcvt.f32.s32 %v1712_v3  ;;  %v2540_v38 = vsel %vm2512_vm15, %v2507_v30, %v2438_v43 }
 0x856   :  { %v2602_v32 = vsel %vm2578_vm7, %v2569_v14, 0.0  ;;  %v1856_v19 = vsel %vm1855_vm2, %v1701_v28, 3  ;;  %v1775_v28 = vshll.u32 %v1774_v40, 16 }
 0x857   :  { %2634 = vst [vmem:[#allocation2 + $0xb8] sm:$0xff] %v2602_v32  ;;  %v2215_v34 = vcvt.s32.f32 %v1856_v19  ;;  %v1716_v37 = vadd.s32 %v1715_v4, %v1713_v36  ;;  %v1790_v32 = vshll.u32 %v1789_v22, 16 }
 0x858   :  { %v1727_v35 = vpop.xlane.xlu0 %1726 }
 0x859   :  { %v2570_v41 = vsel %vm2545_vm5, %v2537_v5, %v2215_v34  ;;  %vm1857_vm3 = vcmp.lt.s32.totalorder %v1716_v37, 3  ;;  %v1728_v61 = vcvt.f32.s32 %v1727_v35  ;;  %v5609_v5 = vld [vmem:[#allocation51_spill] sm:$0xff] }
 0x85a   :  { %v2603_v54 = vsel %vm2578_vm7, %v2570_v41, 0.0  ;;  %v1858_v44 = vsel %vm1857_vm3, %v1716_v37, 3 }
 0x85b   :  { %2635 = vst [vmem:[#allocation2 + $0xc0] sm:$0xff] %v2603_v54  ;;  %v2216_v58 = vcvt.s32.f32 %v1858_v44  ;;  %v1731_v42 = vadd.s32 %v1730_v47, %v1728_v61  ;;  %v2509_v47 = vsel %vm2479_vm14, %v5609_v5, %v5027_v13 }
 0x85c   :  { %v1742_v26 = vpop.xlane.xlu0 %1741  ;;  %v2542_v2 = vsel %vm2512_vm15, %v2509_v47, %v2442_v18 }
 0x85d   :  { %v2571_v56 = vsel %vm2545_vm5, %v2538_v57, %v2216_v58  ;;  %vm1859_vm6 = vcmp.lt.s32.totalorder %v1731_v42, 3  ;;  %v1743_v52 = vcvt.f32.s32 %v1742_v26  ;;  %v5610_v58 = vld [vmem:[#allocation37_spill] sm:$0xff]  ;;  %v2446_v57 = vpop.permute.xlu1 %2445 }
 0x85e   :  { %v2604_v59 = vsel %vm2578_vm7, %v2571_v56, 0.0  ;;  %v1860_v48 = vsel %vm1859_vm6, %v1731_v42, 3  ;;  %v5611_v42 = vld [vmem:[#allocation53_spill] sm:$0xff] }
 0x85f   :  { %2636 = vst [vmem:[#allocation2 + $0xc8] sm:$0xff] %v2604_v59  ;;  %v2217_v1 = vcvt.s32.f32 %v1860_v48  ;;  %v1746_v29 = vadd.s32 %v1745_v9, %v1743_v52  ;;  %v2510_v13 = vsel %vm2479_vm14, %v5611_v42, %v5610_v58  ;;  %v5612_v52 = vld [vmem:[#allocation54_spill] sm:$0xff] }
 0x860   :  { %v1757_v27 = vpop.xlane.xlu0 %1756  ;;  %v2511_v59 = vsel %vm2479_vm14, %v5612_v52, %v5063_v60 }
 0x861   :  { %v2572_v55 = vsel %vm2545_vm5, %v2539_v16, %v2217_v1  ;;  %vm1861_vm8 = vcmp.lt.s32.totalorder %v1746_v29, 3  ;;  %v1758_v11 = vcvt.f32.s32 %v1757_v27  ;;  %v2544_v12 = vsel %vm2512_vm15, %v2511_v59, %v2446_v57 }
 0x862   :  { %v2605_v39 = vsel %vm2578_vm7, %v2572_v55, 0.0  ;;  %v1862_v17 = vsel %vm1861_vm8, %v1746_v29, 3 }
 0x863   :  { %2637 = vst [vmem:[#allocation2 + $0xd0] sm:$0xff] %v2605_v39  ;;  %v2218_v0 = vcvt.s32.f32 %v1862_v17  ;;  %v1761_v49 = vadd.s32 %v1760_v21, %v1758_v11 }
 0x864   :  { %v1772_v24 = vpop.xlane.xlu0 %1771 }
 0x865   :  { %v2573_v63 = vsel %vm2545_vm5, %v2540_v38, %v2218_v0  ;;  %vm1863_vm9 = vcmp.lt.s32.totalorder %v1761_v49, 3  ;;  %v1773_v25 = vcvt.f32.s32 %v1772_v24 }
 0x866   :  { %v2606_v3 = vsel %vm2578_vm7, %v2573_v63, 0.0  ;;  %v1864_v4 = vsel %vm1863_vm9, %v1761_v49, 3 }
 0x867   :  { %2638 = vst [vmem:[#allocation2 + $0xd8] sm:$0xff] %v2606_v3  ;;  %v2219_v14 = vcvt.s32.f32 %v1864_v4  ;;  %v1776_v36 = vadd.s32 %v1775_v28, %v1773_v25 }
 0x868   :  { %v1787_v19 = vpop.xlane.xlu0 %1786 }
 0x869   :  { %v2574_v62 = vsel %vm2545_vm5, %v5608_v7, %v2219_v14  ;;  %vm1865_vm4 = vcmp.lt.s32.totalorder %v1776_v36, 3  ;;  %v1788_v34 = vcvt.f32.s32 %v1787_v19 }
 0x86a   :  { %v2607_v37 = vsel %vm2578_vm7, %v2574_v62, 0.0  ;;  %v1866_v51 = vsel %vm1865_vm4, %v1776_v36, 3 }
 0x86b   :  { %2639 = vst [vmem:[#allocation2 + $0xe0] sm:$0xff] %v2607_v37  ;;  %v2220_v35 = vcvt.s32.f32 %v1866_v51  ;;  %v1791_v53 = vadd.s32 %v1790_v32, %v1788_v34 }
 0x86c   :  { %v1802_v41 = vpop.xlane.xlu0 %1801 }
 0x86d   :  { %v2575_v61 = vsel %vm2545_vm5, %v2542_v2, %v2220_v35  ;;  %vm1867_vm10 = vcmp.lt.s32.totalorder %v1791_v53, 3  ;;  %v1803_v54 = vcvt.f32.s32 %v1802_v41 }
 0x86e   :  { %v2608_v44 = vsel %vm2578_vm7, %v2575_v61, 0.0  ;;  %v1868_v31 = vsel %vm1867_vm10, %v1791_v53, 3 }
 0x86f   :  { %2640 = vst [vmem:[#allocation2 + $0xe8] sm:$0xff] %v2608_v44  ;;  %v2221_v20 = vcvt.s32.f32 %v1868_v31  ;;  %v1806_v50 = vadd.s32 %v1805_v45, %v1803_v54 }
 0x870   :  { %v2444_v33 = vpop.permute.xlu0 %2443 }
 0x871   :  { %vm1869_vm11 = vcmp.lt.s32.totalorder %v1806_v50, 3  ;;  %v2543_v26 = vsel %vm2512_vm15, %v2510_v13, %v2444_v33 }
 0x872   :  { %v1870_v9 = vsel %vm1869_vm11, %v1806_v50, 3  ;;  %v2576_v56 = vsel %vm2545_vm5, %v2543_v26, %v2221_v20 }
 0x873   :  { %v2222_v48 = vcvt.s32.f32 %v1870_v9  ;;  %v2609_v6 = vsel %vm2578_vm7, %v2576_v56, 0.0 }
 0x874   :  { %2641 = vst [vmem:[#allocation2 + $0xf0] sm:$0xff] %v2609_v6 }
 0x875   :  { %v2577_v46 = vsel %vm2545_vm5, %v2544_v12, %v2222_v48 }
 0x876   :  { %v2610_v1 = vsel %vm2578_vm7, %v2577_v46, 0.0 }
 0x877   :  { %2642 = vst [vmem:[#allocation2 + $0xf8] sm:$0xff] %v2610_v1 }
 0x878   :  { %3026 = shalt.err (!%p3023_p4)
}
 0x879   :  { %s3027_s12 = scalar_lea.hbm %s5297_s6, 4096 }
 0x87a   :  { %p3028_p5 = scmp.ne.s32.totalorder %s5297_s6, %s3027_s12  ;;  %p3031_p6 = scmp.lt.u32.totalorder %s3027_s12, %s5297_s6 }
 0x87c   :  { %p3033_p7 = pnand %p3031_p6, %p3028_p5 }
 0x87e   :  { %3036 = shalt.err (!%p3033_p7)
}
 0x87f   :  { %s3046_s17 = smov 128   ;;  %s3047_s18 = smov 8  }
 0x880   :  { %2654 = dma.vmem_to_hbm [thread:$0]  %s2649_s9, 4096, %s5297_s6, [#allocation3], %s3046_s17, %s3046_s17, %s3047_s18  }
 0x881   :  { %3037 = dma.done.wait [#allocation3], 4096  }
 0x882   :  { %3038 = vsyncadd [#allocation3], 4294963200 }
 0x883   :  { %2658 = vsyncpa [#allocation3], 1 }

</bundles_post_ra>
